<compile_context>
chip_gen: v5e
topology: v5e:2x2
jax: 0.10.0
libtpu: 0.0.40
codegen_flags: <defaults>
</compile_context>

<pallas_src>
import functools

import jax
import jax.numpy as jnp
from jax.experimental import pallas as pl
from jax.experimental.pallas import tpu as pltpu


_TM_EW_MAX = 512                 # rows per elementwise tile
_TC_EW_MAX = 512                 # channel lanes per elementwise tile
_VMEM_LIMIT = 32 * 1024 * 1024   # well under v7x's 64 MiB physical VMEM
_BN_EPS = 1e-5


def _pad_up(n, m):
    return n + (-n) % m


# ----------------------------------------------------------------------------
# Kernel 1: tap-accumulation conv + fused per-channel BN batch statistics
# ----------------------------------------------------------------------------

def _conv_tap_kernel(x_ref, w_ref, y_ref, stats_ref, *,
                     kh, kw, stride, ho, wo, wplanes):
    """One batch element: accumulate kh*kw shifted matmuls per output row.

    x_ref:     [1, Hp, Wp, Cinp]     bf16  (stride 1)
               [1, Hp, 2, Wh, Cinp]  bf16  (stride 2; W parity-split)
    w_ref:     [kh*kw, Cinp, Coutp]  bf16  (tap-major)
    y_ref:     [1, ho, wo, Coutp]    bf16
    stats_ref: [1, 2, Coutp]         f32   (per-channel sum / sum-of-squares)
    """
    coutp = y_ref.shape[-1]

    def row_body(h, carry):
        s1, s2 = carry
        acc = jnp.zeros((wo, coutp), jnp.float32)
        for ki in range(kh):
            hi = stride * h + ki
            for kj in range(kw):
                if wplanes == 2:
                    a, b = kj // 2, kj % 2          # padded w = 2*(wo+a) + b
                    xs = x_ref[0, hi, b, a:a + wo, :]
                else:
                    xs = x_ref[0, hi, kj:kj + wo, :]
                acc = acc + jnp.dot(xs, w_ref[ki * kw + kj],
                                    preferred_element_type=jnp.float32)
        y_ref[0, h, :, :] = acc.astype(y_ref.dtype)
        s1 = s1 + jnp.sum(acc, axis=0, keepdims=True)
        s2 = s2 + jnp.sum(acc * acc, axis=0, keepdims=True)
        return s1, s2

    zero = jnp.zeros((1, coutp), jnp.float32)
    s1, s2 = jax.lax.fori_loop(0, ho, row_body, (zero, zero))
    stats_ref[0, 0:1, :] = s1
    stats_ref[0, 1:2, :] = s2


def conv2d_bn_stats(x_nhwc, w_oihw, *, stride, pad):
    """Conv2d (PyTorch weight layout [Cout, Cin, kh, kw], no bias) with fused
    per-batch-element BN batch statistics.

    x_nhwc: [N, H, W, Cx] (real input channels are 0:Cin; extra channels hit
            zero-padded weight rows, so they never contribute).
    Returns: y [N, Ho, Wo, Coutp] bf16, stats [N, 2, Coutp] f32, (N, Ho, Wo).
    """
    N, H, W, Cx = x_nhwc.shape
    Cout, Cin, kh, kw = w_oihw.shape
    assert Cin <= Cx
    Ho = (H + 2 * pad - kh) // stride + 1
    Wo = (W + 2 * pad - kw) // stride + 1
    Cinp = _pad_up(Cx, 128)
    Coutp = _pad_up(Cout, 128)

    # Weights -> [kh*kw, Cinp, Coutp] bf16 (tap-major).
    w_t = jnp.transpose(w_oihw, (2, 3, 1, 0)).reshape(kh * kw, Cin, Cout)
    w_t = jnp.pad(w_t, ((0, 0), (0, Cinp - Cin), (0, Coutp - Cout)))
    w_t = w_t.astype(jnp.bfloat16)

    # Spatial zero-padding covering exactly the rows/cols the taps touch.
    Hp = stride * (Ho - 1) + kh
    Wp = stride * (Wo - 1) + kw
    if stride == 2:
        Wp = _pad_up(Wp, 2)                       # even width for parity split
    xp = jnp.pad(x_nhwc.astype(jnp.bfloat16),
                 ((0, 0), (pad, Hp - H - pad), (pad, Wp - W - pad),
                  (0, Cinp - Cx)))

    if stride == 2:
        Wh = Wp // 2
        xk = jnp.transpose(xp.reshape(N, Hp, Wh, 2, Cinp), (0, 1, 3, 2, 4))
        x_spec = pl.BlockSpec((1, Hp, 2, Wh, Cinp),
                              lambda n: (n, 0, 0, 0, 0))
        wplanes = 2
    else:
        xk = xp
        x_spec = pl.BlockSpec((1, Hp, Wp, Cinp), lambda n: (n, 0, 0, 0))
        wplanes = 1

    y, stats = pl.pallas_call(
        functools.partial(_conv_tap_kernel, kh=kh, kw=kw, stride=stride,
                          ho=Ho, wo=Wo, wplanes=wplanes),
        out_shape=(jax.ShapeDtypeStruct((N, Ho, Wo, Coutp), jnp.bfloat16),
                   jax.ShapeDtypeStruct((N, 2, Coutp), jnp.float32)),
        grid=(N,),
        in_specs=[
            x_spec,
            pl.BlockSpec((kh * kw, Cinp, Coutp), lambda n: (0, 0, 0)),
        ],
        out_specs=(
            pl.BlockSpec((1, Ho, Wo, Coutp), lambda n: (n, 0, 0, 0)),
            pl.BlockSpec((1, 2, Coutp), lambda n: (n, 0, 0)),
        ),
        compiler_params=pltpu.CompilerParams(
            dimension_semantics=("parallel",),
            vmem_limit_bytes=_VMEM_LIMIT),
    )(xk, w_t)
    return y, stats, (N, Ho, Wo)


# ----------------------------------------------------------------------------
# Kernel 2: BN apply (+ masked ReLU) and BN apply + residual add + ReLU
# ----------------------------------------------------------------------------

def _bn_scale_shift(p, m_real, eps):
    inv_m = 1.0 / m_real
    mean = p[0:1, :] * inv_m
    # Clamp guards E[x^2] - E[x]^2 cancellation.
    var = jnp.maximum(p[1:2, :] * inv_m - mean * mean, 0.0)
    inv = jax.lax.rsqrt(var + eps)
    scale = p[2:3, :] * inv
    shift = p[3:4, :] - mean * scale
    return scale, shift


def _bn_apply_kernel(p_ref, y_ref, o_ref, *, m_real, eps):
    p = p_ref[...]                                   # [8, tc] f32 packed params
    scale, shift = _bn_scale_shift(p, m_real, eps)
    z = y_ref[...].astype(jnp.float32) * scale + shift
    o_ref[...] = jnp.where(p[4:5, :] > 0.5,
                           jnp.maximum(z, 0.0), z).astype(o_ref.dtype)


def _bn_apply_add_relu_kernel(p_ref, y_ref, r_ref, o_ref, *, m_real, eps):
    p = p_ref[...]
    scale, shift = _bn_scale_shift(p, m_real, eps)
    z = (y_ref[...].astype(jnp.float32) * scale + shift
         + r_ref[...].astype(jnp.float32))
    o_ref[...] = jnp.maximum(z, 0.0).astype(o_ref.dtype)


def _ew_grid(mp, cp):
    tm = mp if mp <= _TM_EW_MAX else _TM_EW_MAX
    tc = cp if cp <= _TC_EW_MAX else _TC_EW_MAX
    assert mp % tm == 0 and cp % tc == 0
    return tm, tc


def _pack_bn_params(stats2, gamma, beta, relu_mask, cp):
    """Pack per-channel operands into one (8, cp) f32 array:
    rows = [sum, sumsq, gamma, beta, relu_mask, 0, 0, 0]."""
    def row(v):
        c = v.shape[0]
        return jnp.pad(v.reshape(1, c).astype(jnp.float32),
                       ((0, 0), (0, cp - c)))
    return jnp.concatenate(
        [stats2, row(gamma), row(beta), row(relu_mask),
         jnp.zeros((3, cp), jnp.float32)], axis=0)


def _flatten_rows(y4d, m):
    n, ho, wo, cp = y4d.shape
    y = y4d.reshape(n * ho * wo, cp)
    mp = _pad_up(m, 8)
    if mp > _TM_EW_MAX:
        mp = _pad_up(m, _TM_EW_MAX)
    return jnp.pad(y, ((0, mp - m), (0, 0)))


def bn_apply(y_flat, packed, m_real):
    mp, cp = y_flat.shape
    tm, tc = _ew_grid(mp, cp)
    return pl.pallas_call(
        functools.partial(_bn_apply_kernel, m_real=float(m_real), eps=_BN_EPS),
        out_shape=jax.ShapeDtypeStruct((mp, cp), jnp.bfloat16),
        # Channel axis outermost so the packed per-channel block stays resident.
        grid=(cp // tc, mp // tm),
        in_specs=[
            pl.BlockSpec((8, tc), lambda j, i: (0, j)),
            pl.BlockSpec((tm, tc), lambda j, i: (i, j)),
        ],
        out_specs=pl.BlockSpec((tm, tc), lambda j, i: (i, j)),
        compiler_params=pltpu.CompilerParams(
            dimension_semantics=("parallel", "parallel"),
            vmem_limit_bytes=_VMEM_LIMIT),
    )(packed, y_flat)


def bn_apply_add_relu(y_flat, packed, r_flat, m_real):
    mp, cp = y_flat.shape
    tm, tc = _ew_grid(mp, cp)
    return pl.pallas_call(
        functools.partial(_bn_apply_add_relu_kernel,
                          m_real=float(m_real), eps=_BN_EPS),
        out_shape=jax.ShapeDtypeStruct((mp, cp), jnp.bfloat16),
        grid=(cp // tc, mp // tm),
        in_specs=[
            pl.BlockSpec((8, tc), lambda j, i: (0, j)),
            pl.BlockSpec((tm, tc), lambda j, i: (i, j)),
            pl.BlockSpec((tm, tc), lambda j, i: (i, j)),
        ],
        out_specs=pl.BlockSpec((tm, tc), lambda j, i: (i, j)),
        compiler_params=pltpu.CompilerParams(
            dimension_semantics=("parallel", "parallel"),
            vmem_limit_bytes=_VMEM_LIMIT),
    )(packed, y_flat, r_flat)


# ----------------------------------------------------------------------------
# Kernel 3: MaxPool 3x3 / stride 2 / pad 1 (parity planes -> contiguous taps)
# ----------------------------------------------------------------------------

def _maxpool_kernel(x_ref, o_ref, *, ho, wo):
    # x_ref: [4, ho+1, wo+1, C] -- the 4 (H-parity, W-parity) planes of one
    # batch element; every stride-2 tap is a plain contiguous slice.
    m = None
    for ki in range(3):
        ha, hb = divmod(ki, 2)
        for kj in range(3):
            wa, wb = divmod(kj, 2)
            t = x_ref[hb * 2 + wb, ha:ha + ho, wa:wa + wo, :].astype(jnp.float32)
            m = t if m is None else jnp.maximum(m, t)
    o_ref[0] = m.astype(o_ref.dtype)


def maxpool2d_3x3s2p1(x_nhwc):
    """MaxPool2d(3, 2, 1) on post-ReLU (>= 0) bf16 input.  Zero padding is
    equivalent to -inf padding here: every window holds at least one real,
    non-negative element."""
    N, H, W, C = x_nhwc.shape
    Ho = (H - 1) // 2 + 1
    Wo = (W - 1) // 2 + 1
    Hp2, Wp2 = 2 * (Ho + 1), 2 * (Wo + 1)
    xp = jnp.pad(x_nhwc, ((0, 0), (1, Hp2 - H - 1), (1, Wp2 - W - 1), (0, 0)))
    xr = xp.reshape(N, Ho + 1, 2, Wo + 1, 2, C)
    xt = jnp.transpose(xr, (0, 2, 4, 1, 3, 5)).reshape(N * 4, Ho + 1, Wo + 1, C)
    return pl.pallas_call(
        functools.partial(_maxpool_kernel, ho=Ho, wo=Wo),
        out_shape=jax.ShapeDtypeStruct((N, Ho, Wo, C), jnp.bfloat16),
        grid=(N,),
        in_specs=[pl.BlockSpec((4, Ho + 1, Wo + 1, C),
                               lambda n: (n, 0, 0, 0))],
        out_specs=pl.BlockSpec((1, Ho, Wo, C), lambda n: (n, 0, 0, 0)),
        compiler_params=pltpu.CompilerParams(
            dimension_semantics=("parallel",),
            vmem_limit_bytes=_VMEM_LIMIT),
    )(xt)


# ----------------------------------------------------------------------------
# Kernel 4: fused global-average-pool + linear head
# ----------------------------------------------------------------------------

def _gap_head_kernel(x_ref, w_ref, b_ref, o_ref, *, hw_real):
    pooled = jnp.sum(x_ref[...].astype(jnp.float32), axis=0) * (1.0 / hw_real)
    o_ref[...] = (jnp.dot(pooled, w_ref[...],
                          preferred_element_type=jnp.float32) + b_ref[...])


def gap_head(x_nhwc, c_real, w_t, bias):
    """x: [N, H, W, Cp] bf16 (channels >= c_real are zero), w_t: [c_real, ncls]."""
    N, H, W, Cp = x_nhwc.shape
    HW = H * W
    ncls = w_t.shape[1]
    NCp = _pad_up(ncls, 128)
    Npad = _pad_up(N, 8)
    xg = jnp.transpose(x_nhwc.reshape(N, HW, Cp), (1, 0, 2))
    xg = jnp.pad(xg, ((0, 0), (0, Npad - N), (0, 0)))
    wp = jnp.pad(w_t.astype(jnp.float32), ((0, Cp - c_real), (0, NCp - ncls)))
    bp = jnp.pad(bias.reshape(1, ncls).astype(jnp.float32),
                 ((0, 0), (0, NCp - ncls)))
    out = pl.pallas_call(
        functools.partial(_gap_head_kernel, hw_real=float(HW)),
        out_shape=jax.ShapeDtypeStruct((Npad, NCp), jnp.float32),
        grid=(Npad // 8,),
        in_specs=[
            pl.BlockSpec((HW, 8, Cp), lambda n: (0, n, 0)),
            pl.BlockSpec((Cp, NCp), lambda n: (0, 0)),
            pl.BlockSpec((1, NCp), lambda n: (0, 0)),
        ],
        out_specs=pl.BlockSpec((8, NCp), lambda n: (n, 0)),
        compiler_params=pltpu.CompilerParams(
            dimension_semantics=("parallel",),
            vmem_limit_bytes=_VMEM_LIMIT),
    )(xg, wp, bp)
    return out[:N, :ncls]


# ----------------------------------------------------------------------------
# Parameter init (deterministic, mirrors resnet._init_weights).  Conv biases
# are omitted: they are zero-initialized and cancelled exactly by the
# following BatchNorm (batch statistics), so the forward math is unchanged.
# ----------------------------------------------------------------------------

def _conv_w(key, cout, cin, k):
    return 0.02 * jax.random.normal(key, (cout, cin, k, k), dtype=jnp.float32)


def init_resblock(key, cin, cout):
    ks = jax.random.split(key, 3)
    return {
        "conv1_w": _conv_w(ks[0], cout, cin, 3),
        "bn1_g": jnp.ones((cout,), jnp.float32),
        "bn1_b": jnp.zeros((cout,), jnp.float32),
        "conv2_w": _conv_w(ks[1], cout, cout, 3),
        "bn2_g": jnp.ones((cout,), jnp.float32),
        "bn2_b": jnp.zeros((cout,), jnp.float32),
        "resc_w": _conv_w(ks[2], cout, cin, 3),
        "resbn_g": jnp.ones((cout,), jnp.float32),
        "resbn_b": jnp.zeros((cout,), jnp.float32),
    }


def init_resnet(key, in_channels, depth, hidden_features, num_classes):
    keys = jax.random.split(key, 2 * depth + 2)
    params = {
        "stem_w": _conv_w(keys[0], hidden_features, in_channels, 7),  # no bias
        "stem_g": jnp.ones((hidden_features,), jnp.float32),
        "stem_b": jnp.zeros((hidden_features,), jnp.float32),
        "blocks": [],
    }
    h = hidden_features
    for i in range(depth):
        params["blocks"].append(init_resblock(keys[1 + 2 * i], h, 2 * h))
        params["blocks"].append(init_resblock(keys[2 + 2 * i], 2 * h, 2 * h))
        h = 2 * h
    # Linear head: trunc_normal(std=0.02), stored pre-transposed ([in, out]).
    params["head_w_t"] = 0.02 * jax.random.truncated_normal(
        keys[-1], -2.0, 2.0, (h, num_classes), dtype=jnp.float32)
    params["head_b"] = jnp.zeros((num_classes,), jnp.float32)
    return params


# ----------------------------------------------------------------------------
# Forward pass
# ----------------------------------------------------------------------------

def resblock_forward(x_nhwc, p, stride):
    """relu(bn2(conv2(relu(bn1(conv1 x)))) + resbn(resconv x))."""
    cout = p["conv1_w"].shape[0]

    # ---- fused conv1 + residual conv: one input read, one MXU pass ---------
    w_cat = jnp.concatenate([p["conv1_w"], p["resc_w"]], axis=0)
    y01, sp01, (N, Ho, Wo) = conv2d_bn_stats(x_nhwc, w_cat, stride=stride, pad=1)
    Cp = y01.shape[-1]
    m1 = N * Ho * Wo

    stats01 = jnp.sum(sp01, axis=0)                  # tiny [2, Cp] reduction
    g_cat = jnp.concatenate([p["bn1_g"], p["resbn_g"]])
    b_cat = jnp.concatenate([p["bn1_b"], p["resbn_b"]])
    relu_mask = jnp.concatenate([jnp.ones((cout,), jnp.float32),
                                 jnp.zeros((cout,), jnp.float32)])
    z01 = bn_apply(_flatten_rows(y01, m1),
                   _pack_bn_params(stats01, g_cat, b_cat, relu_mask, Cp), m1)

    # conv2 consumes z01 directly: its real input channels are 0:cout and the
    # weight rows for channels >= cout are zero-padded (no extra slice/copy).
    z1_4d = z01[:m1].reshape(N, Ho, Wo, Cp)
    y2, sp2, _ = conv2d_bn_stats(z1_4d, p["conv2_w"], stride=1, pad=1)
    stats2 = jnp.sum(sp2, axis=0)
    packed2 = _pack_bn_params(stats2, p["bn2_g"], p["bn2_b"],
                              jnp.ones((cout,), jnp.float32), Cp)

    y2_flat = _flatten_rows(y2, m1)
    r = z01[:m1, cout:2 * cout]                      # resbn branch (bf16)
    r_flat = jnp.pad(r, ((0, y2_flat.shape[0] - m1), (0, Cp - cout)))
    out = bn_apply_add_relu(y2_flat, packed2, r_flat, m1)
    return out[:m1].reshape(N, Ho, Wo, Cp), cout


def resnet_forward(params, x_nchw):
    x = jnp.transpose(x_nchw, (0, 2, 3, 1)).astype(jnp.bfloat16)  # NCHW -> NHWC
    hidden = params["stem_w"].shape[0]

    # stem: conv7x7 s2 p3 (no bias) -> BN -> ReLU -> maxpool 3x3 s2 p1
    y, sp, (N, Ho, Wo) = conv2d_bn_stats(x, params["stem_w"], stride=2, pad=3)
    Cp = y.shape[-1]
    m = N * Ho * Wo
    packed = _pack_bn_params(jnp.sum(sp, axis=0), params["stem_g"],
                             params["stem_b"],
                             jnp.ones((hidden,), jnp.float32), Cp)
    z = bn_apply(_flatten_rows(y, m), packed, m)
    x = maxpool2d_3x3s2p1(z[:m].reshape(N, Ho, Wo, Cp))

    c = hidden
    for i, bp in enumerate(params["blocks"]):
        stride = 2 if i % 2 == 0 else 1              # (h->2h, s2), (2h->2h, s1)
        x, c = resblock_forward(x, bp, stride)

    return gap_head(x, c, params["head_w_t"], params["head_b"])


# ----------------------------------------------------------------------------

if __name__ == "__main__":
    key = jax.random.PRNGKey(0)
    in_channels, depth, hidden_features, num_classes = 3, 1, 8, 10
    pkey, xkey = jax.random.split(key)

    params = init_resnet(pkey, in_channels, depth, hidden_features, num_classes)
    x = jax.random.normal(xkey, (2, in_channels, 16, 16), dtype=jnp.float32)

    fwd = jax.jit(resnet_forward)
    out = jax.block_until_ready(fwd(params, x))
    assert out.shape == (2, num_classes), out.shape
    assert bool(jnp.all(jnp.isfinite(out)))
    print("KERNEL_OK")
</pallas_src>

<mosaic_0001>
module attributes {stable_mosaic.version = 11 : i64} {
  func.func @_conv_tap_kernel(%arg0: i32, %arg1: memref<1x21x2x11x128xbf16, #tpu.memory_space<vmem>>, %arg2: memref<49x128x128xbf16, #tpu.memory_space<vmem>>, %arg3: memref<1x8x8x128xbf16, #tpu.memory_space<vmem>>, %arg4: memref<1x2x128xf32, #tpu.memory_space<vmem>>) attributes {dimension_semantics = [#tpu.dimension_semantics<parallel>], iteration_bounds = array<i64: 2>, scalar_prefetch = 0 : i64, scratch_operands = 0 : i64, tpu.core_type = #tpu.core_type<tc>, window_params = [{transform_indices = @transform_0, window_bounds = array<i64: 1, 21, 2, 11, 128>}, {pipeline_mode = #tpu.pipeline_mode<synchronous>, transform_indices = @transform_1, window_bounds = array<i64: 49, 128, 128>}, {transform_indices = @transform_2, window_bounds = array<i64: 1, 8, 8, 128>}, {transform_indices = @transform_3, window_bounds = array<i64: 1, 2, 128>}]} {
    %cst = arith.constant 0.000000e+00 : f32
    %0 = vector.broadcast %cst : f32 to vector<1x128xf32>
    %c0_i32 = arith.constant 0 : i32
    %c8_i32 = arith.constant 8 : i32
    %1 = arith.addi %c0_i32, %c8_i32 : i32
    %c1_i32 = arith.constant 1 : i32
    %2:2 = scf.for %arg5 = %c0_i32 to %1 step %c1_i32 iter_args(%arg6 = %0, %arg7 = %0) -> (vector<1x128xf32>, vector<1x128xf32>)  : i32 {
      %cst_5 = arith.constant 0.000000e+00 : f32
      %9 = vector.broadcast %cst_5 : f32 to vector<8x128xf32>
      %c2_i32 = arith.constant 2 : i32
      %10 = arith.muli %c2_i32, %arg5 : i32
      %c0_i32_6 = arith.constant 0 : i32
      %11 = arith.addi %10, %c0_i32_6 : i32
      %c0_7 = arith.constant 0 : index
      %12 = arith.index_cast %11 : i32 to index
      %c0_8 = arith.constant 0 : index
      %c0_9 = arith.constant 0 : index
      %c0_10 = arith.constant 0 : index
      %13 = vector.load %arg1[%c0_7, %12, %c0_8, %c0_9, %c0_10] : memref<1x21x2x11x128xbf16, #tpu.memory_space<vmem>>, vector<1x1x1x8x128xbf16>
      %14 = vector.shape_cast %13 : vector<1x1x1x8x128xbf16> to vector<8x128xbf16>
      %c0_11 = arith.constant 0 : index
      %c0_12 = arith.constant 0 : index
      %c0_13 = arith.constant 0 : index
      %15 = vector.load %arg2[%c0_11, %c0_12, %c0_13] : memref<49x128x128xbf16, #tpu.memory_space<vmem>>, vector<1x128x128xbf16>
      %16 = vector.shape_cast %15 : vector<1x128x128xbf16> to vector<128x128xbf16>
      %cst_14 = arith.constant dense<0.000000e+00> : vector<8x128xf32>
      %17 = tpu.matmul %14, %16, %cst_14 {dimension_numbers = #tpu.dot_dimension_numbers<[1], [0], [0], [1], [0, 0, 1, 1], [], []>} : vector<8x128xbf16>, vector<128x128xbf16>, vector<8x128xf32> -> vector<8x128xf32>
      %18 = arith.addf %9, %17 : vector<8x128xf32>
      %c0_15 = arith.constant 0 : index
      %19 = arith.index_cast %11 : i32 to index
      %c1_16 = arith.constant 1 : index
      %c0_17 = arith.constant 0 : index
      %c0_18 = arith.constant 0 : index
      %20 = vector.load %arg1[%c0_15, %19, %c1_16, %c0_17, %c0_18] : memref<1x21x2x11x128xbf16, #tpu.memory_space<vmem>>, vector<1x1x1x8x128xbf16>
      %21 = vector.shape_cast %20 : vector<1x1x1x8x128xbf16> to vector<8x128xbf16>
      %c1_19 = arith.constant 1 : index
      %c0_20 = arith.constant 0 : index
      %c0_21 = arith.constant 0 : index
      %22 = vector.load %arg2[%c1_19, %c0_20, %c0_21] : memref<49x128x128xbf16, #tpu.memory_space<vmem>>, vector<1x128x128xbf16>
      %23 = vector.shape_cast %22 : vector<1x128x128xbf16> to vector<128x128xbf16>
      %cst_22 = arith.constant dense<0.000000e+00> : vector<8x128xf32>
      %24 = tpu.matmul %21, %23, %cst_22 {dimension_numbers = #tpu.dot_dimension_numbers<[1], [0], [0], [1], [0, 0, 1, 1], [], []>} : vector<8x128xbf16>, vector<128x128xbf16>, vector<8x128xf32> -> vector<8x128xf32>
      %25 = arith.addf %18, %24 : vector<8x128xf32>
      %c0_23 = arith.constant 0 : index
      %26 = arith.index_cast %11 : i32 to index
      %c0_24 = arith.constant 0 : index
      %c1_25 = arith.constant 1 : index
      %c0_26 = arith.constant 0 : index
      %27 = vector.load %arg1[%c0_23, %26, %c0_24, %c1_25, %c0_26] : memref<1x21x2x11x128xbf16, #tpu.memory_space<vmem>>, vector<1x1x1x8x128xbf16>
      %28 = vector.shape_cast %27 : vector<1x1x1x8x128xbf16> to vector<8x128xbf16>
      %c2 = arith.constant 2 : index
      %c0_27 = arith.constant 0 : index
      %c0_28 = arith.constant 0 : index
      %29 = vector.load %arg2[%c2, %c0_27, %c0_28] : memref<49x128x128xbf16, #tpu.memory_space<vmem>>, vector<1x128x128xbf16>
      %30 = vector.shape_cast %29 : vector<1x128x128xbf16> to vector<128x128xbf16>
      %cst_29 = arith.constant dense<0.000000e+00> : vector<8x128xf32>
      %31 = tpu.matmul %28, %30, %cst_29 {dimension_numbers = #tpu.dot_dimension_numbers<[1], [0], [0], [1], [0, 0, 1, 1], [], []>} : vector<8x128xbf16>, vector<128x128xbf16>, vector<8x128xf32> -> vector<8x128xf32>
      %32 = arith.addf %25, %31 : vector<8x128xf32>
      %c0_30 = arith.constant 0 : index
      %33 = arith.index_cast %11 : i32 to index
      %c1_31 = arith.constant 1 : index
      %c1_32 = arith.constant 1 : index
      %c0_33 = arith.constant 0 : index
      %34 = vector.load %arg1[%c0_30, %33, %c1_31, %c1_32, %c0_33] : memref<1x21x2x11x128xbf16, #tpu.memory_space<vmem>>, vector<1x1x1x8x128xbf16>
      %35 = vector.shape_cast %34 : vector<1x1x1x8x128xbf16> to vector<8x128xbf16>
      %c3 = arith.constant 3 : index
      %c0_34 = arith.constant 0 : index
      %c0_35 = arith.constant 0 : index
      %36 = vector.load %arg2[%c3, %c0_34, %c0_35] : memref<49x128x128xbf16, #tpu.memory_space<vmem>>, vector<1x128x128xbf16>
      %37 = vector.shape_cast %36 : vector<1x128x128xbf16> to vector<128x128xbf16>
      %cst_36 = arith.constant dense<0.000000e+00> : vector<8x128xf32>
      %38 = tpu.matmul %35, %37, %cst_36 {dimension_numbers = #tpu.dot_dimension_numbers<[1], [0], [0], [1], [0, 0, 1, 1], [], []>} : vector<8x128xbf16>, vector<128x128xbf16>, vector<8x128xf32> -> vector<8x128xf32>
      %39 = arith.addf %32, %38 : vector<8x128xf32>
      %c0_37 = arith.constant 0 : index
      %40 = arith.index_cast %11 : i32 to index
      %c0_38 = arith.constant 0 : index
      %c2_39 = arith.constant 2 : index
      %c0_40 = arith.constant 0 : index
      %41 = vector.load %arg1[%c0_37, %40, %c0_38, %c2_39, %c0_40] : memref<1x21x2x11x128xbf16, #tpu.memory_space<vmem>>, vector<1x1x1x8x128xbf16>
      %42 = vector.shape_cast %41 : vector<1x1x1x8x128xbf16> to vector<8x128xbf16>
      %c4 = arith.constant 4 : index
      %c0_41 = arith.constant 0 : index
      %c0_42 = arith.constant 0 : index
      %43 = vector.load %arg2[%c4, %c0_41, %c0_42] : memref<49x128x128xbf16, #tpu.memory_space<vmem>>, vector<1x128x128xbf16>
      %44 = vector.shape_cast %43 : vector<1x128x128xbf16> to vector<128x128xbf16>
      %cst_43 = arith.constant dense<0.000000e+00> : vector<8x128xf32>
      %45 = tpu.matmul %42, %44, %cst_43 {dimension_numbers = #tpu.dot_dimension_numbers<[1], [0], [0], [1], [0, 0, 1, 1], [], []>} : vector<8x128xbf16>, vector<128x128xbf16>, vector<8x128xf32> -> vector<8x128xf32>
      %46 = arith.addf %39, %45 : vector<8x128xf32>
      %c0_44 = arith.constant 0 : index
      %47 = arith.index_cast %11 : i32 to index
      %c1_45 = arith.constant 1 : index
      %c2_46 = arith.constant 2 : index
      %c0_47 = arith.constant 0 : index
      %48 = vector.load %arg1[%c0_44, %47, %c1_45, %c2_46, %c0_47] : memref<1x21x2x11x128xbf16, #tpu.memory_space<vmem>>, vector<1x1x1x8x128xbf16>
      %49 = vector.shape_cast %48 : vector<1x1x1x8x128xbf16> to vector<8x128xbf16>
      %c5 = arith.constant 5 : index
      %c0_48 = arith.constant 0 : index
      %c0_49 = arith.constant 0 : index
      %50 = vector.load %arg2[%c5, %c0_48, %c0_49] : memref<49x128x128xbf16, #tpu.memory_space<vmem>>, vector<1x128x128xbf16>
      %51 = vector.shape_cast %50 : vector<1x128x128xbf16> to vector<128x128xbf16>
      %cst_50 = arith.constant dense<0.000000e+00> : vector<8x128xf32>
      %52 = tpu.matmul %49, %51, %cst_50 {dimension_numbers = #tpu.dot_dimension_numbers<[1], [0], [0], [1], [0, 0, 1, 1], [], []>} : vector<8x128xbf16>, vector<128x128xbf16>, vector<8x128xf32> -> vector<8x128xf32>
      %53 = arith.addf %46, %52 : vector<8x128xf32>
      %c0_51 = arith.constant 0 : index
      %54 = arith.index_cast %11 : i32 to index
      %c0_52 = arith.constant 0 : index
      %c3_53 = arith.constant 3 : index
      %c0_54 = arith.constant 0 : index
      %55 = vector.load %arg1[%c0_51, %54, %c0_52, %c3_53, %c0_54] : memref<1x21x2x11x128xbf16, #tpu.memory_space<vmem>>, vector<1x1x1x8x128xbf16>
      %56 = vector.shape_cast %55 : vector<1x1x1x8x128xbf16> to vector<8x128xbf16>
      %c6 = arith.constant 6 : index
      %c0_55 = arith.constant 0 : index
      %c0_56 = arith.constant 0 : index
      %57 = vector.load %arg2[%c6, %c0_55, %c0_56] : memref<49x128x128xbf16, #tpu.memory_space<vmem>>, vector<1x128x128xbf16>
      %58 = vector.shape_cast %57 : vector<1x128x128xbf16> to vector<128x128xbf16>
      %cst_57 = arith.constant dense<0.000000e+00> : vector<8x128xf32>
      %59 = tpu.matmul %56, %58, %cst_57 {dimension_numbers = #tpu.dot_dimension_numbers<[1], [0], [0], [1], [0, 0, 1, 1], [], []>} : vector<8x128xbf16>, vector<128x128xbf16>, vector<8x128xf32> -> vector<8x128xf32>
      %60 = arith.addf %53, %59 : vector<8x128xf32>
      %c2_i32_58 = arith.constant 2 : i32
      %61 = arith.muli %c2_i32_58, %arg5 : i32
      %c1_i32_59 = arith.constant 1 : i32
      %62 = arith.addi %61, %c1_i32_59 : i32
      %c0_60 = arith.constant 0 : index
      %63 = arith.index_cast %62 : i32 to index
      %c0_61 = arith.constant 0 : index
      %c0_62 = arith.constant 0 : index
      %c0_63 = arith.constant 0 : index
      %64 = vector.load %arg1[%c0_60, %63, %c0_61, %c0_62, %c0_63] : memref<1x21x2x11x128xbf16, #tpu.memory_space<vmem>>, vector<1x1x1x8x128xbf16>
      %65 = vector.shape_cast %64 : vector<1x1x1x8x128xbf16> to vector<8x128xbf16>
      %c7 = arith.constant 7 : index
      %c0_64 = arith.constant 0 : index
      %c0_65 = arith.constant 0 : index
      %66 = vector.load %arg2[%c7, %c0_64, %c0_65] : memref<49x128x128xbf16, #tpu.memory_space<vmem>>, vector<1x128x128xbf16>
      %67 = vector.shape_cast %66 : vector<1x128x128xbf16> to vector<128x128xbf16>
      %cst_66 = arith.constant dense<0.000000e+00> : vector<8x128xf32>
      %68 = tpu.matmul %65, %67, %cst_66 {dimension_numbers = #tpu.dot_dimension_numbers<[1], [0], [0], [1], [0, 0, 1, 1], [], []>} : vector<8x128xbf16>, vector<128x128xbf16>, vector<8x128xf32> -> vector<8x128xf32>
      %69 = arith.addf %60, %68 : vector<8x128xf32>
      %c0_67 = arith.constant 0 : index
      %70 = arith.index_cast %62 : i32 to index
      %c1_68 = arith.constant 1 : index
      %c0_69 = arith.constant 0 : index
      %c0_70 = arith.constant 0 : index
      %71 = vector.load %arg1[%c0_67, %70, %c1_68, %c0_69, %c0_70] : memref<1x21x2x11x128xbf16, #tpu.memory_space<vmem>>, vector<1x1x1x8x128xbf16>
      %72 = vector.shape_cast %71 : vector<1x1x1x8x128xbf16> to vector<8x128xbf16>
      %c8 = arith.constant 8 : index
      %c0_71 = arith.constant 0 : index
      %c0_72 = arith.constant 0 : index
      %73 = vector.load %arg2[%c8, %c0_71, %c0_72] : memref<49x128x128xbf16, #tpu.memory_space<vmem>>, vector<1x128x128xbf16>
      %74 = vector.shape_cast %73 : vector<1x128x128xbf16> to vector<128x128xbf16>
      %cst_73 = arith.constant dense<0.000000e+00> : vector<8x128xf32>
      %75 = tpu.matmul %72, %74, %cst_73 {dimension_numbers = #tpu.dot_dimension_numbers<[1], [0], [0], [1], [0, 0, 1, 1], [], []>} : vector<8x128xbf16>, vector<128x128xbf16>, vector<8x128xf32> -> vector<8x128xf32>
      %76 = arith.addf %69, %75 : vector<8x128xf32>
      %c0_74 = arith.constant 0 : index
      %77 = arith.index_cast %62 : i32 to index
      %c0_75 = arith.constant 0 : index
      %c1_76 = arith.constant 1 : index
      %c0_77 = arith.constant 0 : index
      %78 = vector.load %arg1[%c0_74, %77, %c0_75, %c1_76, %c0_77] : memref<1x21x2x11x128xbf16, #tpu.memory_space<vmem>>, vector<1x1x1x8x128xbf16>
      %79 = vector.shape_cast %78 : vector<1x1x1x8x128xbf16> to vector<8x128xbf16>
      %c9 = arith.constant 9 : index
      %c0_78 = arith.constant 0 : index
      %c0_79 = arith.constant 0 : index
      %80 = vector.load %arg2[%c9, %c0_78, %c0_79] : memref<49x128x128xbf16, #tpu.memory_space<vmem>>, vector<1x128x128xbf16>
      %81 = vector.shape_cast %80 : vector<1x128x128xbf16> to vector<128x128xbf16>
      %cst_80 = arith.constant dense<0.000000e+00> : vector<8x128xf32>
      %82 = tpu.matmul %79, %81, %cst_80 {dimension_numbers = #tpu.dot_dimension_numbers<[1], [0], [0], [1], [0, 0, 1, 1], [], []>} : vector<8x128xbf16>, vector<128x128xbf16>, vector<8x128xf32> -> vector<8x128xf32>
      %83 = arith.addf %76, %82 : vector<8x128xf32>
      %c0_81 = arith.constant 0 : index
      %84 = arith.index_cast %62 : i32 to index
      %c1_82 = arith.constant 1 : index
      %c1_83 = arith.constant 1 : index
      %c0_84 = arith.constant 0 : index
      %85 = vector.load %arg1[%c0_81, %84, %c1_82, %c1_83, %c0_84] : memref<1x21x2x11x128xbf16, #tpu.memory_space<vmem>>, vector<1x1x1x8x128xbf16>
      %86 = vector.shape_cast %85 : vector<1x1x1x8x128xbf16> to vector<8x128xbf16>
      %c10 = arith.constant 10 : index
      %c0_85 = arith.constant 0 : index
      %c0_86 = arith.constant 0 : index
      %87 = vector.load %arg2[%c10, %c0_85, %c0_86] : memref<49x128x128xbf16, #tpu.memory_space<vmem>>, vector<1x128x128xbf16>
      %88 = vector.shape_cast %87 : vector<1x128x128xbf16> to vector<128x128xbf16>
      %cst_87 = arith.constant dense<0.000000e+00> : vector<8x128xf32>
      %89 = tpu.matmul %86, %88, %cst_87 {dimension_numbers = #tpu.dot_dimension_numbers<[1], [0], [0], [1], [0, 0, 1, 1], [], []>} : vector<8x128xbf16>, vector<128x128xbf16>, vector<8x128xf32> -> vector<8x128xf32>
      %90 = arith.addf %83, %89 : vector<8x128xf32>
      %c0_88 = arith.constant 0 : index
      %91 = arith.index_cast %62 : i32 to index
      %c0_89 = arith.constant 0 : index
      %c2_90 = arith.constant 2 : index
      %c0_91 = arith.constant 0 : index
      %92 = vector.load %arg1[%c0_88, %91, %c0_89, %c2_90, %c0_91] : memref<1x21x2x11x128xbf16, #tpu.memory_space<vmem>>, vector<1x1x1x8x128xbf16>
      %93 = vector.shape_cast %92 : vector<1x1x1x8x128xbf16> to vector<8x128xbf16>
      %c11 = arith.constant 11 : index
      %c0_92 = arith.constant 0 : index
      %c0_93 = arith.constant 0 : index
      %94 = vector.load %arg2[%c11, %c0_92, %c0_93] : memref<49x128x128xbf16, #tpu.memory_space<vmem>>, vector<1x128x128xbf16>
      %95 = vector.shape_cast %94 : vector<1x128x128xbf16> to vector<128x128xbf16>
      %cst_94 = arith.constant dense<0.000000e+00> : vector<8x128xf32>
      %96 = tpu.matmul %93, %95, %cst_94 {dimension_numbers = #tpu.dot_dimension_numbers<[1], [0], [0], [1], [0, 0, 1, 1], [], []>} : vector<8x128xbf16>, vector<128x128xbf16>, vector<8x128xf32> -> vector<8x128xf32>
      %97 = arith.addf %90, %96 : vector<8x128xf32>
      %c0_95 = arith.constant 0 : index
      %98 = arith.index_cast %62 : i32 to index
      %c1_96 = arith.constant 1 : index
      %c2_97 = arith.constant 2 : index
      %c0_98 = arith.constant 0 : index
      %99 = vector.load %arg1[%c0_95, %98, %c1_96, %c2_97, %c0_98] : memref<1x21x2x11x128xbf16, #tpu.memory_space<vmem>>, vector<1x1x1x8x128xbf16>
      %100 = vector.shape_cast %99 : vector<1x1x1x8x128xbf16> to vector<8x128xbf16>
      %c12 = arith.constant 12 : index
      %c0_99 = arith.constant 0 : index
      %c0_100 = arith.constant 0 : index
      %101 = vector.load %arg2[%c12, %c0_99, %c0_100] : memref<49x128x128xbf16, #tpu.memory_space<vmem>>, vector<1x128x128xbf16>
      %102 = vector.shape_cast %101 : vector<1x128x128xbf16> to vector<128x128xbf16>
      %cst_101 = arith.constant dense<0.000000e+00> : vector<8x128xf32>
      %103 = tpu.matmul %100, %102, %cst_101 {dimension_numbers = #tpu.dot_dimension_numbers<[1], [0], [0], [1], [0, 0, 1, 1], [], []>} : vector<8x128xbf16>, vector<128x128xbf16>, vector<8x128xf32> -> vector<8x128xf32>
      %104 = arith.addf %97, %103 : vector<8x128xf32>
      %c0_102 = arith.constant 0 : index
      %105 = arith.index_cast %62 : i32 to index
      %c0_103 = arith.constant 0 : index
      %c3_104 = arith.constant 3 : index
      %c0_105 = arith.constant 0 : index
      %106 = vector.load %arg1[%c0_102, %105, %c0_103, %c3_104, %c0_105] : memref<1x21x2x11x128xbf16, #tpu.memory_space<vmem>>, vector<1x1x1x8x128xbf16>
      %107 = vector.shape_cast %106 : vector<1x1x1x8x128xbf16> to vector<8x128xbf16>
      %c13 = arith.constant 13 : index
      %c0_106 = arith.constant 0 : index
      %c0_107 = arith.constant 0 : index
      %108 = vector.load %arg2[%c13, %c0_106, %c0_107] : memref<49x128x128xbf16, #tpu.memory_space<vmem>>, vector<1x128x128xbf16>
      %109 = vector.shape_cast %108 : vector<1x128x128xbf16> to vector<128x128xbf16>
      %cst_108 = arith.constant dense<0.000000e+00> : vector<8x128xf32>
      %110 = tpu.matmul %107, %109, %cst_108 {dimension_numbers = #tpu.dot_dimension_numbers<[1], [0], [0], [1], [0, 0, 1, 1], [], []>} : vector<8x128xbf16>, vector<128x128xbf16>, vector<8x128xf32> -> vector<8x128xf32>
      %111 = arith.addf %104, %110 : vector<8x128xf32>
      %c2_i32_109 = arith.constant 2 : i32
      %112 = arith.muli %c2_i32_109, %arg5 : i32
      %c2_i32_110 = arith.constant 2 : i32
      %113 = arith.addi %112, %c2_i32_110 : i32
      %c0_111 = arith.constant 0 : index
      %114 = arith.index_cast %113 : i32 to index
      %c0_112 = arith.constant 0 : index
      %c0_113 = arith.constant 0 : index
      %c0_114 = arith.constant 0 : index
      %115 = vector.load %arg1[%c0_111, %114, %c0_112, %c0_113, %c0_114] : memref<1x21x2x11x128xbf16, #tpu.memory_space<vmem>>, vector<1x1x1x8x128xbf16>
      %116 = vector.shape_cast %115 : vector<1x1x1x8x128xbf16> to vector<8x128xbf16>
      %c14 = arith.constant 14 : index
      %c0_115 = arith.constant 0 : index
      %c0_116 = arith.constant 0 : index
      %117 = vector.load %arg2[%c14, %c0_115, %c0_116] : memref<49x128x128xbf16, #tpu.memory_space<vmem>>, vector<1x128x128xbf16>
      %118 = vector.shape_cast %117 : vector<1x128x128xbf16> to vector<128x128xbf16>
      %cst_117 = arith.constant dense<0.000000e+00> : vector<8x128xf32>
      %119 = tpu.matmul %116, %118, %cst_117 {dimension_numbers = #tpu.dot_dimension_numbers<[1], [0], [0], [1], [0, 0, 1, 1], [], []>} : vector<8x128xbf16>, vector<128x128xbf16>, vector<8x128xf32> -> vector<8x128xf32>
      %120 = arith.addf %111, %119 : vector<8x128xf32>
      %c0_118 = arith.constant 0 : index
      %121 = arith.index_cast %113 : i32 to index
      %c1_119 = arith.constant 1 : index
      %c0_120 = arith.constant 0 : index
      %c0_121 = arith.constant 0 : index
      %122 = vector.load %arg1[%c0_118, %121, %c1_119, %c0_120, %c0_121] : memref<1x21x2x11x128xbf16, #tpu.memory_space<vmem>>, vector<1x1x1x8x128xbf16>
      %123 = vector.shape_cast %122 : vector<1x1x1x8x128xbf16> to vector<8x128xbf16>
      %c15 = arith.constant 15 : index
      %c0_122 = arith.constant 0 : index
      %c0_123 = arith.constant 0 : index
      %124 = vector.load %arg2[%c15, %c0_122, %c0_123] : memref<49x128x128xbf16, #tpu.memory_space<vmem>>, vector<1x128x128xbf16>
      %125 = vector.shape_cast %124 : vector<1x128x128xbf16> to vector<128x128xbf16>
      %cst_124 = arith.constant dense<0.000000e+00> : vector<8x128xf32>
      %126 = tpu.matmul %123, %125, %cst_124 {dimension_numbers = #tpu.dot_dimension_numbers<[1], [0], [0], [1], [0, 0, 1, 1], [], []>} : vector<8x128xbf16>, vector<128x128xbf16>, vector<8x128xf32> -> vector<8x128xf32>
      %127 = arith.addf %120, %126 : vector<8x128xf32>
      %c0_125 = arith.constant 0 : index
      %128 = arith.index_cast %113 : i32 to index
      %c0_126 = arith.constant 0 : index
      %c1_127 = arith.constant 1 : index
      %c0_128 = arith.constant 0 : index
      %129 = vector.load %arg1[%c0_125, %128, %c0_126, %c1_127, %c0_128] : memref<1x21x2x11x128xbf16, #tpu.memory_space<vmem>>, vector<1x1x1x8x128xbf16>
      %130 = vector.shape_cast %129 : vector<1x1x1x8x128xbf16> to vector<8x128xbf16>
      %c16 = arith.constant 16 : index
      %c0_129 = arith.constant 0 : index
      %c0_130 = arith.constant 0 : index
      %131 = vector.load %arg2[%c16, %c0_129, %c0_130] : memref<49x128x128xbf16, #tpu.memory_space<vmem>>, vector<1x128x128xbf16>
      %132 = vector.shape_cast %131 : vector<1x128x128xbf16> to vector<128x128xbf16>
      %cst_131 = arith.constant dense<0.000000e+00> : vector<8x128xf32>
      %133 = tpu.matmul %130, %132, %cst_131 {dimension_numbers = #tpu.dot_dimension_numbers<[1], [0], [0], [1], [0, 0, 1, 1], [], []>} : vector<8x128xbf16>, vector<128x128xbf16>, vector<8x128xf32> -> vector<8x128xf32>
      %134 = arith.addf %127, %133 : vector<8x128xf32>
      %c0_132 = arith.constant 0 : index
      %135 = arith.index_cast %113 : i32 to index
      %c1_133 = arith.constant 1 : index
      %c1_134 = arith.constant 1 : index
      %c0_135 = arith.constant 0 : index
      %136 = vector.load %arg1[%c0_132, %135, %c1_133, %c1_134, %c0_135] : memref<1x21x2x11x128xbf16, #tpu.memory_space<vmem>>, vector<1x1x1x8x128xbf16>
      %137 = vector.shape_cast %136 : vector<1x1x1x8x128xbf16> to vector<8x128xbf16>
      %c17 = arith.constant 17 : index
      %c0_136 = arith.constant 0 : index
      %c0_137 = arith.constant 0 : index
      %138 = vector.load %arg2[%c17, %c0_136, %c0_137] : memref<49x128x128xbf16, #tpu.memory_space<vmem>>, vector<1x128x128xbf16>
      %139 = vector.shape_cast %138 : vector<1x128x128xbf16> to vector<128x128xbf16>
      %cst_138 = arith.constant dense<0.000000e+00> : vector<8x128xf32>
      %140 = tpu.matmul %137, %139, %cst_138 {dimension_numbers = #tpu.dot_dimension_numbers<[1], [0], [0], [1], [0, 0, 1, 1], [], []>} : vector<8x128xbf16>, vector<128x128xbf16>, vector<8x128xf32> -> vector<8x128xf32>
      %141 = arith.addf %134, %140 : vector<8x128xf32>
      %c0_139 = arith.constant 0 : index
      %142 = arith.index_cast %113 : i32 to index
      %c0_140 = arith.constant 0 : index
      %c2_141 = arith.constant 2 : index
      %c0_142 = arith.constant 0 : index
      %143 = vector.load %arg1[%c0_139, %142, %c0_140, %c2_141, %c0_142] : memref<1x21x2x11x128xbf16, #tpu.memory_space<vmem>>, vector<1x1x1x8x128xbf16>
      %144 = vector.shape_cast %143 : vector<1x1x1x8x128xbf16> to vector<8x128xbf16>
      %c18 = arith.constant 18 : index
      %c0_143 = arith.constant 0 : index
      %c0_144 = arith.constant 0 : index
      %145 = vector.load %arg2[%c18, %c0_143, %c0_144] : memref<49x128x128xbf16, #tpu.memory_space<vmem>>, vector<1x128x128xbf16>
      %146 = vector.shape_cast %145 : vector<1x128x128xbf16> to vector<128x128xbf16>
      %cst_145 = arith.constant dense<0.000000e+00> : vector<8x128xf32>
      %147 = tpu.matmul %144, %146, %cst_145 {dimension_numbers = #tpu.dot_dimension_numbers<[1], [0], [0], [1], [0, 0, 1, 1], [], []>} : vector<8x128xbf16>, vector<128x128xbf16>, vector<8x128xf32> -> vector<8x128xf32>
      %148 = arith.addf %141, %147 : vector<8x128xf32>
      %c0_146 = arith.constant 0 : index
      %149 = arith.index_cast %113 : i32 to index
      %c1_147 = arith.constant 1 : index
      %c2_148 = arith.constant 2 : index
      %c0_149 = arith.constant 0 : index
      %150 = vector.load %arg1[%c0_146, %149, %c1_147, %c2_148, %c0_149] : memref<1x21x2x11x128xbf16, #tpu.memory_space<vmem>>, vector<1x1x1x8x128xbf16>
      %151 = vector.shape_cast %150 : vector<1x1x1x8x128xbf16> to vector<8x128xbf16>
      %c19 = arith.constant 19 : index
      %c0_150 = arith.constant 0 : index
      %c0_151 = arith.constant 0 : index
      %152 = vector.load %arg2[%c19, %c0_150, %c0_151] : memref<49x128x128xbf16, #tpu.memory_space<vmem>>, vector<1x128x128xbf16>
      %153 = vector.shape_cast %152 : vector<1x128x128xbf16> to vector<128x128xbf16>
      %cst_152 = arith.constant dense<0.000000e+00> : vector<8x128xf32>
      %154 = tpu.matmul %151, %153, %cst_152 {dimension_numbers = #tpu.dot_dimension_numbers<[1], [0], [0], [1], [0, 0, 1, 1], [], []>} : vector<8x128xbf16>, vector<128x128xbf16>, vector<8x128xf32> -> vector<8x128xf32>
      %155 = arith.addf %148, %154 : vector<8x128xf32>
      %c0_153 = arith.constant 0 : index
      %156 = arith.index_cast %113 : i32 to index
      %c0_154 = arith.constant 0 : index
      %c3_155 = arith.constant 3 : index
      %c0_156 = arith.constant 0 : index
      %157 = vector.load %arg1[%c0_153, %156, %c0_154, %c3_155, %c0_156] : memref<1x21x2x11x128xbf16, #tpu.memory_space<vmem>>, vector<1x1x1x8x128xbf16>
      %158 = vector.shape_cast %157 : vector<1x1x1x8x128xbf16> to vector<8x128xbf16>
      %c20 = arith.constant 20 : index
      %c0_157 = arith.constant 0 : index
      %c0_158 = arith.constant 0 : index
      %159 = vector.load %arg2[%c20, %c0_157, %c0_158] : memref<49x128x128xbf16, #tpu.memory_space<vmem>>, vector<1x128x128xbf16>
      %160 = vector.shape_cast %159 : vector<1x128x128xbf16> to vector<128x128xbf16>
      %cst_159 = arith.constant dense<0.000000e+00> : vector<8x128xf32>
      %161 = tpu.matmul %158, %160, %cst_159 {dimension_numbers = #tpu.dot_dimension_numbers<[1], [0], [0], [1], [0, 0, 1, 1], [], []>} : vector<8x128xbf16>, vector<128x128xbf16>, vector<8x128xf32> -> vector<8x128xf32>
      %162 = arith.addf %155, %161 : vector<8x128xf32>
      %c2_i32_160 = arith.constant 2 : i32
      %163 = arith.muli %c2_i32_160, %arg5 : i32
      %c3_i32 = arith.constant 3 : i32
      %164 = arith.addi %163, %c3_i32 : i32
      %c0_161 = arith.constant 0 : index
      %165 = arith.index_cast %164 : i32 to index
      %c0_162 = arith.constant 0 : index
      %c0_163 = arith.constant 0 : index
      %c0_164 = arith.constant 0 : index
      %166 = vector.load %arg1[%c0_161, %165, %c0_162, %c0_163, %c0_164] : memref<1x21x2x11x128xbf16, #tpu.memory_space<vmem>>, vector<1x1x1x8x128xbf16>
      %167 = vector.shape_cast %166 : vector<1x1x1x8x128xbf16> to vector<8x128xbf16>
      %c21 = arith.constant 21 : index
      %c0_165 = arith.constant 0 : index
      %c0_166 = arith.constant 0 : index
      %168 = vector.load %arg2[%c21, %c0_165, %c0_166] : memref<49x128x128xbf16, #tpu.memory_space<vmem>>, vector<1x128x128xbf16>
      %169 = vector.shape_cast %168 : vector<1x128x128xbf16> to vector<128x128xbf16>
      %cst_167 = arith.constant dense<0.000000e+00> : vector<8x128xf32>
      %170 = tpu.matmul %167, %169, %cst_167 {dimension_numbers = #tpu.dot_dimension_numbers<[1], [0], [0], [1], [0, 0, 1, 1], [], []>} : vector<8x128xbf16>, vector<128x128xbf16>, vector<8x128xf32> -> vector<8x128xf32>
      %171 = arith.addf %162, %170 : vector<8x128xf32>
      %c0_168 = arith.constant 0 : index
      %172 = arith.index_cast %164 : i32 to index
      %c1_169 = arith.constant 1 : index
      %c0_170 = arith.constant 0 : index
      %c0_171 = arith.constant 0 : index
      %173 = vector.load %arg1[%c0_168, %172, %c1_169, %c0_170, %c0_171] : memref<1x21x2x11x128xbf16, #tpu.memory_space<vmem>>, vector<1x1x1x8x128xbf16>
      %174 = vector.shape_cast %173 : vector<1x1x1x8x128xbf16> to vector<8x128xbf16>
      %c22 = arith.constant 22 : index
      %c0_172 = arith.constant 0 : index
      %c0_173 = arith.constant 0 : index
      %175 = vector.load %arg2[%c22, %c0_172, %c0_173] : memref<49x128x128xbf16, #tpu.memory_space<vmem>>, vector<1x128x128xbf16>
      %176 = vector.shape_cast %175 : vector<1x128x128xbf16> to vector<128x128xbf16>
      %cst_174 = arith.constant dense<0.000000e+00> : vector<8x128xf32>
      %177 = tpu.matmul %174, %176, %cst_174 {dimension_numbers = #tpu.dot_dimension_numbers<[1], [0], [0], [1], [0, 0, 1, 1], [], []>} : vector<8x128xbf16>, vector<128x128xbf16>, vector<8x128xf32> -> vector<8x128xf32>
      %178 = arith.addf %171, %177 : vector<8x128xf32>
      %c0_175 = arith.constant 0 : index
      %179 = arith.index_cast %164 : i32 to index
      %c0_176 = arith.constant 0 : index
      %c1_177 = arith.constant 1 : index
      %c0_178 = arith.constant 0 : index
      %180 = vector.load %arg1[%c0_175, %179, %c0_176, %c1_177, %c0_178] : memref<1x21x2x11x128xbf16, #tpu.memory_space<vmem>>, vector<1x1x1x8x128xbf16>
      %181 = vector.shape_cast %180 : vector<1x1x1x8x128xbf16> to vector<8x128xbf16>
      %c23 = arith.constant 23 : index
      %c0_179 = arith.constant 0 : index
      %c0_180 = arith.constant 0 : index
      %182 = vector.load %arg2[%c23, %c0_179, %c0_180] : memref<49x128x128xbf16, #tpu.memory_space<vmem>>, vector<1x128x128xbf16>
      %183 = vector.shape_cast %182 : vector<1x128x128xbf16> to vector<128x128xbf16>
      %cst_181 = arith.constant dense<0.000000e+00> : vector<8x128xf32>
      %184 = tpu.matmul %181, %183, %cst_181 {dimension_numbers = #tpu.dot_dimension_numbers<[1], [0], [0], [1], [0, 0, 1, 1], [], []>} : vector<8x128xbf16>, vector<128x128xbf16>, vector<8x128xf32> -> vector<8x128xf32>
      %185 = arith.addf %178, %184 : vector<8x128xf32>
      %c0_182 = arith.constant 0 : index
      %186 = arith.index_cast %164 : i32 to index
      %c1_183 = arith.constant 1 : index
      %c1_184 = arith.constant 1 : index
      %c0_185 = arith.constant 0 : index
      %187 = vector.load %arg1[%c0_182, %186, %c1_183, %c1_184, %c0_185] : memref<1x21x2x11x128xbf16, #tpu.memory_space<vmem>>, vector<1x1x1x8x128xbf16>
      %188 = vector.shape_cast %187 : vector<1x1x1x8x128xbf16> to vector<8x128xbf16>
      %c24 = arith.constant 24 : index
      %c0_186 = arith.constant 0 : index
      %c0_187 = arith.constant 0 : index
      %189 = vector.load %arg2[%c24, %c0_186, %c0_187] : memref<49x128x128xbf16, #tpu.memory_space<vmem>>, vector<1x128x128xbf16>
      %190 = vector.shape_cast %189 : vector<1x128x128xbf16> to vector<128x128xbf16>
      %cst_188 = arith.constant dense<0.000000e+00> : vector<8x128xf32>
      %191 = tpu.matmul %188, %190, %cst_188 {dimension_numbers = #tpu.dot_dimension_numbers<[1], [0], [0], [1], [0, 0, 1, 1], [], []>} : vector<8x128xbf16>, vector<128x128xbf16>, vector<8x128xf32> -> vector<8x128xf32>
      %192 = arith.addf %185, %191 : vector<8x128xf32>
      %c0_189 = arith.constant 0 : index
      %193 = arith.index_cast %164 : i32 to index
      %c0_190 = arith.constant 0 : index
      %c2_191 = arith.constant 2 : index
      %c0_192 = arith.constant 0 : index
      %194 = vector.load %arg1[%c0_189, %193, %c0_190, %c2_191, %c0_192] : memref<1x21x2x11x128xbf16, #tpu.memory_space<vmem>>, vector<1x1x1x8x128xbf16>
      %195 = vector.shape_cast %194 : vector<1x1x1x8x128xbf16> to vector<8x128xbf16>
      %c25 = arith.constant 25 : index
      %c0_193 = arith.constant 0 : index
      %c0_194 = arith.constant 0 : index
      %196 = vector.load %arg2[%c25, %c0_193, %c0_194] : memref<49x128x128xbf16, #tpu.memory_space<vmem>>, vector<1x128x128xbf16>
      %197 = vector.shape_cast %196 : vector<1x128x128xbf16> to vector<128x128xbf16>
      %cst_195 = arith.constant dense<0.000000e+00> : vector<8x128xf32>
      %198 = tpu.matmul %195, %197, %cst_195 {dimension_numbers = #tpu.dot_dimension_numbers<[1], [0], [0], [1], [0, 0, 1, 1], [], []>} : vector<8x128xbf16>, vector<128x128xbf16>, vector<8x128xf32> -> vector<8x128xf32>
      %199 = arith.addf %192, %198 : vector<8x128xf32>
      %c0_196 = arith.constant 0 : index
      %200 = arith.index_cast %164 : i32 to index
      %c1_197 = arith.constant 1 : index
      %c2_198 = arith.constant 2 : index
      %c0_199 = arith.constant 0 : index
      %201 = vector.load %arg1[%c0_196, %200, %c1_197, %c2_198, %c0_199] : memref<1x21x2x11x128xbf16, #tpu.memory_space<vmem>>, vector<1x1x1x8x128xbf16>
      %202 = vector.shape_cast %201 : vector<1x1x1x8x128xbf16> to vector<8x128xbf16>
      %c26 = arith.constant 26 : index
      %c0_200 = arith.constant 0 : index
      %c0_201 = arith.constant 0 : index
      %203 = vector.load %arg2[%c26, %c0_200, %c0_201] : memref<49x128x128xbf16, #tpu.memory_space<vmem>>, vector<1x128x128xbf16>
      %204 = vector.shape_cast %203 : vector<1x128x128xbf16> to vector<128x128xbf16>
      %cst_202 = arith.constant dense<0.000000e+00> : vector<8x128xf32>
      %205 = tpu.matmul %202, %204, %cst_202 {dimension_numbers = #tpu.dot_dimension_numbers<[1], [0], [0], [1], [0, 0, 1, 1], [], []>} : vector<8x128xbf16>, vector<128x128xbf16>, vector<8x128xf32> -> vector<8x128xf32>
      %206 = arith.addf %199, %205 : vector<8x128xf32>
      %c0_203 = arith.constant 0 : index
      %207 = arith.index_cast %164 : i32 to index
      %c0_204 = arith.constant 0 : index
      %c3_205 = arith.constant 3 : index
      %c0_206 = arith.constant 0 : index
      %208 = vector.load %arg1[%c0_203, %207, %c0_204, %c3_205, %c0_206] : memref<1x21x2x11x128xbf16, #tpu.memory_space<vmem>>, vector<1x1x1x8x128xbf16>
      %209 = vector.shape_cast %208 : vector<1x1x1x8x128xbf16> to vector<8x128xbf16>
      %c27 = arith.constant 27 : index
      %c0_207 = arith.constant 0 : index
      %c0_208 = arith.constant 0 : index
      %210 = vector.load %arg2[%c27, %c0_207, %c0_208] : memref<49x128x128xbf16, #tpu.memory_space<vmem>>, vector<1x128x128xbf16>
      %211 = vector.shape_cast %210 : vector<1x128x128xbf16> to vector<128x128xbf16>
      %cst_209 = arith.constant dense<0.000000e+00> : vector<8x128xf32>
      %212 = tpu.matmul %209, %211, %cst_209 {dimension_numbers = #tpu.dot_dimension_numbers<[1], [0], [0], [1], [0, 0, 1, 1], [], []>} : vector<8x128xbf16>, vector<128x128xbf16>, vector<8x128xf32> -> vector<8x128xf32>
      %213 = arith.addf %206, %212 : vector<8x128xf32>
      %c2_i32_210 = arith.constant 2 : i32
      %214 = arith.muli %c2_i32_210, %arg5 : i32
      %c4_i32 = arith.constant 4 : i32
      %215 = arith.addi %214, %c4_i32 : i32
      %c0_211 = arith.constant 0 : index
      %216 = arith.index_cast %215 : i32 to index
      %c0_212 = arith.constant 0 : index
      %c0_213 = arith.constant 0 : index
      %c0_214 = arith.constant 0 : index
      %217 = vector.load %arg1[%c0_211, %216, %c0_212, %c0_213, %c0_214] : memref<1x21x2x11x128xbf16, #tpu.memory_space<vmem>>, vector<1x1x1x8x128xbf16>
      %218 = vector.shape_cast %217 : vector<1x1x1x8x128xbf16> to vector<8x128xbf16>
      %c28 = arith.constant 28 : index
      %c0_215 = arith.constant 0 : index
      %c0_216 = arith.constant 0 : index
      %219 = vector.load %arg2[%c28, %c0_215, %c0_216] : memref<49x128x128xbf16, #tpu.memory_space<vmem>>, vector<1x128x128xbf16>
      %220 = vector.shape_cast %219 : vector<1x128x128xbf16> to vector<128x128xbf16>
      %cst_217 = arith.constant dense<0.000000e+00> : vector<8x128xf32>
      %221 = tpu.matmul %218, %220, %cst_217 {dimension_numbers = #tpu.dot_dimension_numbers<[1], [0], [0], [1], [0, 0, 1, 1], [], []>} : vector<8x128xbf16>, vector<128x128xbf16>, vector<8x128xf32> -> vector<8x128xf32>
      %222 = arith.addf %213, %221 : vector<8x128xf32>
      %c0_218 = arith.constant 0 : index
      %223 = arith.index_cast %215 : i32 to index
      %c1_219 = arith.constant 1 : index
      %c0_220 = arith.constant 0 : index
      %c0_221 = arith.constant 0 : index
      %224 = vector.load %arg1[%c0_218, %223, %c1_219, %c0_220, %c0_221] : memref<1x21x2x11x128xbf16, #tpu.memory_space<vmem>>, vector<1x1x1x8x128xbf16>
      %225 = vector.shape_cast %224 : vector<1x1x1x8x128xbf16> to vector<8x128xbf16>
      %c29 = arith.constant 29 : index
      %c0_222 = arith.constant 0 : index
      %c0_223 = arith.constant 0 : index
      %226 = vector.load %arg2[%c29, %c0_222, %c0_223] : memref<49x128x128xbf16, #tpu.memory_space<vmem>>, vector<1x128x128xbf16>
      %227 = vector.shape_cast %226 : vector<1x128x128xbf16> to vector<128x128xbf16>
      %cst_224 = arith.constant dense<0.000000e+00> : vector<8x128xf32>
      %228 = tpu.matmul %225, %227, %cst_224 {dimension_numbers = #tpu.dot_dimension_numbers<[1], [0], [0], [1], [0, 0, 1, 1], [], []>} : vector<8x128xbf16>, vector<128x128xbf16>, vector<8x128xf32> -> vector<8x128xf32>
      %229 = arith.addf %222, %228 : vector<8x128xf32>
      %c0_225 = arith.constant 0 : index
      %230 = arith.index_cast %215 : i32 to index
      %c0_226 = arith.constant 0 : index
      %c1_227 = arith.constant 1 : index
      %c0_228 = arith.constant 0 : index
      %231 = vector.load %arg1[%c0_225, %230, %c0_226, %c1_227, %c0_228] : memref<1x21x2x11x128xbf16, #tpu.memory_space<vmem>>, vector<1x1x1x8x128xbf16>
      %232 = vector.shape_cast %231 : vector<1x1x1x8x128xbf16> to vector<8x128xbf16>
      %c30 = arith.constant 30 : index
      %c0_229 = arith.constant 0 : index
      %c0_230 = arith.constant 0 : index
      %233 = vector.load %arg2[%c30, %c0_229, %c0_230] : memref<49x128x128xbf16, #tpu.memory_space<vmem>>, vector<1x128x128xbf16>
      %234 = vector.shape_cast %233 : vector<1x128x128xbf16> to vector<128x128xbf16>
      %cst_231 = arith.constant dense<0.000000e+00> : vector<8x128xf32>
      %235 = tpu.matmul %232, %234, %cst_231 {dimension_numbers = #tpu.dot_dimension_numbers<[1], [0], [0], [1], [0, 0, 1, 1], [], []>} : vector<8x128xbf16>, vector<128x128xbf16>, vector<8x128xf32> -> vector<8x128xf32>
      %236 = arith.addf %229, %235 : vector<8x128xf32>
      %c0_232 = arith.constant 0 : index
      %237 = arith.index_cast %215 : i32 to index
      %c1_233 = arith.constant 1 : index
      %c1_234 = arith.constant 1 : index
      %c0_235 = arith.constant 0 : index
      %238 = vector.load %arg1[%c0_232, %237, %c1_233, %c1_234, %c0_235] : memref<1x21x2x11x128xbf16, #tpu.memory_space<vmem>>, vector<1x1x1x8x128xbf16>
      %239 = vector.shape_cast %238 : vector<1x1x1x8x128xbf16> to vector<8x128xbf16>
      %c31 = arith.constant 31 : index
      %c0_236 = arith.constant 0 : index
      %c0_237 = arith.constant 0 : index
      %240 = vector.load %arg2[%c31, %c0_236, %c0_237] : memref<49x128x128xbf16, #tpu.memory_space<vmem>>, vector<1x128x128xbf16>
      %241 = vector.shape_cast %240 : vector<1x128x128xbf16> to vector<128x128xbf16>
      %cst_238 = arith.constant dense<0.000000e+00> : vector<8x128xf32>
      %242 = tpu.matmul %239, %241, %cst_238 {dimension_numbers = #tpu.dot_dimension_numbers<[1], [0], [0], [1], [0, 0, 1, 1], [], []>} : vector<8x128xbf16>, vector<128x128xbf16>, vector<8x128xf32> -> vector<8x128xf32>
      %243 = arith.addf %236, %242 : vector<8x128xf32>
      %c0_239 = arith.constant 0 : index
      %244 = arith.index_cast %215 : i32 to index
      %c0_240 = arith.constant 0 : index
      %c2_241 = arith.constant 2 : index
      %c0_242 = arith.constant 0 : index
      %245 = vector.load %arg1[%c0_239, %244, %c0_240, %c2_241, %c0_242] : memref<1x21x2x11x128xbf16, #tpu.memory_space<vmem>>, vector<1x1x1x8x128xbf16>
      %246 = vector.shape_cast %245 : vector<1x1x1x8x128xbf16> to vector<8x128xbf16>
      %c32 = arith.constant 32 : index
      %c0_243 = arith.constant 0 : index
      %c0_244 = arith.constant 0 : index
      %247 = vector.load %arg2[%c32, %c0_243, %c0_244] : memref<49x128x128xbf16, #tpu.memory_space<vmem>>, vector<1x128x128xbf16>
      %248 = vector.shape_cast %247 : vector<1x128x128xbf16> to vector<128x128xbf16>
      %cst_245 = arith.constant dense<0.000000e+00> : vector<8x128xf32>
      %249 = tpu.matmul %246, %248, %cst_245 {dimension_numbers = #tpu.dot_dimension_numbers<[1], [0], [0], [1], [0, 0, 1, 1], [], []>} : vector<8x128xbf16>, vector<128x128xbf16>, vector<8x128xf32> -> vector<8x128xf32>
      %250 = arith.addf %243, %249 : vector<8x128xf32>
      %c0_246 = arith.constant 0 : index
      %251 = arith.index_cast %215 : i32 to index
      %c1_247 = arith.constant 1 : index
      %c2_248 = arith.constant 2 : index
      %c0_249 = arith.constant 0 : index
      %252 = vector.load %arg1[%c0_246, %251, %c1_247, %c2_248, %c0_249] : memref<1x21x2x11x128xbf16, #tpu.memory_space<vmem>>, vector<1x1x1x8x128xbf16>
      %253 = vector.shape_cast %252 : vector<1x1x1x8x128xbf16> to vector<8x128xbf16>
      %c33 = arith.constant 33 : index
      %c0_250 = arith.constant 0 : index
      %c0_251 = arith.constant 0 : index
      %254 = vector.load %arg2[%c33, %c0_250, %c0_251] : memref<49x128x128xbf16, #tpu.memory_space<vmem>>, vector<1x128x128xbf16>
      %255 = vector.shape_cast %254 : vector<1x128x128xbf16> to vector<128x128xbf16>
      %cst_252 = arith.constant dense<0.000000e+00> : vector<8x128xf32>
      %256 = tpu.matmul %253, %255, %cst_252 {dimension_numbers = #tpu.dot_dimension_numbers<[1], [0], [0], [1], [0, 0, 1, 1], [], []>} : vector<8x128xbf16>, vector<128x128xbf16>, vector<8x128xf32> -> vector<8x128xf32>
      %257 = arith.addf %250, %256 : vector<8x128xf32>
      %c0_253 = arith.constant 0 : index
      %258 = arith.index_cast %215 : i32 to index
      %c0_254 = arith.constant 0 : index
      %c3_255 = arith.constant 3 : index
      %c0_256 = arith.constant 0 : index
      %259 = vector.load %arg1[%c0_253, %258, %c0_254, %c3_255, %c0_256] : memref<1x21x2x11x128xbf16, #tpu.memory_space<vmem>>, vector<1x1x1x8x128xbf16>
      %260 = vector.shape_cast %259 : vector<1x1x1x8x128xbf16> to vector<8x128xbf16>
      %c34 = arith.constant 34 : index
      %c0_257 = arith.constant 0 : index
      %c0_258 = arith.constant 0 : index
      %261 = vector.load %arg2[%c34, %c0_257, %c0_258] : memref<49x128x128xbf16, #tpu.memory_space<vmem>>, vector<1x128x128xbf16>
      %262 = vector.shape_cast %261 : vector<1x128x128xbf16> to vector<128x128xbf16>
      %cst_259 = arith.constant dense<0.000000e+00> : vector<8x128xf32>
      %263 = tpu.matmul %260, %262, %cst_259 {dimension_numbers = #tpu.dot_dimension_numbers<[1], [0], [0], [1], [0, 0, 1, 1], [], []>} : vector<8x128xbf16>, vector<128x128xbf16>, vector<8x128xf32> -> vector<8x128xf32>
      %264 = arith.addf %257, %263 : vector<8x128xf32>
      %c2_i32_260 = arith.constant 2 : i32
      %265 = arith.muli %c2_i32_260, %arg5 : i32
      %c5_i32 = arith.constant 5 : i32
      %266 = arith.addi %265, %c5_i32 : i32
      %c0_261 = arith.constant 0 : index
      %267 = arith.index_cast %266 : i32 to index
      %c0_262 = arith.constant 0 : index
      %c0_263 = arith.constant 0 : index
      %c0_264 = arith.constant 0 : index
      %268 = vector.load %arg1[%c0_261, %267, %c0_262, %c0_263, %c0_264] : memref<1x21x2x11x128xbf16, #tpu.memory_space<vmem>>, vector<1x1x1x8x128xbf16>
      %269 = vector.shape_cast %268 : vector<1x1x1x8x128xbf16> to vector<8x128xbf16>
      %c35 = arith.constant 35 : index
      %c0_265 = arith.constant 0 : index
      %c0_266 = arith.constant 0 : index
      %270 = vector.load %arg2[%c35, %c0_265, %c0_266] : memref<49x128x128xbf16, #tpu.memory_space<vmem>>, vector<1x128x128xbf16>
      %271 = vector.shape_cast %270 : vector<1x128x128xbf16> to vector<128x128xbf16>
      %cst_267 = arith.constant dense<0.000000e+00> : vector<8x128xf32>
      %272 = tpu.matmul %269, %271, %cst_267 {dimension_numbers = #tpu.dot_dimension_numbers<[1], [0], [0], [1], [0, 0, 1, 1], [], []>} : vector<8x128xbf16>, vector<128x128xbf16>, vector<8x128xf32> -> vector<8x128xf32>
      %273 = arith.addf %264, %272 : vector<8x128xf32>
      %c0_268 = arith.constant 0 : index
      %274 = arith.index_cast %266 : i32 to index
      %c1_269 = arith.constant 1 : index
      %c0_270 = arith.constant 0 : index
      %c0_271 = arith.constant 0 : index
      %275 = vector.load %arg1[%c0_268, %274, %c1_269, %c0_270, %c0_271] : memref<1x21x2x11x128xbf16, #tpu.memory_space<vmem>>, vector<1x1x1x8x128xbf16>
      %276 = vector.shape_cast %275 : vector<1x1x1x8x128xbf16> to vector<8x128xbf16>
      %c36 = arith.constant 36 : index
      %c0_272 = arith.constant 0 : index
      %c0_273 = arith.constant 0 : index
      %277 = vector.load %arg2[%c36, %c0_272, %c0_273] : memref<49x128x128xbf16, #tpu.memory_space<vmem>>, vector<1x128x128xbf16>
      %278 = vector.shape_cast %277 : vector<1x128x128xbf16> to vector<128x128xbf16>
      %cst_274 = arith.constant dense<0.000000e+00> : vector<8x128xf32>
      %279 = tpu.matmul %276, %278, %cst_274 {dimension_numbers = #tpu.dot_dimension_numbers<[1], [0], [0], [1], [0, 0, 1, 1], [], []>} : vector<8x128xbf16>, vector<128x128xbf16>, vector<8x128xf32> -> vector<8x128xf32>
      %280 = arith.addf %273, %279 : vector<8x128xf32>
      %c0_275 = arith.constant 0 : index
      %281 = arith.index_cast %266 : i32 to index
      %c0_276 = arith.constant 0 : index
      %c1_277 = arith.constant 1 : index
      %c0_278 = arith.constant 0 : index
      %282 = vector.load %arg1[%c0_275, %281, %c0_276, %c1_277, %c0_278] : memref<1x21x2x11x128xbf16, #tpu.memory_space<vmem>>, vector<1x1x1x8x128xbf16>
      %283 = vector.shape_cast %282 : vector<1x1x1x8x128xbf16> to vector<8x128xbf16>
      %c37 = arith.constant 37 : index
      %c0_279 = arith.constant 0 : index
      %c0_280 = arith.constant 0 : index
      %284 = vector.load %arg2[%c37, %c0_279, %c0_280] : memref<49x128x128xbf16, #tpu.memory_space<vmem>>, vector<1x128x128xbf16>
      %285 = vector.shape_cast %284 : vector<1x128x128xbf16> to vector<128x128xbf16>
      %cst_281 = arith.constant dense<0.000000e+00> : vector<8x128xf32>
      %286 = tpu.matmul %283, %285, %cst_281 {dimension_numbers = #tpu.dot_dimension_numbers<[1], [0], [0], [1], [0, 0, 1, 1], [], []>} : vector<8x128xbf16>, vector<128x128xbf16>, vector<8x128xf32> -> vector<8x128xf32>
      %287 = arith.addf %280, %286 : vector<8x128xf32>
      %c0_282 = arith.constant 0 : index
      %288 = arith.index_cast %266 : i32 to index
      %c1_283 = arith.constant 1 : index
      %c1_284 = arith.constant 1 : index
      %c0_285 = arith.constant 0 : index
      %289 = vector.load %arg1[%c0_282, %288, %c1_283, %c1_284, %c0_285] : memref<1x21x2x11x128xbf16, #tpu.memory_space<vmem>>, vector<1x1x1x8x128xbf16>
      %290 = vector.shape_cast %289 : vector<1x1x1x8x128xbf16> to vector<8x128xbf16>
      %c38 = arith.constant 38 : index
      %c0_286 = arith.constant 0 : index
      %c0_287 = arith.constant 0 : index
      %291 = vector.load %arg2[%c38, %c0_286, %c0_287] : memref<49x128x128xbf16, #tpu.memory_space<vmem>>, vector<1x128x128xbf16>
      %292 = vector.shape_cast %291 : vector<1x128x128xbf16> to vector<128x128xbf16>
      %cst_288 = arith.constant dense<0.000000e+00> : vector<8x128xf32>
      %293 = tpu.matmul %290, %292, %cst_288 {dimension_numbers = #tpu.dot_dimension_numbers<[1], [0], [0], [1], [0, 0, 1, 1], [], []>} : vector<8x128xbf16>, vector<128x128xbf16>, vector<8x128xf32> -> vector<8x128xf32>
      %294 = arith.addf %287, %293 : vector<8x128xf32>
      %c0_289 = arith.constant 0 : index
      %295 = arith.index_cast %266 : i32 to index
      %c0_290 = arith.constant 0 : index
      %c2_291 = arith.constant 2 : index
      %c0_292 = arith.constant 0 : index
      %296 = vector.load %arg1[%c0_289, %295, %c0_290, %c2_291, %c0_292] : memref<1x21x2x11x128xbf16, #tpu.memory_space<vmem>>, vector<1x1x1x8x128xbf16>
      %297 = vector.shape_cast %296 : vector<1x1x1x8x128xbf16> to vector<8x128xbf16>
      %c39 = arith.constant 39 : index
      %c0_293 = arith.constant 0 : index
      %c0_294 = arith.constant 0 : index
      %298 = vector.load %arg2[%c39, %c0_293, %c0_294] : memref<49x128x128xbf16, #tpu.memory_space<vmem>>, vector<1x128x128xbf16>
      %299 = vector.shape_cast %298 : vector<1x128x128xbf16> to vector<128x128xbf16>
      %cst_295 = arith.constant dense<0.000000e+00> : vector<8x128xf32>
      %300 = tpu.matmul %297, %299, %cst_295 {dimension_numbers = #tpu.dot_dimension_numbers<[1], [0], [0], [1], [0, 0, 1, 1], [], []>} : vector<8x128xbf16>, vector<128x128xbf16>, vector<8x128xf32> -> vector<8x128xf32>
      %301 = arith.addf %294, %300 : vector<8x128xf32>
      %c0_296 = arith.constant 0 : index
      %302 = arith.index_cast %266 : i32 to index
      %c1_297 = arith.constant 1 : index
      %c2_298 = arith.constant 2 : index
      %c0_299 = arith.constant 0 : index
      %303 = vector.load %arg1[%c0_296, %302, %c1_297, %c2_298, %c0_299] : memref<1x21x2x11x128xbf16, #tpu.memory_space<vmem>>, vector<1x1x1x8x128xbf16>
      %304 = vector.shape_cast %303 : vector<1x1x1x8x128xbf16> to vector<8x128xbf16>
      %c40 = arith.constant 40 : index
      %c0_300 = arith.constant 0 : index
      %c0_301 = arith.constant 0 : index
      %305 = vector.load %arg2[%c40, %c0_300, %c0_301] : memref<49x128x128xbf16, #tpu.memory_space<vmem>>, vector<1x128x128xbf16>
      %306 = vector.shape_cast %305 : vector<1x128x128xbf16> to vector<128x128xbf16>
      %cst_302 = arith.constant dense<0.000000e+00> : vector<8x128xf32>
      %307 = tpu.matmul %304, %306, %cst_302 {dimension_numbers = #tpu.dot_dimension_numbers<[1], [0], [0], [1], [0, 0, 1, 1], [], []>} : vector<8x128xbf16>, vector<128x128xbf16>, vector<8x128xf32> -> vector<8x128xf32>
      %308 = arith.addf %301, %307 : vector<8x128xf32>
      %c0_303 = arith.constant 0 : index
      %309 = arith.index_cast %266 : i32 to index
      %c0_304 = arith.constant 0 : index
      %c3_305 = arith.constant 3 : index
      %c0_306 = arith.constant 0 : index
      %310 = vector.load %arg1[%c0_303, %309, %c0_304, %c3_305, %c0_306] : memref<1x21x2x11x128xbf16, #tpu.memory_space<vmem>>, vector<1x1x1x8x128xbf16>
      %311 = vector.shape_cast %310 : vector<1x1x1x8x128xbf16> to vector<8x128xbf16>
      %c41 = arith.constant 41 : index
      %c0_307 = arith.constant 0 : index
      %c0_308 = arith.constant 0 : index
      %312 = vector.load %arg2[%c41, %c0_307, %c0_308] : memref<49x128x128xbf16, #tpu.memory_space<vmem>>, vector<1x128x128xbf16>
      %313 = vector.shape_cast %312 : vector<1x128x128xbf16> to vector<128x128xbf16>
      %cst_309 = arith.constant dense<0.000000e+00> : vector<8x128xf32>
      %314 = tpu.matmul %311, %313, %cst_309 {dimension_numbers = #tpu.dot_dimension_numbers<[1], [0], [0], [1], [0, 0, 1, 1], [], []>} : vector<8x128xbf16>, vector<128x128xbf16>, vector<8x128xf32> -> vector<8x128xf32>
      %315 = arith.addf %308, %314 : vector<8x128xf32>
      %c2_i32_310 = arith.constant 2 : i32
      %316 = arith.muli %c2_i32_310, %arg5 : i32
      %c6_i32 = arith.constant 6 : i32
      %317 = arith.addi %316, %c6_i32 : i32
      %c0_311 = arith.constant 0 : index
      %318 = arith.index_cast %317 : i32 to index
      %c0_312 = arith.constant 0 : index
      %c0_313 = arith.constant 0 : index
      %c0_314 = arith.constant 0 : index
      %319 = vector.load %arg1[%c0_311, %318, %c0_312, %c0_313, %c0_314] : memref<1x21x2x11x128xbf16, #tpu.memory_space<vmem>>, vector<1x1x1x8x128xbf16>
      %320 = vector.shape_cast %319 : vector<1x1x1x8x128xbf16> to vector<8x128xbf16>
      %c42 = arith.constant 42 : index
      %c0_315 = arith.constant 0 : index
      %c0_316 = arith.constant 0 : index
      %321 = vector.load %arg2[%c42, %c0_315, %c0_316] : memref<49x128x128xbf16, #tpu.memory_space<vmem>>, vector<1x128x128xbf16>
      %322 = vector.shape_cast %321 : vector<1x128x128xbf16> to vector<128x128xbf16>
      %cst_317 = arith.constant dense<0.000000e+00> : vector<8x128xf32>
      %323 = tpu.matmul %320, %322, %cst_317 {dimension_numbers = #tpu.dot_dimension_numbers<[1], [0], [0], [1], [0, 0, 1, 1], [], []>} : vector<8x128xbf16>, vector<128x128xbf16>, vector<8x128xf32> -> vector<8x128xf32>
      %324 = arith.addf %315, %323 : vector<8x128xf32>
      %c0_318 = arith.constant 0 : index
      %325 = arith.index_cast %317 : i32 to index
      %c1_319 = arith.constant 1 : index
      %c0_320 = arith.constant 0 : index
      %c0_321 = arith.constant 0 : index
      %326 = vector.load %arg1[%c0_318, %325, %c1_319, %c0_320, %c0_321] : memref<1x21x2x11x128xbf16, #tpu.memory_space<vmem>>, vector<1x1x1x8x128xbf16>
      %327 = vector.shape_cast %326 : vector<1x1x1x8x128xbf16> to vector<8x128xbf16>
      %c43 = arith.constant 43 : index
      %c0_322 = arith.constant 0 : index
      %c0_323 = arith.constant 0 : index
      %328 = vector.load %arg2[%c43, %c0_322, %c0_323] : memref<49x128x128xbf16, #tpu.memory_space<vmem>>, vector<1x128x128xbf16>
      %329 = vector.shape_cast %328 : vector<1x128x128xbf16> to vector<128x128xbf16>
      %cst_324 = arith.constant dense<0.000000e+00> : vector<8x128xf32>
      %330 = tpu.matmul %327, %329, %cst_324 {dimension_numbers = #tpu.dot_dimension_numbers<[1], [0], [0], [1], [0, 0, 1, 1], [], []>} : vector<8x128xbf16>, vector<128x128xbf16>, vector<8x128xf32> -> vector<8x128xf32>
      %331 = arith.addf %324, %330 : vector<8x128xf32>
      %c0_325 = arith.constant 0 : index
      %332 = arith.index_cast %317 : i32 to index
      %c0_326 = arith.constant 0 : index
      %c1_327 = arith.constant 1 : index
      %c0_328 = arith.constant 0 : index
      %333 = vector.load %arg1[%c0_325, %332, %c0_326, %c1_327, %c0_328] : memref<1x21x2x11x128xbf16, #tpu.memory_space<vmem>>, vector<1x1x1x8x128xbf16>
      %334 = vector.shape_cast %333 : vector<1x1x1x8x128xbf16> to vector<8x128xbf16>
      %c44 = arith.constant 44 : index
      %c0_329 = arith.constant 0 : index
      %c0_330 = arith.constant 0 : index
      %335 = vector.load %arg2[%c44, %c0_329, %c0_330] : memref<49x128x128xbf16, #tpu.memory_space<vmem>>, vector<1x128x128xbf16>
      %336 = vector.shape_cast %335 : vector<1x128x128xbf16> to vector<128x128xbf16>
      %cst_331 = arith.constant dense<0.000000e+00> : vector<8x128xf32>
      %337 = tpu.matmul %334, %336, %cst_331 {dimension_numbers = #tpu.dot_dimension_numbers<[1], [0], [0], [1], [0, 0, 1, 1], [], []>} : vector<8x128xbf16>, vector<128x128xbf16>, vector<8x128xf32> -> vector<8x128xf32>
      %338 = arith.addf %331, %337 : vector<8x128xf32>
      %c0_332 = arith.constant 0 : index
      %339 = arith.index_cast %317 : i32 to index
      %c1_333 = arith.constant 1 : index
      %c1_334 = arith.constant 1 : index
      %c0_335 = arith.constant 0 : index
      %340 = vector.load %arg1[%c0_332, %339, %c1_333, %c1_334, %c0_335] : memref<1x21x2x11x128xbf16, #tpu.memory_space<vmem>>, vector<1x1x1x8x128xbf16>
      %341 = vector.shape_cast %340 : vector<1x1x1x8x128xbf16> to vector<8x128xbf16>
      %c45 = arith.constant 45 : index
      %c0_336 = arith.constant 0 : index
      %c0_337 = arith.constant 0 : index
      %342 = vector.load %arg2[%c45, %c0_336, %c0_337] : memref<49x128x128xbf16, #tpu.memory_space<vmem>>, vector<1x128x128xbf16>
      %343 = vector.shape_cast %342 : vector<1x128x128xbf16> to vector<128x128xbf16>
      %cst_338 = arith.constant dense<0.000000e+00> : vector<8x128xf32>
      %344 = tpu.matmul %341, %343, %cst_338 {dimension_numbers = #tpu.dot_dimension_numbers<[1], [0], [0], [1], [0, 0, 1, 1], [], []>} : vector<8x128xbf16>, vector<128x128xbf16>, vector<8x128xf32> -> vector<8x128xf32>
      %345 = arith.addf %338, %344 : vector<8x128xf32>
      %c0_339 = arith.constant 0 : index
      %346 = arith.index_cast %317 : i32 to index
      %c0_340 = arith.constant 0 : index
      %c2_341 = arith.constant 2 : index
      %c0_342 = arith.constant 0 : index
      %347 = vector.load %arg1[%c0_339, %346, %c0_340, %c2_341, %c0_342] : memref<1x21x2x11x128xbf16, #tpu.memory_space<vmem>>, vector<1x1x1x8x128xbf16>
      %348 = vector.shape_cast %347 : vector<1x1x1x8x128xbf16> to vector<8x128xbf16>
      %c46 = arith.constant 46 : index
      %c0_343 = arith.constant 0 : index
      %c0_344 = arith.constant 0 : index
      %349 = vector.load %arg2[%c46, %c0_343, %c0_344] : memref<49x128x128xbf16, #tpu.memory_space<vmem>>, vector<1x128x128xbf16>
      %350 = vector.shape_cast %349 : vector<1x128x128xbf16> to vector<128x128xbf16>
      %cst_345 = arith.constant dense<0.000000e+00> : vector<8x128xf32>
      %351 = tpu.matmul %348, %350, %cst_345 {dimension_numbers = #tpu.dot_dimension_numbers<[1], [0], [0], [1], [0, 0, 1, 1], [], []>} : vector<8x128xbf16>, vector<128x128xbf16>, vector<8x128xf32> -> vector<8x128xf32>
      %352 = arith.addf %345, %351 : vector<8x128xf32>
      %c0_346 = arith.constant 0 : index
      %353 = arith.index_cast %317 : i32 to index
      %c1_347 = arith.constant 1 : index
      %c2_348 = arith.constant 2 : index
      %c0_349 = arith.constant 0 : index
      %354 = vector.load %arg1[%c0_346, %353, %c1_347, %c2_348, %c0_349] : memref<1x21x2x11x128xbf16, #tpu.memory_space<vmem>>, vector<1x1x1x8x128xbf16>
      %355 = vector.shape_cast %354 : vector<1x1x1x8x128xbf16> to vector<8x128xbf16>
      %c47 = arith.constant 47 : index
      %c0_350 = arith.constant 0 : index
      %c0_351 = arith.constant 0 : index
      %356 = vector.load %arg2[%c47, %c0_350, %c0_351] : memref<49x128x128xbf16, #tpu.memory_space<vmem>>, vector<1x128x128xbf16>
      %357 = vector.shape_cast %356 : vector<1x128x128xbf16> to vector<128x128xbf16>
      %cst_352 = arith.constant dense<0.000000e+00> : vector<8x128xf32>
      %358 = tpu.matmul %355, %357, %cst_352 {dimension_numbers = #tpu.dot_dimension_numbers<[1], [0], [0], [1], [0, 0, 1, 1], [], []>} : vector<8x128xbf16>, vector<128x128xbf16>, vector<8x128xf32> -> vector<8x128xf32>
      %359 = arith.addf %352, %358 : vector<8x128xf32>
      %c0_353 = arith.constant 0 : index
      %360 = arith.index_cast %317 : i32 to index
      %c0_354 = arith.constant 0 : index
      %c3_355 = arith.constant 3 : index
      %c0_356 = arith.constant 0 : index
      %361 = vector.load %arg1[%c0_353, %360, %c0_354, %c3_355, %c0_356] : memref<1x21x2x11x128xbf16, #tpu.memory_space<vmem>>, vector<1x1x1x8x128xbf16>
      %362 = vector.shape_cast %361 : vector<1x1x1x8x128xbf16> to vector<8x128xbf16>
      %c48 = arith.constant 48 : index
      %c0_357 = arith.constant 0 : index
      %c0_358 = arith.constant 0 : index
      %363 = vector.load %arg2[%c48, %c0_357, %c0_358] : memref<49x128x128xbf16, #tpu.memory_space<vmem>>, vector<1x128x128xbf16>
      %364 = vector.shape_cast %363 : vector<1x128x128xbf16> to vector<128x128xbf16>
      %cst_359 = arith.constant dense<0.000000e+00> : vector<8x128xf32>
      %365 = tpu.matmul %362, %364, %cst_359 {dimension_numbers = #tpu.dot_dimension_numbers<[1], [0], [0], [1], [0, 0, 1, 1], [], []>} : vector<8x128xbf16>, vector<128x128xbf16>, vector<8x128xf32> -> vector<8x128xf32>
      %366 = arith.addf %359, %365 : vector<8x128xf32>
      %367 = arith.truncf %366 : vector<8x128xf32> to vector<8x128xbf16>
      %c0_360 = arith.constant 0 : index
      %368 = arith.index_cast %arg5 : i32 to index
      %c0_361 = arith.constant 0 : index
      %c0_362 = arith.constant 0 : index
      %369 = vector.load %arg3[%c0_360, %368, %c0_361, %c0_362] : memref<1x8x8x128xbf16, #tpu.memory_space<vmem>>, vector<1x1x8x128xbf16>
      %370 = vector.shape_cast %369 : vector<1x1x8x128xbf16> to vector<8x128xbf16>
      %371 = vector.shape_cast %367 : vector<8x128xbf16> to vector<1x1x8x128xbf16>
      tpu.vector_store %arg3[%c0_360, %368, %c0_361, %c0_362], %371 {strides = array<i32>} : memref<1x8x8x128xbf16, #tpu.memory_space<vmem>>, vector<1x1x8x128xbf16>,
      %cst_363 = arith.constant dense<0.000000e+00> : vector<128xf32>
      %372 = vector.multi_reduction <add>, %366, %cst_363 [0] : vector<8x128xf32> to vector<128xf32>
      %373 = vector.shape_cast %372 : vector<128xf32> to vector<1x128xf32>
      %374 = arith.addf %arg6, %373 : vector<1x128xf32>
      %375 = arith.mulf %366, %366 : vector<8x128xf32>
      %cst_364 = arith.constant dense<0.000000e+00> : vector<128xf32>
      %376 = vector.multi_reduction <add>, %375, %cst_364 [0] : vector<8x128xf32> to vector<128xf32>
      %377 = vector.shape_cast %376 : vector<128xf32> to vector<1x128xf32>
      %378 = arith.addf %arg7, %377 : vector<1x128xf32>
      scf.yield %374, %378 : vector<1x128xf32>, vector<1x128xf32>
    }
    %c8_i32_0 = arith.constant 8 : i32
    %c0 = arith.constant 0 : index
    %c0_1 = arith.constant 0 : index
    %c0_2 = arith.constant 0 : index
    %3 = vector.load %arg4[%c0, %c0_1, %c0_2] : memref<1x2x128xf32, #tpu.memory_space<vmem>>, vector<1x1x128xf32>
    %4 = vector.shape_cast %3 : vector<1x1x128xf32> to vector<1x128xf32>
    %5 = vector.shape_cast %2#0 : vector<1x128xf32> to vector<1x1x128xf32>
    tpu.vector_store %arg4[%c0, %c0_1, %c0_2], %5 {strides = array<i32>} : memref<1x2x128xf32, #tpu.memory_space<vmem>>, vector<1x1x128xf32>,
    %c0_3 = arith.constant 0 : index
    %c1 = arith.constant 1 : index
    %c0_4 = arith.constant 0 : index
    %6 = vector.load %arg4[%c0_3, %c1, %c0_4] : memref<1x2x128xf32, #tpu.memory_space<vmem>>, vector<1x1x128xf32>
    %7 = vector.shape_cast %6 : vector<1x1x128xf32> to vector<1x128xf32>
    %8 = vector.shape_cast %2#1 : vector<1x128xf32> to vector<1x1x128xf32>
    tpu.vector_store %arg4[%c0_3, %c1, %c0_4], %8 {strides = array<i32>} : memref<1x2x128xf32, #tpu.memory_space<vmem>>, vector<1x1x128xf32>,
    return
  }
  func.func @transform_0(%arg0: i32) -> (i32, i32, i32, i32, i32) {
    %c0_i32 = arith.constant 0 : i32
    %c0_i32_0 = arith.constant 0 : i32
    %c0_i32_1 = arith.constant 0 : i32
    %c0_i32_2 = arith.constant 0 : i32
    %c0_i32_3 = arith.constant 0 : i32
    return %arg0, %c0_i32, %c0_i32_0, %c0_i32_1, %c0_i32_2 : i32, i32, i32, i32, i32
  }
  func.func @transform_1(%arg0: i32) -> (i32, i32, i32) {
    %c0_i32 = arith.constant 0 : i32
    %c0_i32_0 = arith.constant 0 : i32
    %c0_i32_1 = arith.constant 0 : i32
    %c0_i32_2 = arith.constant 0 : i32
    return %c0_i32, %c0_i32_0, %c0_i32_1 : i32, i32, i32
  }
  func.func @transform_2(%arg0: i32) -> (i32, i32, i32, i32) {
    %c0_i32 = arith.constant 0 : i32
    %c0_i32_0 = arith.constant 0 : i32
    %c0_i32_1 = arith.constant 0 : i32
    %c0_i32_2 = arith.constant 0 : i32
    return %arg0, %c0_i32, %c0_i32_0, %c0_i32_1 : i32, i32, i32, i32
  }
  func.func @transform_3(%arg0: i32) -> (i32, i32, i32) {
    %c0_i32 = arith.constant 0 : i32
    %c0_i32_0 = arith.constant 0 : i32
    %c0_i32_1 = arith.constant 0 : i32
    return %arg0, %c0_i32, %c0_i32_0 : i32, i32, i32
  }
}

module attributes {stable_mosaic.version = 11 : i64} {
  func.func @_bn_apply_kernel(%arg0: i32, %arg1: i32, %arg2: memref<8x128xf32, #tpu.memory_space<vmem>>, %arg3: memref<128x128xbf16, #tpu.memory_space<vmem>>, %arg4: memref<128x128xbf16, #tpu.memory_space<vmem>>) attributes {dimension_semantics = [#tpu.dimension_semantics<parallel>, #tpu.dimension_semantics<parallel>], iteration_bounds = array<i64: 1, 1>, scalar_prefetch = 0 : i64, scratch_operands = 0 : i64, tpu.core_type = #tpu.core_type<tc>, window_params = [{transform_indices = @transform_0, window_bounds = array<i64: 8, 128>}, {transform_indices = @transform_1, window_bounds = array<i64: 128, 128>}, {transform_indices = @transform_2, window_bounds = array<i64: 128, 128>}]} {
    %c0 = arith.constant 0 : index
    %c0_0 = arith.constant 0 : index
    %0 = vector.load %arg2[%c0, %c0_0] : memref<8x128xf32, #tpu.memory_space<vmem>>, vector<8x128xf32>
    %1 = vector.extract_strided_slice %0 {offsets = [0, 0], sizes = [1, 128], strides = [1, 1]} : vector<8x128xf32> to vector<1x128xf32>
    %cst = arith.constant 7.812500e-03 : f32
    %2 = vector.broadcast %cst : f32 to vector<1x128xf32>
    %3 = arith.mulf %1, %2 : vector<1x128xf32>
    %4 = vector.extract_strided_slice %0 {offsets = [1, 0], sizes = [1, 128], strides = [1, 1]} : vector<8x128xf32> to vector<1x128xf32>
    %cst_1 = arith.constant 7.812500e-03 : f32
    %5 = vector.broadcast %cst_1 : f32 to vector<1x128xf32>
    %6 = arith.mulf %4, %5 : vector<1x128xf32>
    %7 = arith.mulf %3, %3 : vector<1x128xf32>
    %8 = arith.subf %6, %7 : vector<1x128xf32>
    %cst_2 = arith.constant 0.000000e+00 : f32
    %9 = vector.broadcast %cst_2 : f32 to vector<1x128xf32>
    %10 = arith.maximumf %8, %9 : vector<1x128xf32>
    %cst_3 = arith.constant 9.99999974E-6 : f32
    %11 = vector.broadcast %cst_3 : f32 to vector<1x128xf32>
    %12 = arith.addf %10, %11 : vector<1x128xf32>
    %13 = math.rsqrt %12 : vector<1x128xf32>
    %14 = vector.extract_strided_slice %0 {offsets = [2, 0], sizes = [1, 128], strides = [1, 1]} : vector<8x128xf32> to vector<1x128xf32>
    %15 = arith.mulf %14, %13 : vector<1x128xf32>
    %16 = vector.extract_strided_slice %0 {offsets = [3, 0], sizes = [1, 128], strides = [1, 1]} : vector<8x128xf32> to vector<1x128xf32>
    %17 = arith.mulf %3, %15 : vector<1x128xf32>
    %18 = arith.subf %16, %17 : vector<1x128xf32>
    %c0_4 = arith.constant 0 : index
    %c0_5 = arith.constant 0 : index
    %19 = vector.load %arg3[%c0_4, %c0_5] : memref<128x128xbf16, #tpu.memory_space<vmem>>, vector<128x128xbf16>
    %20 = arith.extf %19 : vector<128x128xbf16> to vector<128x128xf32>
    %21 = vector.broadcast %15 : vector<1x128xf32> to vector<128x128xf32>
    %22 = arith.mulf %20, %21 : vector<128x128xf32>
    %23 = vector.broadcast %18 : vector<1x128xf32> to vector<128x128xf32>
    %24 = arith.addf %22, %23 : vector<128x128xf32>
    %25 = vector.extract_strided_slice %0 {offsets = [4, 0], sizes = [1, 128], strides = [1, 1]} : vector<8x128xf32> to vector<1x128xf32>
    %cst_6 = arith.constant 5.000000e-01 : f32
    %26 = vector.broadcast %cst_6 : f32 to vector<1x128xf32>
    %27 = arith.cmpf ogt, %25, %26 : vector<1x128xf32>
    %cst_7 = arith.constant 0.000000e+00 : f32
    %28 = vector.broadcast %cst_7 : f32 to vector<128x128xf32>
    %29 = arith.maximumf %24, %28 : vector<128x128xf32>
    %30 = vector.shape_cast %27 : vector<1x128xi1> to vector<1x128xi1>
    %31 = vector.broadcast %30 : vector<1x128xi1> to vector<128x128xi1>
    %32 = arith.select %31, %29, %24 : vector<128x128xi1>, vector<128x128xf32>
    %33 = arith.truncf %32 : vector<128x128xf32> to vector<128x128xbf16>
    %c0_8 = arith.constant 0 : index
    %c0_9 = arith.constant 0 : index
    %34 = vector.load %arg4[%c0_8, %c0_9] : memref<128x128xbf16, #tpu.memory_space<vmem>>, vector<128x128xbf16>
    tpu.vector_store %arg4[%c0_8, %c0_9], %33 {strides = array<i32>} : memref<128x128xbf16, #tpu.memory_space<vmem>>, vector<128x128xbf16>,
    return
  }
  func.func @transform_0(%arg0: i32, %arg1: i32) -> (i32, i32) {
    %c0_i32 = arith.constant 0 : i32
    %c0_i32_0 = arith.constant 0 : i32
    return %c0_i32, %arg0 : i32, i32
  }
  func.func @transform_1(%arg0: i32, %arg1: i32) -> (i32, i32) {
    %c0_i32 = arith.constant 0 : i32
    return %arg1, %arg0 : i32, i32
  }
  func.func @transform_2(%arg0: i32, %arg1: i32) -> (i32, i32) {
    %c0_i32 = arith.constant 0 : i32
    return %arg1, %arg0 : i32, i32
  }
}

module attributes {stable_mosaic.version = 11 : i64} {
  func.func @_maxpool_kernel(%arg0: i32, %arg1: memref<4x5x5x128xbf16, #tpu.memory_space<vmem>>, %arg2: memref<1x4x4x128xbf16, #tpu.memory_space<vmem>>) attributes {dimension_semantics = [#tpu.dimension_semantics<parallel>], iteration_bounds = array<i64: 2>, scalar_prefetch = 0 : i64, scratch_operands = 0 : i64, tpu.core_type = #tpu.core_type<tc>, window_params = [{transform_indices = @transform_0, window_bounds = array<i64: 4, 5, 5, 128>}, {transform_indices = @transform_1, window_bounds = array<i64: 1, 4, 4, 128>}]} {
    %c0 = arith.constant 0 : index
    %c0_0 = arith.constant 0 : index
    %c0_1 = arith.constant 0 : index
    %c0_2 = arith.constant 0 : index
    %0 = vector.load %arg1[%c0, %c0_0, %c0_1, %c0_2] : memref<4x5x5x128xbf16, #tpu.memory_space<vmem>>, vector<1x4x4x128xbf16>
    %1 = vector.shape_cast %0 : vector<1x4x4x128xbf16> to vector<4x4x128xbf16>
    %2 = arith.extf %1 : vector<4x4x128xbf16> to vector<4x4x128xf32>
    %c1 = arith.constant 1 : index
    %c0_3 = arith.constant 0 : index
    %c0_4 = arith.constant 0 : index
    %c0_5 = arith.constant 0 : index
    %3 = vector.load %arg1[%c1, %c0_3, %c0_4, %c0_5] : memref<4x5x5x128xbf16, #tpu.memory_space<vmem>>, vector<1x4x4x128xbf16>
    %4 = vector.shape_cast %3 : vector<1x4x4x128xbf16> to vector<4x4x128xbf16>
    %5 = arith.extf %4 : vector<4x4x128xbf16> to vector<4x4x128xf32>
    %6 = arith.maximumf %2, %5 : vector<4x4x128xf32>
    %c0_6 = arith.constant 0 : index
    %c0_7 = arith.constant 0 : index
    %c1_8 = arith.constant 1 : index
    %c0_9 = arith.constant 0 : index
    %7 = vector.load %arg1[%c0_6, %c0_7, %c1_8, %c0_9] : memref<4x5x5x128xbf16, #tpu.memory_space<vmem>>, vector<1x4x4x128xbf16>
    %8 = vector.shape_cast %7 : vector<1x4x4x128xbf16> to vector<4x4x128xbf16>
    %9 = arith.extf %8 : vector<4x4x128xbf16> to vector<4x4x128xf32>
    %10 = arith.maximumf %6, %9 : vector<4x4x128xf32>
    %c2 = arith.constant 2 : index
    %c0_10 = arith.constant 0 : index
    %c0_11 = arith.constant 0 : index
    %c0_12 = arith.constant 0 : index
    %11 = vector.load %arg1[%c2, %c0_10, %c0_11, %c0_12] : memref<4x5x5x128xbf16, #tpu.memory_space<vmem>>, vector<1x4x4x128xbf16>
    %12 = vector.shape_cast %11 : vector<1x4x4x128xbf16> to vector<4x4x128xbf16>
    %13 = arith.extf %12 : vector<4x4x128xbf16> to vector<4x4x128xf32>
    %14 = arith.maximumf %10, %13 : vector<4x4x128xf32>
    %c3 = arith.constant 3 : index
    %c0_13 = arith.constant 0 : index
    %c0_14 = arith.constant 0 : index
    %c0_15 = arith.constant 0 : index
    %15 = vector.load %arg1[%c3, %c0_13, %c0_14, %c0_15] : memref<4x5x5x128xbf16, #tpu.memory_space<vmem>>, vector<1x4x4x128xbf16>
    %16 = vector.shape_cast %15 : vector<1x4x4x128xbf16> to vector<4x4x128xbf16>
    %17 = arith.extf %16 : vector<4x4x128xbf16> to vector<4x4x128xf32>
    %18 = arith.maximumf %14, %17 : vector<4x4x128xf32>
    %c2_16 = arith.constant 2 : index
    %c0_17 = arith.constant 0 : index
    %c1_18 = arith.constant 1 : index
    %c0_19 = arith.constant 0 : index
    %19 = vector.load %arg1[%c2_16, %c0_17, %c1_18, %c0_19] : memref<4x5x5x128xbf16, #tpu.memory_space<vmem>>, vector<1x4x4x128xbf16>
    %20 = vector.shape_cast %19 : vector<1x4x4x128xbf16> to vector<4x4x128xbf16>
    %21 = arith.extf %20 : vector<4x4x128xbf16> to vector<4x4x128xf32>
    %22 = arith.maximumf %18, %21 : vector<4x4x128xf32>
    %c0_20 = arith.constant 0 : index
    %c1_21 = arith.constant 1 : index
    %c0_22 = arith.constant 0 : index
    %c0_23 = arith.constant 0 : index
    %23 = vector.load %arg1[%c0_20, %c1_21, %c0_22, %c0_23] : memref<4x5x5x128xbf16, #tpu.memory_space<vmem>>, vector<1x4x4x128xbf16>
    %24 = vector.shape_cast %23 : vector<1x4x4x128xbf16> to vector<4x4x128xbf16>
    %25 = arith.extf %24 : vector<4x4x128xbf16> to vector<4x4x128xf32>
    %26 = arith.maximumf %22, %25 : vector<4x4x128xf32>
    %c1_24 = arith.constant 1 : index
    %c1_25 = arith.constant 1 : index
    %c0_26 = arith.constant 0 : index
    %c0_27 = arith.constant 0 : index
    %27 = vector.load %arg1[%c1_24, %c1_25, %c0_26, %c0_27] : memref<4x5x5x128xbf16, #tpu.memory_space<vmem>>, vector<1x4x4x128xbf16>
    %28 = vector.shape_cast %27 : vector<1x4x4x128xbf16> to vector<4x4x128xbf16>
    %29 = arith.extf %28 : vector<4x4x128xbf16> to vector<4x4x128xf32>
    %30 = arith.maximumf %26, %29 : vector<4x4x128xf32>
    %c0_28 = arith.constant 0 : index
    %c1_29 = arith.constant 1 : index
    %c1_30 = arith.constant 1 : index
    %c0_31 = arith.constant 0 : index
    %31 = vector.load %arg1[%c0_28, %c1_29, %c1_30, %c0_31] : memref<4x5x5x128xbf16, #tpu.memory_space<vmem>>, vector<1x4x4x128xbf16>
    %32 = vector.shape_cast %31 : vector<1x4x4x128xbf16> to vector<4x4x128xbf16>
    %33 = arith.extf %32 : vector<4x4x128xbf16> to vector<4x4x128xf32>
    %34 = arith.maximumf %30, %33 : vector<4x4x128xf32>
    %35 = arith.truncf %34 : vector<4x4x128xf32> to vector<4x4x128xbf16>
    %c0_32 = arith.constant 0 : index
    %c0_33 = arith.constant 0 : index
    %c0_34 = arith.constant 0 : index
    %c0_35 = arith.constant 0 : index
    %36 = vector.load %arg2[%c0_32, %c0_33, %c0_34, %c0_35] : memref<1x4x4x128xbf16, #tpu.memory_space<vmem>>, vector<1x4x4x128xbf16>
    %37 = vector.shape_cast %36 : vector<1x4x4x128xbf16> to vector<4x4x128xbf16>
    %38 = vector.shape_cast %35 : vector<4x4x128xbf16> to vector<1x4x4x128xbf16>
    tpu.vector_store %arg2[%c0_32, %c0_33, %c0_34, %c0_35], %38 {strides = array<i32>} : memref<1x4x4x128xbf16, #tpu.memory_space<vmem>>, vector<1x4x4x128xbf16>,
    return
  }
  func.func @transform_0(%arg0: i32) -> (i32, i32, i32, i32) {
    %c0_i32 = arith.constant 0 : i32
    %c0_i32_0 = arith.constant 0 : i32
    %c0_i32_1 = arith.constant 0 : i32
    %c0_i32_2 = arith.constant 0 : i32
    return %arg0, %c0_i32, %c0_i32_0, %c0_i32_1 : i32, i32, i32, i32
  }
  func.func @transform_1(%arg0: i32) -> (i32, i32, i32, i32) {
    %c0_i32 = arith.constant 0 : i32
    %c0_i32_0 = arith.constant 0 : i32
    %c0_i32_1 = arith.constant 0 : i32
    %c0_i32_2 = arith.constant 0 : i32
    return %arg0, %c0_i32, %c0_i32_0, %c0_i32_1 : i32, i32, i32, i32
  }
}

module attributes {stable_mosaic.version = 11 : i64} {
  func.func @_conv_tap_kernel(%arg0: i32, %arg1: memref<1x5x2x3x128xbf16, #tpu.memory_space<vmem>>, %arg2: memref<9x128x128xbf16, #tpu.memory_space<vmem>>, %arg3: memref<1x2x2x128xbf16, #tpu.memory_space<vmem>>, %arg4: memref<1x2x128xf32, #tpu.memory_space<vmem>>) attributes {dimension_semantics = [#tpu.dimension_semantics<parallel>], iteration_bounds = array<i64: 2>, scalar_prefetch = 0 : i64, scratch_operands = 0 : i64, tpu.core_type = #tpu.core_type<tc>, window_params = [{transform_indices = @transform_0, window_bounds = array<i64: 1, 5, 2, 3, 128>}, {pipeline_mode = #tpu.pipeline_mode<synchronous>, transform_indices = @transform_1, window_bounds = array<i64: 9, 128, 128>}, {transform_indices = @transform_2, window_bounds = array<i64: 1, 2, 2, 128>}, {transform_indices = @transform_3, window_bounds = array<i64: 1, 2, 128>}]} {
    %cst = arith.constant 0.000000e+00 : f32
    %0 = vector.broadcast %cst : f32 to vector<1x128xf32>
    %c0_i32 = arith.constant 0 : i32
    %c2_i32 = arith.constant 2 : i32
    %1 = arith.addi %c0_i32, %c2_i32 : i32
    %c1_i32 = arith.constant 1 : i32
    %2:2 = scf.for %arg5 = %c0_i32 to %1 step %c1_i32 iter_args(%arg6 = %0, %arg7 = %0) -> (vector<1x128xf32>, vector<1x128xf32>)  : i32 {
      %cst_5 = arith.constant 0.000000e+00 : f32
      %9 = vector.broadcast %cst_5 : f32 to vector<2x128xf32>
      %c2_i32_6 = arith.constant 2 : i32
      %10 = arith.muli %c2_i32_6, %arg5 : i32
      %c0_i32_7 = arith.constant 0 : i32
      %11 = arith.addi %10, %c0_i32_7 : i32
      %c0_8 = arith.constant 0 : index
      %12 = arith.index_cast %11 : i32 to index
      %c0_9 = arith.constant 0 : index
      %c0_10 = arith.constant 0 : index
      %c0_11 = arith.constant 0 : index
      %13 = vector.load %arg1[%c0_8, %12, %c0_9, %c0_10, %c0_11] : memref<1x5x2x3x128xbf16, #tpu.memory_space<vmem>>, vector<1x1x1x2x128xbf16>
      %14 = vector.shape_cast %13 : vector<1x1x1x2x128xbf16> to vector<2x128xbf16>
      %c0_12 = arith.constant 0 : index
      %c0_13 = arith.constant 0 : index
      %c0_14 = arith.constant 0 : index
      %15 = vector.load %arg2[%c0_12, %c0_13, %c0_14] : memref<9x128x128xbf16, #tpu.memory_space<vmem>>, vector<1x128x128xbf16>
      %16 = vector.shape_cast %15 : vector<1x128x128xbf16> to vector<128x128xbf16>
      %cst_15 = arith.constant dense<0.000000e+00> : vector<2x128xf32>
      %17 = tpu.matmul %14, %16, %cst_15 {dimension_numbers = #tpu.dot_dimension_numbers<[1], [0], [0], [1], [0, 0, 1, 1], [], []>} : vector<2x128xbf16>, vector<128x128xbf16>, vector<2x128xf32> -> vector<2x128xf32>
      %18 = arith.addf %9, %17 : vector<2x128xf32>
      %c0_16 = arith.constant 0 : index
      %19 = arith.index_cast %11 : i32 to index
      %c1_17 = arith.constant 1 : index
      %c0_18 = arith.constant 0 : index
      %c0_19 = arith.constant 0 : index
      %20 = vector.load %arg1[%c0_16, %19, %c1_17, %c0_18, %c0_19] : memref<1x5x2x3x128xbf16, #tpu.memory_space<vmem>>, vector<1x1x1x2x128xbf16>
      %21 = vector.shape_cast %20 : vector<1x1x1x2x128xbf16> to vector<2x128xbf16>
      %c1_20 = arith.constant 1 : index
      %c0_21 = arith.constant 0 : index
      %c0_22 = arith.constant 0 : index
      %22 = vector.load %arg2[%c1_20, %c0_21, %c0_22] : memref<9x128x128xbf16, #tpu.memory_space<vmem>>, vector<1x128x128xbf16>
      %23 = vector.shape_cast %22 : vector<1x128x128xbf16> to vector<128x128xbf16>
      %cst_23 = arith.constant dense<0.000000e+00> : vector<2x128xf32>
      %24 = tpu.matmul %21, %23, %cst_23 {dimension_numbers = #tpu.dot_dimension_numbers<[1], [0], [0], [1], [0, 0, 1, 1], [], []>} : vector<2x128xbf16>, vector<128x128xbf16>, vector<2x128xf32> -> vector<2x128xf32>
      %25 = arith.addf %18, %24 : vector<2x128xf32>
      %c0_24 = arith.constant 0 : index
      %26 = arith.index_cast %11 : i32 to index
      %c0_25 = arith.constant 0 : index
      %c1_26 = arith.constant 1 : index
      %c0_27 = arith.constant 0 : index
      %27 = vector.load %arg1[%c0_24, %26, %c0_25, %c1_26, %c0_27] : memref<1x5x2x3x128xbf16, #tpu.memory_space<vmem>>, vector<1x1x1x2x128xbf16>
      %28 = vector.shape_cast %27 : vector<1x1x1x2x128xbf16> to vector<2x128xbf16>
      %c2 = arith.constant 2 : index
      %c0_28 = arith.constant 0 : index
      %c0_29 = arith.constant 0 : index
      %29 = vector.load %arg2[%c2, %c0_28, %c0_29] : memref<9x128x128xbf16, #tpu.memory_space<vmem>>, vector<1x128x128xbf16>
      %30 = vector.shape_cast %29 : vector<1x128x128xbf16> to vector<128x128xbf16>
      %cst_30 = arith.constant dense<0.000000e+00> : vector<2x128xf32>
      %31 = tpu.matmul %28, %30, %cst_30 {dimension_numbers = #tpu.dot_dimension_numbers<[1], [0], [0], [1], [0, 0, 1, 1], [], []>} : vector<2x128xbf16>, vector<128x128xbf16>, vector<2x128xf32> -> vector<2x128xf32>
      %32 = arith.addf %25, %31 : vector<2x128xf32>
      %c2_i32_31 = arith.constant 2 : i32
      %33 = arith.muli %c2_i32_31, %arg5 : i32
      %c1_i32_32 = arith.constant 1 : i32
      %34 = arith.addi %33, %c1_i32_32 : i32
      %c0_33 = arith.constant 0 : index
      %35 = arith.index_cast %34 : i32 to index
      %c0_34 = arith.constant 0 : index
      %c0_35 = arith.constant 0 : index
      %c0_36 = arith.constant 0 : index
      %36 = vector.load %arg1[%c0_33, %35, %c0_34, %c0_35, %c0_36] : memref<1x5x2x3x128xbf16, #tpu.memory_space<vmem>>, vector<1x1x1x2x128xbf16>
      %37 = vector.shape_cast %36 : vector<1x1x1x2x128xbf16> to vector<2x128xbf16>
      %c3 = arith.constant 3 : index
      %c0_37 = arith.constant 0 : index
      %c0_38 = arith.constant 0 : index
      %38 = vector.load %arg2[%c3, %c0_37, %c0_38] : memref<9x128x128xbf16, #tpu.memory_space<vmem>>, vector<1x128x128xbf16>
      %39 = vector.shape_cast %38 : vector<1x128x128xbf16> to vector<128x128xbf16>
      %cst_39 = arith.constant dense<0.000000e+00> : vector<2x128xf32>
      %40 = tpu.matmul %37, %39, %cst_39 {dimension_numbers = #tpu.dot_dimension_numbers<[1], [0], [0], [1], [0, 0, 1, 1], [], []>} : vector<2x128xbf16>, vector<128x128xbf16>, vector<2x128xf32> -> vector<2x128xf32>
      %41 = arith.addf %32, %40 : vector<2x128xf32>
      %c0_40 = arith.constant 0 : index
      %42 = arith.index_cast %34 : i32 to index
      %c1_41 = arith.constant 1 : index
      %c0_42 = arith.constant 0 : index
      %c0_43 = arith.constant 0 : index
      %43 = vector.load %arg1[%c0_40, %42, %c1_41, %c0_42, %c0_43] : memref<1x5x2x3x128xbf16, #tpu.memory_space<vmem>>, vector<1x1x1x2x128xbf16>
      %44 = vector.shape_cast %43 : vector<1x1x1x2x128xbf16> to vector<2x128xbf16>
      %c4 = arith.constant 4 : index
      %c0_44 = arith.constant 0 : index
      %c0_45 = arith.constant 0 : index
      %45 = vector.load %arg2[%c4, %c0_44, %c0_45] : memref<9x128x128xbf16, #tpu.memory_space<vmem>>, vector<1x128x128xbf16>
      %46 = vector.shape_cast %45 : vector<1x128x128xbf16> to vector<128x128xbf16>
      %cst_46 = arith.constant dense<0.000000e+00> : vector<2x128xf32>
      %47 = tpu.matmul %44, %46, %cst_46 {dimension_numbers = #tpu.dot_dimension_numbers<[1], [0], [0], [1], [0, 0, 1, 1], [], []>} : vector<2x128xbf16>, vector<128x128xbf16>, vector<2x128xf32> -> vector<2x128xf32>
      %48 = arith.addf %41, %47 : vector<2x128xf32>
      %c0_47 = arith.constant 0 : index
      %49 = arith.index_cast %34 : i32 to index
      %c0_48 = arith.constant 0 : index
      %c1_49 = arith.constant 1 : index
      %c0_50 = arith.constant 0 : index
      %50 = vector.load %arg1[%c0_47, %49, %c0_48, %c1_49, %c0_50] : memref<1x5x2x3x128xbf16, #tpu.memory_space<vmem>>, vector<1x1x1x2x128xbf16>
      %51 = vector.shape_cast %50 : vector<1x1x1x2x128xbf16> to vector<2x128xbf16>
      %c5 = arith.constant 5 : index
      %c0_51 = arith.constant 0 : index
      %c0_52 = arith.constant 0 : index
      %52 = vector.load %arg2[%c5, %c0_51, %c0_52] : memref<9x128x128xbf16, #tpu.memory_space<vmem>>, vector<1x128x128xbf16>
      %53 = vector.shape_cast %52 : vector<1x128x128xbf16> to vector<128x128xbf16>
      %cst_53 = arith.constant dense<0.000000e+00> : vector<2x128xf32>
      %54 = tpu.matmul %51, %53, %cst_53 {dimension_numbers = #tpu.dot_dimension_numbers<[1], [0], [0], [1], [0, 0, 1, 1], [], []>} : vector<2x128xbf16>, vector<128x128xbf16>, vector<2x128xf32> -> vector<2x128xf32>
      %55 = arith.addf %48, %54 : vector<2x128xf32>
      %c2_i32_54 = arith.constant 2 : i32
      %56 = arith.muli %c2_i32_54, %arg5 : i32
      %c2_i32_55 = arith.constant 2 : i32
      %57 = arith.addi %56, %c2_i32_55 : i32
      %c0_56 = arith.constant 0 : index
      %58 = arith.index_cast %57 : i32 to index
      %c0_57 = arith.constant 0 : index
      %c0_58 = arith.constant 0 : index
      %c0_59 = arith.constant 0 : index
      %59 = vector.load %arg1[%c0_56, %58, %c0_57, %c0_58, %c0_59] : memref<1x5x2x3x128xbf16, #tpu.memory_space<vmem>>, vector<1x1x1x2x128xbf16>
      %60 = vector.shape_cast %59 : vector<1x1x1x2x128xbf16> to vector<2x128xbf16>
      %c6 = arith.constant 6 : index
      %c0_60 = arith.constant 0 : index
      %c0_61 = arith.constant 0 : index
      %61 = vector.load %arg2[%c6, %c0_60, %c0_61] : memref<9x128x128xbf16, #tpu.memory_space<vmem>>, vector<1x128x128xbf16>
      %62 = vector.shape_cast %61 : vector<1x128x128xbf16> to vector<128x128xbf16>
      %cst_62 = arith.constant dense<0.000000e+00> : vector<2x128xf32>
      %63 = tpu.matmul %60, %62, %cst_62 {dimension_numbers = #tpu.dot_dimension_numbers<[1], [0], [0], [1], [0, 0, 1, 1], [], []>} : vector<2x128xbf16>, vector<128x128xbf16>, vector<2x128xf32> -> vector<2x128xf32>
      %64 = arith.addf %55, %63 : vector<2x128xf32>
      %c0_63 = arith.constant 0 : index
      %65 = arith.index_cast %57 : i32 to index
      %c1_64 = arith.constant 1 : index
      %c0_65 = arith.constant 0 : index
      %c0_66 = arith.constant 0 : index
      %66 = vector.load %arg1[%c0_63, %65, %c1_64, %c0_65, %c0_66] : memref<1x5x2x3x128xbf16, #tpu.memory_space<vmem>>, vector<1x1x1x2x128xbf16>
      %67 = vector.shape_cast %66 : vector<1x1x1x2x128xbf16> to vector<2x128xbf16>
      %c7 = arith.constant 7 : index
      %c0_67 = arith.constant 0 : index
      %c0_68 = arith.constant 0 : index
      %68 = vector.load %arg2[%c7, %c0_67, %c0_68] : memref<9x128x128xbf16, #tpu.memory_space<vmem>>, vector<1x128x128xbf16>
      %69 = vector.shape_cast %68 : vector<1x128x128xbf16> to vector<128x128xbf16>
      %cst_69 = arith.constant dense<0.000000e+00> : vector<2x128xf32>
      %70 = tpu.matmul %67, %69, %cst_69 {dimension_numbers = #tpu.dot_dimension_numbers<[1], [0], [0], [1], [0, 0, 1, 1], [], []>} : vector<2x128xbf16>, vector<128x128xbf16>, vector<2x128xf32> -> vector<2x128xf32>
      %71 = arith.addf %64, %70 : vector<2x128xf32>
      %c0_70 = arith.constant 0 : index
      %72 = arith.index_cast %57 : i32 to index
      %c0_71 = arith.constant 0 : index
      %c1_72 = arith.constant 1 : index
      %c0_73 = arith.constant 0 : index
      %73 = vector.load %arg1[%c0_70, %72, %c0_71, %c1_72, %c0_73] : memref<1x5x2x3x128xbf16, #tpu.memory_space<vmem>>, vector<1x1x1x2x128xbf16>
      %74 = vector.shape_cast %73 : vector<1x1x1x2x128xbf16> to vector<2x128xbf16>
      %c8 = arith.constant 8 : index
      %c0_74 = arith.constant 0 : index
      %c0_75 = arith.constant 0 : index
      %75 = vector.load %arg2[%c8, %c0_74, %c0_75] : memref<9x128x128xbf16, #tpu.memory_space<vmem>>, vector<1x128x128xbf16>
      %76 = vector.shape_cast %75 : vector<1x128x128xbf16> to vector<128x128xbf16>
      %cst_76 = arith.constant dense<0.000000e+00> : vector<2x128xf32>
      %77 = tpu.matmul %74, %76, %cst_76 {dimension_numbers = #tpu.dot_dimension_numbers<[1], [0], [0], [1], [0, 0, 1, 1], [], []>} : vector<2x128xbf16>, vector<128x128xbf16>, vector<2x128xf32> -> vector<2x128xf32>
      %78 = arith.addf %71, %77 : vector<2x128xf32>
      %79 = arith.truncf %78 : vector<2x128xf32> to vector<2x128xbf16>
      %c0_77 = arith.constant 0 : index
      %80 = arith.index_cast %arg5 : i32 to index
      %c0_78 = arith.constant 0 : index
      %c0_79 = arith.constant 0 : index
      %81 = vector.load %arg3[%c0_77, %80, %c0_78, %c0_79] : memref<1x2x2x128xbf16, #tpu.memory_space<vmem>>, vector<1x1x2x128xbf16>
      %82 = vector.shape_cast %81 : vector<1x1x2x128xbf16> to vector<2x128xbf16>
      %83 = vector.shape_cast %79 : vector<2x128xbf16> to vector<1x1x2x128xbf16>
      tpu.vector_store %arg3[%c0_77, %80, %c0_78, %c0_79], %83 {strides = array<i32>} : memref<1x2x2x128xbf16, #tpu.memory_space<vmem>>, vector<1x1x2x128xbf16>,
      %cst_80 = arith.constant dense<0.000000e+00> : vector<128xf32>
      %84 = vector.multi_reduction <add>, %78, %cst_80 [0] : vector<2x128xf32> to vector<128xf32>
      %85 = vector.shape_cast %84 : vector<128xf32> to vector<1x128xf32>
      %86 = arith.addf %arg6, %85 : vector<1x128xf32>
      %87 = arith.mulf %78, %78 : vector<2x128xf32>
      %cst_81 = arith.constant dense<0.000000e+00> : vector<128xf32>
      %88 = vector.multi_reduction <add>, %87, %cst_81 [0] : vector<2x128xf32> to vector<128xf32>
      %89 = vector.shape_cast %88 : vector<128xf32> to vector<1x128xf32>
      %90 = arith.addf %arg7, %89 : vector<1x128xf32>
      scf.yield %86, %90 : vector<1x128xf32>, vector<1x128xf32>
    }
    %c2_i32_0 = arith.constant 2 : i32
    %c0 = arith.constant 0 : index
    %c0_1 = arith.constant 0 : index
    %c0_2 = arith.constant 0 : index
    %3 = vector.load %arg4[%c0, %c0_1, %c0_2] : memref<1x2x128xf32, #tpu.memory_space<vmem>>, vector<1x1x128xf32>
    %4 = vector.shape_cast %3 : vector<1x1x128xf32> to vector<1x128xf32>
    %5 = vector.shape_cast %2#0 : vector<1x128xf32> to vector<1x1x128xf32>
    tpu.vector_store %arg4[%c0, %c0_1, %c0_2], %5 {strides = array<i32>} : memref<1x2x128xf32, #tpu.memory_space<vmem>>, vector<1x1x128xf32>,
    %c0_3 = arith.constant 0 : index
    %c1 = arith.constant 1 : index
    %c0_4 = arith.constant 0 : index
    %6 = vector.load %arg4[%c0_3, %c1, %c0_4] : memref<1x2x128xf32, #tpu.memory_space<vmem>>, vector<1x1x128xf32>
    %7 = vector.shape_cast %6 : vector<1x1x128xf32> to vector<1x128xf32>
    %8 = vector.shape_cast %2#1 : vector<1x128xf32> to vector<1x1x128xf32>
    tpu.vector_store %arg4[%c0_3, %c1, %c0_4], %8 {strides = array<i32>} : memref<1x2x128xf32, #tpu.memory_space<vmem>>, vector<1x1x128xf32>,
    return
  }
  func.func @transform_0(%arg0: i32) -> (i32, i32, i32, i32, i32) {
    %c0_i32 = arith.constant 0 : i32
    %c0_i32_0 = arith.constant 0 : i32
    %c0_i32_1 = arith.constant 0 : i32
    %c0_i32_2 = arith.constant 0 : i32
    %c0_i32_3 = arith.constant 0 : i32
    return %arg0, %c0_i32, %c0_i32_0, %c0_i32_1, %c0_i32_2 : i32, i32, i32, i32, i32
  }
  func.func @transform_1(%arg0: i32) -> (i32, i32, i32) {
    %c0_i32 = arith.constant 0 : i32
    %c0_i32_0 = arith.constant 0 : i32
    %c0_i32_1 = arith.constant 0 : i32
    %c0_i32_2 = arith.constant 0 : i32
    return %c0_i32, %c0_i32_0, %c0_i32_1 : i32, i32, i32
  }
  func.func @transform_2(%arg0: i32) -> (i32, i32, i32, i32) {
    %c0_i32 = arith.constant 0 : i32
    %c0_i32_0 = arith.constant 0 : i32
    %c0_i32_1 = arith.constant 0 : i32
    %c0_i32_2 = arith.constant 0 : i32
    return %arg0, %c0_i32, %c0_i32_0, %c0_i32_1 : i32, i32, i32, i32
  }
  func.func @transform_3(%arg0: i32) -> (i32, i32, i32) {
    %c0_i32 = arith.constant 0 : i32
    %c0_i32_0 = arith.constant 0 : i32
    %c0_i32_1 = arith.constant 0 : i32
    return %arg0, %c0_i32, %c0_i32_0 : i32, i32, i32
  }
}

module attributes {stable_mosaic.version = 11 : i64} {
  func.func @_bn_apply_kernel(%arg0: i32, %arg1: i32, %arg2: memref<8x128xf32, #tpu.memory_space<vmem>>, %arg3: memref<8x128xbf16, #tpu.memory_space<vmem>>, %arg4: memref<8x128xbf16, #tpu.memory_space<vmem>>) attributes {dimension_semantics = [#tpu.dimension_semantics<parallel>, #tpu.dimension_semantics<parallel>], iteration_bounds = array<i64: 1, 1>, scalar_prefetch = 0 : i64, scratch_operands = 0 : i64, tpu.core_type = #tpu.core_type<tc>, window_params = [{transform_indices = @transform_0, window_bounds = array<i64: 8, 128>}, {transform_indices = @transform_1, window_bounds = array<i64: 8, 128>}, {transform_indices = @transform_2, window_bounds = array<i64: 8, 128>}]} {
    %c0 = arith.constant 0 : index
    %c0_0 = arith.constant 0 : index
    %0 = vector.load %arg2[%c0, %c0_0] : memref<8x128xf32, #tpu.memory_space<vmem>>, vector<8x128xf32>
    %1 = vector.extract_strided_slice %0 {offsets = [0, 0], sizes = [1, 128], strides = [1, 1]} : vector<8x128xf32> to vector<1x128xf32>
    %cst = arith.constant 1.250000e-01 : f32
    %2 = vector.broadcast %cst : f32 to vector<1x128xf32>
    %3 = arith.mulf %1, %2 : vector<1x128xf32>
    %4 = vector.extract_strided_slice %0 {offsets = [1, 0], sizes = [1, 128], strides = [1, 1]} : vector<8x128xf32> to vector<1x128xf32>
    %cst_1 = arith.constant 1.250000e-01 : f32
    %5 = vector.broadcast %cst_1 : f32 to vector<1x128xf32>
    %6 = arith.mulf %4, %5 : vector<1x128xf32>
    %7 = arith.mulf %3, %3 : vector<1x128xf32>
    %8 = arith.subf %6, %7 : vector<1x128xf32>
    %cst_2 = arith.constant 0.000000e+00 : f32
    %9 = vector.broadcast %cst_2 : f32 to vector<1x128xf32>
    %10 = arith.maximumf %8, %9 : vector<1x128xf32>
    %cst_3 = arith.constant 9.99999974E-6 : f32
    %11 = vector.broadcast %cst_3 : f32 to vector<1x128xf32>
    %12 = arith.addf %10, %11 : vector<1x128xf32>
    %13 = math.rsqrt %12 : vector<1x128xf32>
    %14 = vector.extract_strided_slice %0 {offsets = [2, 0], sizes = [1, 128], strides = [1, 1]} : vector<8x128xf32> to vector<1x128xf32>
    %15 = arith.mulf %14, %13 : vector<1x128xf32>
    %16 = vector.extract_strided_slice %0 {offsets = [3, 0], sizes = [1, 128], strides = [1, 1]} : vector<8x128xf32> to vector<1x128xf32>
    %17 = arith.mulf %3, %15 : vector<1x128xf32>
    %18 = arith.subf %16, %17 : vector<1x128xf32>
    %c0_4 = arith.constant 0 : index
    %c0_5 = arith.constant 0 : index
    %19 = vector.load %arg3[%c0_4, %c0_5] : memref<8x128xbf16, #tpu.memory_space<vmem>>, vector<8x128xbf16>
    %20 = arith.extf %19 : vector<8x128xbf16> to vector<8x128xf32>
    %21 = vector.broadcast %15 : vector<1x128xf32> to vector<8x128xf32>
    %22 = arith.mulf %20, %21 : vector<8x128xf32>
    %23 = vector.broadcast %18 : vector<1x128xf32> to vector<8x128xf32>
    %24 = arith.addf %22, %23 : vector<8x128xf32>
    %25 = vector.extract_strided_slice %0 {offsets = [4, 0], sizes = [1, 128], strides = [1, 1]} : vector<8x128xf32> to vector<1x128xf32>
    %cst_6 = arith.constant 5.000000e-01 : f32
    %26 = vector.broadcast %cst_6 : f32 to vector<1x128xf32>
    %27 = arith.cmpf ogt, %25, %26 : vector<1x128xf32>
    %cst_7 = arith.constant 0.000000e+00 : f32
    %28 = vector.broadcast %cst_7 : f32 to vector<8x128xf32>
    %29 = arith.maximumf %24, %28 : vector<8x128xf32>
    %30 = vector.shape_cast %27 : vector<1x128xi1> to vector<1x128xi1>
    %31 = vector.broadcast %30 : vector<1x128xi1> to vector<8x128xi1>
    %32 = arith.select %31, %29, %24 : vector<8x128xi1>, vector<8x128xf32>
    %33 = arith.truncf %32 : vector<8x128xf32> to vector<8x128xbf16>
    %c0_8 = arith.constant 0 : index
    %c0_9 = arith.constant 0 : index
    %34 = vector.load %arg4[%c0_8, %c0_9] : memref<8x128xbf16, #tpu.memory_space<vmem>>, vector<8x128xbf16>
    tpu.vector_store %arg4[%c0_8, %c0_9], %33 {strides = array<i32>} : memref<8x128xbf16, #tpu.memory_space<vmem>>, vector<8x128xbf16>,
    return
  }
  func.func @transform_0(%arg0: i32, %arg1: i32) -> (i32, i32) {
    %c0_i32 = arith.constant 0 : i32
    %c0_i32_0 = arith.constant 0 : i32
    return %c0_i32, %arg0 : i32, i32
  }
  func.func @transform_1(%arg0: i32, %arg1: i32) -> (i32, i32) {
    %c0_i32 = arith.constant 0 : i32
    return %arg1, %arg0 : i32, i32
  }
  func.func @transform_2(%arg0: i32, %arg1: i32) -> (i32, i32) {
    %c0_i32 = arith.constant 0 : i32
    return %arg1, %arg0 : i32, i32
  }
}

module attributes {stable_mosaic.version = 11 : i64} {
  func.func @_conv_tap_kernel(%arg0: i32, %arg1: memref<1x4x4x128xbf16, #tpu.memory_space<vmem>>, %arg2: memref<9x128x128xbf16, #tpu.memory_space<vmem>>, %arg3: memref<1x2x2x128xbf16, #tpu.memory_space<vmem>>, %arg4: memref<1x2x128xf32, #tpu.memory_space<vmem>>) attributes {dimension_semantics = [#tpu.dimension_semantics<parallel>], iteration_bounds = array<i64: 2>, scalar_prefetch = 0 : i64, scratch_operands = 0 : i64, tpu.core_type = #tpu.core_type<tc>, window_params = [{transform_indices = @transform_0, window_bounds = array<i64: 1, 4, 4, 128>}, {pipeline_mode = #tpu.pipeline_mode<synchronous>, transform_indices = @transform_1, window_bounds = array<i64: 9, 128, 128>}, {transform_indices = @transform_2, window_bounds = array<i64: 1, 2, 2, 128>}, {transform_indices = @transform_3, window_bounds = array<i64: 1, 2, 128>}]} {
    %cst = arith.constant 0.000000e+00 : f32
    %0 = vector.broadcast %cst : f32 to vector<1x128xf32>
    %c0_i32 = arith.constant 0 : i32
    %c2_i32 = arith.constant 2 : i32
    %1 = arith.addi %c0_i32, %c2_i32 : i32
    %c1_i32 = arith.constant 1 : i32
    %2:2 = scf.for %arg5 = %c0_i32 to %1 step %c1_i32 iter_args(%arg6 = %0, %arg7 = %0) -> (vector<1x128xf32>, vector<1x128xf32>)  : i32 {
      %cst_5 = arith.constant 0.000000e+00 : f32
      %9 = vector.broadcast %cst_5 : f32 to vector<2x128xf32>
      %c1_i32_6 = arith.constant 1 : i32
      %10 = arith.muli %c1_i32_6, %arg5 : i32
      %c0_i32_7 = arith.constant 0 : i32
      %11 = arith.addi %10, %c0_i32_7 : i32
      %c0_8 = arith.constant 0 : index
      %12 = arith.index_cast %11 : i32 to index
      %c0_9 = arith.constant 0 : index
      %c0_10 = arith.constant 0 : index
      %13 = vector.load %arg1[%c0_8, %12, %c0_9, %c0_10] : memref<1x4x4x128xbf16, #tpu.memory_space<vmem>>, vector<1x1x2x128xbf16>
      %14 = vector.shape_cast %13 : vector<1x1x2x128xbf16> to vector<2x128xbf16>
      %c0_11 = arith.constant 0 : index
      %c0_12 = arith.constant 0 : index
      %c0_13 = arith.constant 0 : index
      %15 = vector.load %arg2[%c0_11, %c0_12, %c0_13] : memref<9x128x128xbf16, #tpu.memory_space<vmem>>, vector<1x128x128xbf16>
      %16 = vector.shape_cast %15 : vector<1x128x128xbf16> to vector<128x128xbf16>
      %cst_14 = arith.constant dense<0.000000e+00> : vector<2x128xf32>
      %17 = tpu.matmul %14, %16, %cst_14 {dimension_numbers = #tpu.dot_dimension_numbers<[1], [0], [0], [1], [0, 0, 1, 1], [], []>} : vector<2x128xbf16>, vector<128x128xbf16>, vector<2x128xf32> -> vector<2x128xf32>
      %18 = arith.addf %9, %17 : vector<2x128xf32>
      %c0_15 = arith.constant 0 : index
      %19 = arith.index_cast %11 : i32 to index
      %c1_16 = arith.constant 1 : index
      %c0_17 = arith.constant 0 : index
      %20 = vector.load %arg1[%c0_15, %19, %c1_16, %c0_17] : memref<1x4x4x128xbf16, #tpu.memory_space<vmem>>, vector<1x1x2x128xbf16>
      %21 = vector.shape_cast %20 : vector<1x1x2x128xbf16> to vector<2x128xbf16>
      %c1_18 = arith.constant 1 : index
      %c0_19 = arith.constant 0 : index
      %c0_20 = arith.constant 0 : index
      %22 = vector.load %arg2[%c1_18, %c0_19, %c0_20] : memref<9x128x128xbf16, #tpu.memory_space<vmem>>, vector<1x128x128xbf16>
      %23 = vector.shape_cast %22 : vector<1x128x128xbf16> to vector<128x128xbf16>
      %cst_21 = arith.constant dense<0.000000e+00> : vector<2x128xf32>
      %24 = tpu.matmul %21, %23, %cst_21 {dimension_numbers = #tpu.dot_dimension_numbers<[1], [0], [0], [1], [0, 0, 1, 1], [], []>} : vector<2x128xbf16>, vector<128x128xbf16>, vector<2x128xf32> -> vector<2x128xf32>
      %25 = arith.addf %18, %24 : vector<2x128xf32>
      %c0_22 = arith.constant 0 : index
      %26 = arith.index_cast %11 : i32 to index
      %c2 = arith.constant 2 : index
      %c0_23 = arith.constant 0 : index
      %27 = vector.load %arg1[%c0_22, %26, %c2, %c0_23] : memref<1x4x4x128xbf16, #tpu.memory_space<vmem>>, vector<1x1x2x128xbf16>
      %28 = vector.shape_cast %27 : vector<1x1x2x128xbf16> to vector<2x128xbf16>
      %c2_24 = arith.constant 2 : index
      %c0_25 = arith.constant 0 : index
      %c0_26 = arith.constant 0 : index
      %29 = vector.load %arg2[%c2_24, %c0_25, %c0_26] : memref<9x128x128xbf16, #tpu.memory_space<vmem>>, vector<1x128x128xbf16>
      %30 = vector.shape_cast %29 : vector<1x128x128xbf16> to vector<128x128xbf16>
      %cst_27 = arith.constant dense<0.000000e+00> : vector<2x128xf32>
      %31 = tpu.matmul %28, %30, %cst_27 {dimension_numbers = #tpu.dot_dimension_numbers<[1], [0], [0], [1], [0, 0, 1, 1], [], []>} : vector<2x128xbf16>, vector<128x128xbf16>, vector<2x128xf32> -> vector<2x128xf32>
      %32 = arith.addf %25, %31 : vector<2x128xf32>
      %c1_i32_28 = arith.constant 1 : i32
      %33 = arith.muli %c1_i32_28, %arg5 : i32
      %c1_i32_29 = arith.constant 1 : i32
      %34 = arith.addi %33, %c1_i32_29 : i32
      %c0_30 = arith.constant 0 : index
      %35 = arith.index_cast %34 : i32 to index
      %c0_31 = arith.constant 0 : index
      %c0_32 = arith.constant 0 : index
      %36 = vector.load %arg1[%c0_30, %35, %c0_31, %c0_32] : memref<1x4x4x128xbf16, #tpu.memory_space<vmem>>, vector<1x1x2x128xbf16>
      %37 = vector.shape_cast %36 : vector<1x1x2x128xbf16> to vector<2x128xbf16>
      %c3 = arith.constant 3 : index
      %c0_33 = arith.constant 0 : index
      %c0_34 = arith.constant 0 : index
      %38 = vector.load %arg2[%c3, %c0_33, %c0_34] : memref<9x128x128xbf16, #tpu.memory_space<vmem>>, vector<1x128x128xbf16>
      %39 = vector.shape_cast %38 : vector<1x128x128xbf16> to vector<128x128xbf16>
      %cst_35 = arith.constant dense<0.000000e+00> : vector<2x128xf32>
      %40 = tpu.matmul %37, %39, %cst_35 {dimension_numbers = #tpu.dot_dimension_numbers<[1], [0], [0], [1], [0, 0, 1, 1], [], []>} : vector<2x128xbf16>, vector<128x128xbf16>, vector<2x128xf32> -> vector<2x128xf32>
      %41 = arith.addf %32, %40 : vector<2x128xf32>
      %c0_36 = arith.constant 0 : index
      %42 = arith.index_cast %34 : i32 to index
      %c1_37 = arith.constant 1 : index
      %c0_38 = arith.constant 0 : index
      %43 = vector.load %arg1[%c0_36, %42, %c1_37, %c0_38] : memref<1x4x4x128xbf16, #tpu.memory_space<vmem>>, vector<1x1x2x128xbf16>
      %44 = vector.shape_cast %43 : vector<1x1x2x128xbf16> to vector<2x128xbf16>
      %c4 = arith.constant 4 : index
      %c0_39 = arith.constant 0 : index
      %c0_40 = arith.constant 0 : index
      %45 = vector.load %arg2[%c4, %c0_39, %c0_40] : memref<9x128x128xbf16, #tpu.memory_space<vmem>>, vector<1x128x128xbf16>
      %46 = vector.shape_cast %45 : vector<1x128x128xbf16> to vector<128x128xbf16>
      %cst_41 = arith.constant dense<0.000000e+00> : vector<2x128xf32>
      %47 = tpu.matmul %44, %46, %cst_41 {dimension_numbers = #tpu.dot_dimension_numbers<[1], [0], [0], [1], [0, 0, 1, 1], [], []>} : vector<2x128xbf16>, vector<128x128xbf16>, vector<2x128xf32> -> vector<2x128xf32>
      %48 = arith.addf %41, %47 : vector<2x128xf32>
      %c0_42 = arith.constant 0 : index
      %49 = arith.index_cast %34 : i32 to index
      %c2_43 = arith.constant 2 : index
      %c0_44 = arith.constant 0 : index
      %50 = vector.load %arg1[%c0_42, %49, %c2_43, %c0_44] : memref<1x4x4x128xbf16, #tpu.memory_space<vmem>>, vector<1x1x2x128xbf16>
      %51 = vector.shape_cast %50 : vector<1x1x2x128xbf16> to vector<2x128xbf16>
      %c5 = arith.constant 5 : index
      %c0_45 = arith.constant 0 : index
      %c0_46 = arith.constant 0 : index
      %52 = vector.load %arg2[%c5, %c0_45, %c0_46] : memref<9x128x128xbf16, #tpu.memory_space<vmem>>, vector<1x128x128xbf16>
      %53 = vector.shape_cast %52 : vector<1x128x128xbf16> to vector<128x128xbf16>
      %cst_47 = arith.constant dense<0.000000e+00> : vector<2x128xf32>
      %54 = tpu.matmul %51, %53, %cst_47 {dimension_numbers = #tpu.dot_dimension_numbers<[1], [0], [0], [1], [0, 0, 1, 1], [], []>} : vector<2x128xbf16>, vector<128x128xbf16>, vector<2x128xf32> -> vector<2x128xf32>
      %55 = arith.addf %48, %54 : vector<2x128xf32>
      %c1_i32_48 = arith.constant 1 : i32
      %56 = arith.muli %c1_i32_48, %arg5 : i32
      %c2_i32_49 = arith.constant 2 : i32
      %57 = arith.addi %56, %c2_i32_49 : i32
      %c0_50 = arith.constant 0 : index
      %58 = arith.index_cast %57 : i32 to index
      %c0_51 = arith.constant 0 : index
      %c0_52 = arith.constant 0 : index
      %59 = vector.load %arg1[%c0_50, %58, %c0_51, %c0_52] : memref<1x4x4x128xbf16, #tpu.memory_space<vmem>>, vector<1x1x2x128xbf16>
      %60 = vector.shape_cast %59 : vector<1x1x2x128xbf16> to vector<2x128xbf16>
      %c6 = arith.constant 6 : index
      %c0_53 = arith.constant 0 : index
      %c0_54 = arith.constant 0 : index
      %61 = vector.load %arg2[%c6, %c0_53, %c0_54] : memref<9x128x128xbf16, #tpu.memory_space<vmem>>, vector<1x128x128xbf16>
      %62 = vector.shape_cast %61 : vector<1x128x128xbf16> to vector<128x128xbf16>
      %cst_55 = arith.constant dense<0.000000e+00> : vector<2x128xf32>
      %63 = tpu.matmul %60, %62, %cst_55 {dimension_numbers = #tpu.dot_dimension_numbers<[1], [0], [0], [1], [0, 0, 1, 1], [], []>} : vector<2x128xbf16>, vector<128x128xbf16>, vector<2x128xf32> -> vector<2x128xf32>
      %64 = arith.addf %55, %63 : vector<2x128xf32>
      %c0_56 = arith.constant 0 : index
      %65 = arith.index_cast %57 : i32 to index
      %c1_57 = arith.constant 1 : index
      %c0_58 = arith.constant 0 : index
      %66 = vector.load %arg1[%c0_56, %65, %c1_57, %c0_58] : memref<1x4x4x128xbf16, #tpu.memory_space<vmem>>, vector<1x1x2x128xbf16>
      %67 = vector.shape_cast %66 : vector<1x1x2x128xbf16> to vector<2x128xbf16>
      %c7 = arith.constant 7 : index
      %c0_59 = arith.constant 0 : index
      %c0_60 = arith.constant 0 : index
      %68 = vector.load %arg2[%c7, %c0_59, %c0_60] : memref<9x128x128xbf16, #tpu.memory_space<vmem>>, vector<1x128x128xbf16>
      %69 = vector.shape_cast %68 : vector<1x128x128xbf16> to vector<128x128xbf16>
      %cst_61 = arith.constant dense<0.000000e+00> : vector<2x128xf32>
      %70 = tpu.matmul %67, %69, %cst_61 {dimension_numbers = #tpu.dot_dimension_numbers<[1], [0], [0], [1], [0, 0, 1, 1], [], []>} : vector<2x128xbf16>, vector<128x128xbf16>, vector<2x128xf32> -> vector<2x128xf32>
      %71 = arith.addf %64, %70 : vector<2x128xf32>
      %c0_62 = arith.constant 0 : index
      %72 = arith.index_cast %57 : i32 to index
      %c2_63 = arith.constant 2 : index
      %c0_64 = arith.constant 0 : index
      %73 = vector.load %arg1[%c0_62, %72, %c2_63, %c0_64] : memref<1x4x4x128xbf16, #tpu.memory_space<vmem>>, vector<1x1x2x128xbf16>
      %74 = vector.shape_cast %73 : vector<1x1x2x128xbf16> to vector<2x128xbf16>
      %c8 = arith.constant 8 : index
      %c0_65 = arith.constant 0 : index
      %c0_66 = arith.constant 0 : index
      %75 = vector.load %arg2[%c8, %c0_65, %c0_66] : memref<9x128x128xbf16, #tpu.memory_space<vmem>>, vector<1x128x128xbf16>
      %76 = vector.shape_cast %75 : vector<1x128x128xbf16> to vector<128x128xbf16>
      %cst_67 = arith.constant dense<0.000000e+00> : vector<2x128xf32>
      %77 = tpu.matmul %74, %76, %cst_67 {dimension_numbers = #tpu.dot_dimension_numbers<[1], [0], [0], [1], [0, 0, 1, 1], [], []>} : vector<2x128xbf16>, vector<128x128xbf16>, vector<2x128xf32> -> vector<2x128xf32>
      %78 = arith.addf %71, %77 : vector<2x128xf32>
      %79 = arith.truncf %78 : vector<2x128xf32> to vector<2x128xbf16>
      %c0_68 = arith.constant 0 : index
      %80 = arith.index_cast %arg5 : i32 to index
      %c0_69 = arith.constant 0 : index
      %c0_70 = arith.constant 0 : index
      %81 = vector.load %arg3[%c0_68, %80, %c0_69, %c0_70] : memref<1x2x2x128xbf16, #tpu.memory_space<vmem>>, vector<1x1x2x128xbf16>
      %82 = vector.shape_cast %81 : vector<1x1x2x128xbf16> to vector<2x128xbf16>
      %83 = vector.shape_cast %79 : vector<2x128xbf16> to vector<1x1x2x128xbf16>
      tpu.vector_store %arg3[%c0_68, %80, %c0_69, %c0_70], %83 {strides = array<i32>} : memref<1x2x2x128xbf16, #tpu.memory_space<vmem>>, vector<1x1x2x128xbf16>,
      %cst_71 = arith.constant dense<0.000000e+00> : vector<128xf32>
      %84 = vector.multi_reduction <add>, %78, %cst_71 [0] : vector<2x128xf32> to vector<128xf32>
      %85 = vector.shape_cast %84 : vector<128xf32> to vector<1x128xf32>
      %86 = arith.addf %arg6, %85 : vector<1x128xf32>
      %87 = arith.mulf %78, %78 : vector<2x128xf32>
      %cst_72 = arith.constant dense<0.000000e+00> : vector<128xf32>
      %88 = vector.multi_reduction <add>, %87, %cst_72 [0] : vector<2x128xf32> to vector<128xf32>
      %89 = vector.shape_cast %88 : vector<128xf32> to vector<1x128xf32>
      %90 = arith.addf %arg7, %89 : vector<1x128xf32>
      scf.yield %86, %90 : vector<1x128xf32>, vector<1x128xf32>
    }
    %c2_i32_0 = arith.constant 2 : i32
    %c0 = arith.constant 0 : index
    %c0_1 = arith.constant 0 : index
    %c0_2 = arith.constant 0 : index
    %3 = vector.load %arg4[%c0, %c0_1, %c0_2] : memref<1x2x128xf32, #tpu.memory_space<vmem>>, vector<1x1x128xf32>
    %4 = vector.shape_cast %3 : vector<1x1x128xf32> to vector<1x128xf32>
    %5 = vector.shape_cast %2#0 : vector<1x128xf32> to vector<1x1x128xf32>
    tpu.vector_store %arg4[%c0, %c0_1, %c0_2], %5 {strides = array<i32>} : memref<1x2x128xf32, #tpu.memory_space<vmem>>, vector<1x1x128xf32>,
    %c0_3 = arith.constant 0 : index
    %c1 = arith.constant 1 : index
    %c0_4 = arith.constant 0 : index
    %6 = vector.load %arg4[%c0_3, %c1, %c0_4] : memref<1x2x128xf32, #tpu.memory_space<vmem>>, vector<1x1x128xf32>
    %7 = vector.shape_cast %6 : vector<1x1x128xf32> to vector<1x128xf32>
    %8 = vector.shape_cast %2#1 : vector<1x128xf32> to vector<1x1x128xf32>
    tpu.vector_store %arg4[%c0_3, %c1, %c0_4], %8 {strides = array<i32>} : memref<1x2x128xf32, #tpu.memory_space<vmem>>, vector<1x1x128xf32>,
    return
  }
  func.func @transform_0(%arg0: i32) -> (i32, i32, i32, i32) {
    %c0_i32 = arith.constant 0 : i32
    %c0_i32_0 = arith.constant 0 : i32
    %c0_i32_1 = arith.constant 0 : i32
    %c0_i32_2 = arith.constant 0 : i32
    return %arg0, %c0_i32, %c0_i32_0, %c0_i32_1 : i32, i32, i32, i32
  }
  func.func @transform_1(%arg0: i32) -> (i32, i32, i32) {
    %c0_i32 = arith.constant 0 : i32
    %c0_i32_0 = arith.constant 0 : i32
    %c0_i32_1 = arith.constant 0 : i32
    %c0_i32_2 = arith.constant 0 : i32
    return %c0_i32, %c0_i32_0, %c0_i32_1 : i32, i32, i32
  }
  func.func @transform_2(%arg0: i32) -> (i32, i32, i32, i32) {
    %c0_i32 = arith.constant 0 : i32
    %c0_i32_0 = arith.constant 0 : i32
    %c0_i32_1 = arith.constant 0 : i32
    %c0_i32_2 = arith.constant 0 : i32
    return %arg0, %c0_i32, %c0_i32_0, %c0_i32_1 : i32, i32, i32, i32
  }
  func.func @transform_3(%arg0: i32) -> (i32, i32, i32) {
    %c0_i32 = arith.constant 0 : i32
    %c0_i32_0 = arith.constant 0 : i32
    %c0_i32_1 = arith.constant 0 : i32
    return %arg0, %c0_i32, %c0_i32_0 : i32, i32, i32
  }
}

module attributes {stable_mosaic.version = 11 : i64} {
  func.func @_bn_apply_add_relu_kernel(%arg0: i32, %arg1: i32, %arg2: memref<8x128xf32, #tpu.memory_space<vmem>>, %arg3: memref<8x128xbf16, #tpu.memory_space<vmem>>, %arg4: memref<8x128xbf16, #tpu.memory_space<vmem>>, %arg5: memref<8x128xbf16, #tpu.memory_space<vmem>>) attributes {dimension_semantics = [#tpu.dimension_semantics<parallel>, #tpu.dimension_semantics<parallel>], iteration_bounds = array<i64: 1, 1>, scalar_prefetch = 0 : i64, scratch_operands = 0 : i64, tpu.core_type = #tpu.core_type<tc>, window_params = [{transform_indices = @transform_0, window_bounds = array<i64: 8, 128>}, {transform_indices = @transform_1, window_bounds = array<i64: 8, 128>}, {transform_indices = @transform_2, window_bounds = array<i64: 8, 128>}, {transform_indices = @transform_3, window_bounds = array<i64: 8, 128>}]} {
    %c0 = arith.constant 0 : index
    %c0_0 = arith.constant 0 : index
    %0 = vector.load %arg2[%c0, %c0_0] : memref<8x128xf32, #tpu.memory_space<vmem>>, vector<8x128xf32>
    %1 = vector.extract_strided_slice %0 {offsets = [0, 0], sizes = [1, 128], strides = [1, 1]} : vector<8x128xf32> to vector<1x128xf32>
    %cst = arith.constant 1.250000e-01 : f32
    %2 = vector.broadcast %cst : f32 to vector<1x128xf32>
    %3 = arith.mulf %1, %2 : vector<1x128xf32>
    %4 = vector.extract_strided_slice %0 {offsets = [1, 0], sizes = [1, 128], strides = [1, 1]} : vector<8x128xf32> to vector<1x128xf32>
    %cst_1 = arith.constant 1.250000e-01 : f32
    %5 = vector.broadcast %cst_1 : f32 to vector<1x128xf32>
    %6 = arith.mulf %4, %5 : vector<1x128xf32>
    %7 = arith.mulf %3, %3 : vector<1x128xf32>
    %8 = arith.subf %6, %7 : vector<1x128xf32>
    %cst_2 = arith.constant 0.000000e+00 : f32
    %9 = vector.broadcast %cst_2 : f32 to vector<1x128xf32>
    %10 = arith.maximumf %8, %9 : vector<1x128xf32>
    %cst_3 = arith.constant 9.99999974E-6 : f32
    %11 = vector.broadcast %cst_3 : f32 to vector<1x128xf32>
    %12 = arith.addf %10, %11 : vector<1x128xf32>
    %13 = math.rsqrt %12 : vector<1x128xf32>
    %14 = vector.extract_strided_slice %0 {offsets = [2, 0], sizes = [1, 128], strides = [1, 1]} : vector<8x128xf32> to vector<1x128xf32>
    %15 = arith.mulf %14, %13 : vector<1x128xf32>
    %16 = vector.extract_strided_slice %0 {offsets = [3, 0], sizes = [1, 128], strides = [1, 1]} : vector<8x128xf32> to vector<1x128xf32>
    %17 = arith.mulf %3, %15 : vector<1x128xf32>
    %18 = arith.subf %16, %17 : vector<1x128xf32>
    %c0_4 = arith.constant 0 : index
    %c0_5 = arith.constant 0 : index
    %19 = vector.load %arg3[%c0_4, %c0_5] : memref<8x128xbf16, #tpu.memory_space<vmem>>, vector<8x128xbf16>
    %20 = arith.extf %19 : vector<8x128xbf16> to vector<8x128xf32>
    %21 = vector.broadcast %15 : vector<1x128xf32> to vector<8x128xf32>
    %22 = arith.mulf %20, %21 : vector<8x128xf32>
    %23 = vector.broadcast %18 : vector<1x128xf32> to vector<8x128xf32>
    %24 = arith.addf %22, %23 : vector<8x128xf32>
    %c0_6 = arith.constant 0 : index
    %c0_7 = arith.constant 0 : index
    %25 = vector.load %arg4[%c0_6, %c0_7] : memref<8x128xbf16, #tpu.memory_space<vmem>>, vector<8x128xbf16>
    %26 = arith.extf %25 : vector<8x128xbf16> to vector<8x128xf32>
    %27 = arith.addf %24, %26 : vector<8x128xf32>
    %cst_8 = arith.constant 0.000000e+00 : f32
    %28 = vector.broadcast %cst_8 : f32 to vector<8x128xf32>
    %29 = arith.maximumf %27, %28 : vector<8x128xf32>
    %30 = arith.truncf %29 : vector<8x128xf32> to vector<8x128xbf16>
    %c0_9 = arith.constant 0 : index
    %c0_10 = arith.constant 0 : index
    %31 = vector.load %arg5[%c0_9, %c0_10] : memref<8x128xbf16, #tpu.memory_space<vmem>>, vector<8x128xbf16>
    tpu.vector_store %arg5[%c0_9, %c0_10], %30 {strides = array<i32>} : memref<8x128xbf16, #tpu.memory_space<vmem>>, vector<8x128xbf16>,
    return
  }
  func.func @transform_0(%arg0: i32, %arg1: i32) -> (i32, i32) {
    %c0_i32 = arith.constant 0 : i32
    %c0_i32_0 = arith.constant 0 : i32
    return %c0_i32, %arg0 : i32, i32
  }
  func.func @transform_1(%arg0: i32, %arg1: i32) -> (i32, i32) {
    %c0_i32 = arith.constant 0 : i32
    return %arg1, %arg0 : i32, i32
  }
  func.func @transform_2(%arg0: i32, %arg1: i32) -> (i32, i32) {
    %c0_i32 = arith.constant 0 : i32
    return %arg1, %arg0 : i32, i32
  }
  func.func @transform_3(%arg0: i32, %arg1: i32) -> (i32, i32) {
    %c0_i32 = arith.constant 0 : i32
    return %arg1, %arg0 : i32, i32
  }
}

module attributes {stable_mosaic.version = 11 : i64} {
  func.func @_gap_head_kernel(%arg0: i32, %arg1: memref<4x8x128xbf16, #tpu.memory_space<vmem>>, %arg2: memref<128x128xf32, #tpu.memory_space<vmem>>, %arg3: memref<1x128xf32, #tpu.memory_space<vmem>>, %arg4: memref<8x128xf32, #tpu.memory_space<vmem>>) attributes {dimension_semantics = [#tpu.dimension_semantics<parallel>], iteration_bounds = array<i64: 1>, scalar_prefetch = 0 : i64, scratch_operands = 0 : i64, tpu.core_type = #tpu.core_type<tc>, window_params = [{transform_indices = @transform_0, window_bounds = array<i64: 4, 8, 128>}, {pipeline_mode = #tpu.pipeline_mode<synchronous>, transform_indices = @transform_1, window_bounds = array<i64: 128, 128>}, {pipeline_mode = #tpu.pipeline_mode<synchronous>, transform_indices = @transform_2, window_bounds = array<i64: 1, 128>}, {transform_indices = @transform_3, window_bounds = array<i64: 8, 128>}]} {
    %c0 = arith.constant 0 : index
    %c0_0 = arith.constant 0 : index
    %c0_1 = arith.constant 0 : index
    %0 = vector.load %arg1[%c0, %c0_0, %c0_1] : memref<4x8x128xbf16, #tpu.memory_space<vmem>>, vector<4x8x128xbf16>
    %1 = arith.extf %0 : vector<4x8x128xbf16> to vector<4x8x128xf32>
    %cst = arith.constant dense<0.000000e+00> : vector<8x128xf32>
    %2 = vector.multi_reduction <add>, %1, %cst [0] : vector<4x8x128xf32> to vector<8x128xf32>
    %cst_2 = arith.constant 2.500000e-01 : f32
    %3 = vector.broadcast %cst_2 : f32 to vector<8x128xf32>
    %4 = arith.mulf %2, %3 : vector<8x128xf32>
    %c0_3 = arith.constant 0 : index
    %c0_4 = arith.constant 0 : index
    %5 = vector.load %arg2[%c0_3, %c0_4] : memref<128x128xf32, #tpu.memory_space<vmem>>, vector<128x128xf32>
    %cst_5 = arith.constant dense<0.000000e+00> : vector<8x128xf32>
    %6 = tpu.matmul %4, %5, %cst_5 {dimension_numbers = #tpu.dot_dimension_numbers<[1], [0], [0], [1], [0, 0, 1, 1], [], []>} : vector<8x128xf32>, vector<128x128xf32>, vector<8x128xf32> -> vector<8x128xf32>
    %c0_6 = arith.constant 0 : index
    %c0_7 = arith.constant 0 : index
    %7 = vector.load %arg3[%c0_6, %c0_7] : memref<1x128xf32, #tpu.memory_space<vmem>>, vector<1x128xf32>
    %8 = vector.broadcast %7 : vector<1x128xf32> to vector<8x128xf32>
    %9 = arith.addf %6, %8 : vector<8x128xf32>
    %c0_8 = arith.constant 0 : index
    %c0_9 = arith.constant 0 : index
    %10 = vector.load %arg4[%c0_8, %c0_9] : memref<8x128xf32, #tpu.memory_space<vmem>>, vector<8x128xf32>
    tpu.vector_store %arg4[%c0_8, %c0_9], %9 {strides = array<i32>} : memref<8x128xf32, #tpu.memory_space<vmem>>, vector<8x128xf32>,
    return
  }
  func.func @transform_0(%arg0: i32) -> (i32, i32, i32) {
    %c0_i32 = arith.constant 0 : i32
    %c0_i32_0 = arith.constant 0 : i32
    %c0_i32_1 = arith.constant 0 : i32
    return %c0_i32, %arg0, %c0_i32_0 : i32, i32, i32
  }
  func.func @transform_1(%arg0: i32) -> (i32, i32) {
    %c0_i32 = arith.constant 0 : i32
    %c0_i32_0 = arith.constant 0 : i32
    %c0_i32_1 = arith.constant 0 : i32
    return %c0_i32, %c0_i32_0 : i32, i32
  }
  func.func @transform_2(%arg0: i32) -> (i32, i32) {
    %c0_i32 = arith.constant 0 : i32
    %c0_i32_0 = arith.constant 0 : i32
    %c0_i32_1 = arith.constant 0 : i32
    return %c0_i32, %c0_i32_0 : i32, i32
  }
  func.func @transform_3(%arg0: i32) -> (i32, i32) {
    %c0_i32 = arith.constant 0 : i32
    %c0_i32_0 = arith.constant 0 : i32
    return %arg0, %c0_i32 : i32, i32
  }
}

</mosaic_0001>

<bundles_post_ra>
// kernel: resnet_forward.13
= control target key start
LH: loop header
LB: loop body
LE: loop exit
PB: predicated region body
PF: predicated region fallthrough
CT: control target
= control target key end

     0   :  { %v269_v15 = vmov 0   ;;  %s372_s0 = inlined_call_operand.vmem [shape: f32[8,128], index: 0, kind: input, shape index: {}]   ;;  %s373_s1 = inlined_call_operand.vmem [shape: bf16[128,128], index: 1, kind: input, shape index: {}]   ;;  %s374_s2 = inlined_call_operand.vmem [shape: bf16[128,128], index: 2, kind: output, shape index: {}]  }
   0x1   :  { %v11_v0 = vld [vmem:[%s372_s0] sm:$0xff]  ;;  %v252_v19 = vld [vmem:[%s373_s1 + $0x8] sm:$0xff]   ;;  %v253_v20 = vld [vmem:[%s373_s1 + $0x10] sm:$0xff]  }
   0x2   :  { %v12_v1 = vmul.f32 0.0078125, %v11_v0  ;;  %vm108_vm3 = vcmp.gt.f32.partialorder %v11_v0, 0.5  ;;  %v181_v17 = vld [vmem:[%s373_s1] sm:$0xff]   ;;  %v254_v22 = vld [vmem:[%s373_s1 + $0x18] sm:$0xff]   ;;  %v256_v27 = vld [vmem:[%s373_s1 + $0x28] sm:$0xff]   ;;  %v186_v29 = vunpack.c.l.bf16 %v252_v19  ;;  %v187_v30 = vunpack.c.h.bf16 %v252_v19 }
   0x3   :  { %v125_v16 = vsel %vm108_vm3, 1, %v269_v15  ;;  %v182_v24 = vunpack.c.l.bf16 %v181_v17  ;;  %v183_v25 = vunpack.c.h.bf16 %v181_v17  ;;  %v255_v26 = vld [vmem:[%s373_s1 + $0x20] sm:$0xff]   ;;  %v190_v31 = vunpack.c.l.bf16 %v253_v20  ;;  %v257_v32 = vld [vmem:[%s373_s1 + $0x30] sm:$0xff]   ;;  %v258_v37 = vld [vmem:[%s373_s1 + $0x38] sm:$0xff]  }
   0x4   :  { %v13_v2 = vmul.f32 %v12_v1, %v12_v1  ;;  %v126_v21 = vperm.slane %v125_v16, 4  ;;  %v191_v34 = vunpack.c.h.bf16 %v253_v20  ;;  %v194_v35 = vunpack.c.l.bf16 %v254_v22 }
   0x5   :  { %v195_v36 = vunpack.c.h.bf16 %v254_v22  ;;  %v198_v39 = vunpack.c.l.bf16 %v255_v26  ;;  %v199_v40 = vunpack.c.h.bf16 %v255_v26  ;;  %v202_v41 = vunpack.c.l.bf16 %v256_v27 }
   0x6   :  { %v15_v3 = vrot.slane %v13_v2, 7  ;;  %vm312_vm4 = vcmp.eq.s32.totalorder %v126_v21, 1  ;;  %v203_v43 = vunpack.c.h.bf16 %v256_v27  ;;  %v206_v44 = vunpack.c.l.bf16 %v257_v32 }
   0x7   :  { %v207_v45 = vunpack.c.h.bf16 %v257_v32  ;;  %v210_v48 = vunpack.c.l.bf16 %v258_v37  ;;  %v211_v49 = vunpack.c.h.bf16 %v258_v37 }
   0x8   :  { %v17_v4 = vsub.f32 %v12_v1, %v15_v3 }
   0xa   :  { %v18_v5 = vmax.f32 %v17_v4, 0.0 }
   0xc   :  { %v19_v6 = vadd.f32 1e-05, %v18_v5 }
   0xe   :  { %267 = vrsqrt.f32 %v19_v6  ;;  %vm26_vm0 = vweird.f32 %v19_v6 }
  0x14   :  { %v268_v7 = vpop.eup %267 }
  0x15   :  { %v21_v8 = vmul.f32 %v268_v7, %v19_v6  ;;  %vm27_vm1 = vweird.f32 %v268_v7 }
  0x16   :  { %vm28_vm2 = vmor %vm26_vm0, %vm27_vm1 }
  0x17   :  { %v22_v9 = vmul.f32 %v268_v7, %v21_v8 }
  0x19   :  { %v23_v10 = vmul.f32 0.5, %v22_v9 }
  0x1b   :  { %v24_v11 = vsub.f32 1.5, %v23_v10 }
  0x1d   :  { %v25_v12 = vmul.f32 %v268_v7, %v24_v11 }
  0x1f   :  { %v29_v13 = vsel %vm28_vm2, %v268_v7, %v25_v12 }
  0x20   :  { %v31_v14 = vrot.slane %v29_v13, 7 }
  0x22   :  { %v33_v18 = vmul.f32 %v31_v14, %v11_v0 }
  0x24   :  { %v35_v23 = vrot.slane %v33_v18, 2  ;;  %v74_v28 = vperm.slane %v33_v18, 2 }
  0x26   :  { %v37_v33 = vmul.f32 %v35_v23, %v12_v1  ;;  %v75_v46 = vmul.f32 %v182_v24, %v74_v28  ;;  %v76_v47 = vmul.f32 %v183_v25, %v74_v28  ;;  %v77_v51 = vmul.f32 %v186_v29, %v74_v28 }
  0x27   :  { %v78_v52 = vmul.f32 %v187_v30, %v74_v28  ;;  %v79_v53 = vmul.f32 %v190_v31, %v74_v28  ;;  %v80_v54 = vmul.f32 %v191_v34, %v74_v28  ;;  %v81_v55 = vmul.f32 %v194_v35, %v74_v28 }
  0x28   :  { %v39_v42 = vrot.slane %v37_v33, 5  ;;  %v82_v56 = vmul.f32 %v195_v36, %v74_v28  ;;  %v83_v57 = vmul.f32 %v198_v39, %v74_v28  ;;  %v84_v59 = vmul.f32 %v199_v40, %v74_v28 }
  0x29   :  { %v85_v60 = vmul.f32 %v202_v41, %v74_v28  ;;  %v86_v61 = vmul.f32 %v203_v43, %v74_v28  ;;  %v87_v62 = vmul.f32 %v206_v44, %v74_v28  ;;  %v88_v63 = vmul.f32 %v207_v45, %v74_v28 }
  0x2a   :  { %v41_v50 = vsub.f32 %v11_v0, %v39_v42  ;;  %v89_v1 = vmul.f32 %v210_v48, %v74_v28  ;;  %v90_v2 = vmul.f32 %v211_v49, %v74_v28 }
  0x2c   :  { %v91_v58 = vperm.slane %v41_v50, 3 }
  0x2e   :  { %v92_v3 = vadd.f32 %v91_v58, %v75_v46  ;;  %v93_v4 = vadd.f32 %v91_v58, %v76_v47  ;;  %v94_v5 = vadd.f32 %v91_v58, %v77_v51  ;;  %v95_v6 = vadd.f32 %v91_v58, %v78_v52 }
  0x2f   :  { %v96_v0 = vadd.f32 %v91_v58, %v79_v53  ;;  %v97_v7 = vadd.f32 %v91_v58, %v80_v54  ;;  %v98_v8 = vadd.f32 %v91_v58, %v81_v55  ;;  %v99_v9 = vadd.f32 %v91_v58, %v82_v56 }
  0x30   :  { %v109_v10 = vmax.f32 %v92_v3, 0.0  ;;  %v110_v11 = vmax.f32 %v93_v4, 0.0  ;;  %v111_v12 = vmax.f32 %v94_v5, 0.0  ;;  %v112_v13 = vmax.f32 %v95_v6, 0.0 }
  0x31   :  { %v113_v14 = vmax.f32 %v96_v0, 0.0  ;;  %v114_v15 = vmax.f32 %v97_v7, 0.0  ;;  %v115_v16 = vmax.f32 %v98_v8, 0.0  ;;  %v116_v17 = vmax.f32 %v99_v9, 0.0 }
  0x32   :  { %v128_v18 = vsel %vm312_vm4, %v109_v10, %v92_v3  ;;  %v129_v19 = vsel %vm312_vm4, %v110_v11, %v93_v4  ;;  %v130_v20 = vsel %vm312_vm4, %v111_v12, %v94_v5  ;;  %v131_v21 = vsel %vm312_vm4, %v112_v13, %v95_v6 }
  0x33   :  { %v215_v22 = vpack.c.bf16 %v129_v19, %v128_v18  ;;  %v220_v23 = vpack.c.bf16 %v131_v21, %v130_v20  ;;  %v132_v24 = vsel %vm312_vm4, %v113_v14, %v96_v0  ;;  %v133_v25 = vsel %vm312_vm4, %v114_v15, %v97_v7 }
  0x34   :  { %v225_v26 = vpack.c.bf16 %v133_v25, %v132_v24  ;;  %v134_v27 = vsel %vm312_vm4, %v115_v16, %v98_v8  ;;  %v135_v28 = vsel %vm312_vm4, %v116_v17, %v99_v9  ;;  %v100_v29 = vadd.f32 %v91_v58, %v83_v57 }
  0x35   :  { %216 = vst [vmem:[%s374_s2] sm:$0xff] %v215_v22   ;;  %v230_v30 = vpack.c.bf16 %v135_v28, %v134_v27  ;;  %v101_v31 = vadd.f32 %v91_v58, %v84_v59  ;;  %v102_v32 = vadd.f32 %v91_v58, %v85_v60  ;;  %v103_v33 = vadd.f32 %v91_v58, %v86_v61 }
  0x36   :  { %259 = vst [vmem:[%s374_s2 + $0x8] sm:$0xff] %v220_v23   ;;  %v117_v34 = vmax.f32 %v100_v29, 0.0  ;;  %v104_v35 = vadd.f32 %v91_v58, %v87_v62  ;;  %v105_v36 = vadd.f32 %v91_v58, %v88_v63  ;;  %v106_v37 = vadd.f32 %v91_v58, %v89_v1 }
  0x37   :  { %260 = vst [vmem:[%s374_s2 + $0x10] sm:$0xff] %v225_v26   ;;  %v118_v39 = vmax.f32 %v101_v31, 0.0  ;;  %v119_v40 = vmax.f32 %v102_v32, 0.0  ;;  %v120_v41 = vmax.f32 %v103_v33, 0.0  ;;  %v107_v42 = vadd.f32 %v91_v58, %v90_v2 }
  0x38   :  { %261 = vst [vmem:[%s374_s2 + $0x18] sm:$0xff] %v230_v30   ;;  %v136_v43 = vsel %vm312_vm4, %v117_v34, %v100_v29  ;;  %v121_v44 = vmax.f32 %v104_v35, 0.0  ;;  %v122_v45 = vmax.f32 %v105_v36, 0.0  ;;  %v123_v46 = vmax.f32 %v106_v37, 0.0 }
  0x39   :  { %v137_v47 = vsel %vm312_vm4, %v118_v39, %v101_v31  ;;  %v138_v48 = vsel %vm312_vm4, %v119_v40, %v102_v32  ;;  %v139_v49 = vsel %vm312_vm4, %v120_v41, %v103_v33  ;;  %v124_v50 = vmax.f32 %v107_v42, 0.0 }
  0x3a   :  { %v235_v51 = vpack.c.bf16 %v137_v47, %v136_v43  ;;  %v240_v52 = vpack.c.bf16 %v139_v49, %v138_v48  ;;  %v140_v53 = vsel %vm312_vm4, %v121_v44, %v104_v35  ;;  %v141_v54 = vsel %vm312_vm4, %v122_v45, %v105_v36 }
  0x3b   :  { %v245_v55 = vpack.c.bf16 %v141_v54, %v140_v53  ;;  %v142_v56 = vsel %vm312_vm4, %v123_v46, %v106_v37  ;;  %v143_v57 = vsel %vm312_vm4, %v124_v50, %v107_v42 }
  0x3c   :  { %262 = vst [vmem:[%s374_s2 + $0x20] sm:$0xff] %v235_v51   ;;  %v250_v58 = vpack.c.bf16 %v143_v57, %v142_v56 }
  0x3d   :  { %263 = vst [vmem:[%s374_s2 + $0x28] sm:$0xff] %v240_v52  }
  0x3e   :  { %264 = vst [vmem:[%s374_s2 + $0x30] sm:$0xff] %v245_v55  }
  0x3f   :  { %265 = vst [vmem:[%s374_s2 + $0x38] sm:$0xff] %v250_v58  }

// kernel: resnet_forward.14
= control target key start
LH: loop header
LB: loop body
LE: loop exit
PB: predicated region body
PF: predicated region fallthrough
CT: control target
= control target key end

     0   :  { %s397_s6 = smov 0   ;;  %s468_s0 = inlined_call_operand.vmem [shape: bf16[8,5,5,128], index: 0, kind: input, shape index: {}]   ;;  %s469_s1 = inlined_call_operand.vmem [shape: bf16[2,4,4,128], index: 1, kind: output, shape index: {}]  }
   0x1 LB: > { %s403_s7 = sadd.s32 4294967295, %s385_s6   ;;  %p334_p0 = scmp.ge.s32.totalorder %s385_s6, 1  ;;  %s385_s6 = sphi %s397_s6, %s11_s6  }
   0x2   : > { %p89_p1 = scmp.lt.s32.totalorder %s385_s6, 3 }
   0x4   : > { %p90_p2 = pnand %p334_p0, %p89_p1 }
   0x5   : > { %s335_s8 = sshll.u32 (!%p90_p2), %s403_s7, 2  ;;  %p117_p4 = scmp.lt.s32.totalorder (!%p90_p2), %s403_s7, 1 }
   0x6   : > { %93 = sbr.rel (%p90_p2) target bundleno = 48 (0x30), region = 24  ;;  %p111_p3 = scmp.lt.s32.totalorder (!%p90_p2), %s335_s8, 7 }
   0xb   : > { %s471_s8 = smov (!%p111_p3, %s335_s8), 7  ;;  %s473_s7 = smov (!%p117_p4, %s403_s7), 1 }
   0xc   : > { %s370_s9 = smul.u32 20, %s471_s8  ;;  %s369_s13 = sshll.u32 %s473_s7, 3 }
   0xd   : > { %s456_s16 = scalar_lea.vmem %s469_s1, %s369_s13 }
   0xe   : > { %s411_s12 = scalar_lea.vmem %s468_s0, %s370_s9 }
   0xf   : > { %v122_v0 = vld [vmem:[%s411_s12] sm:$0x3]  ;;  %v339_v1 = vld [vmem:[%s411_s12 + $0x14] sm:$0x3]  ;;  %v343_v6 = vld [vmem:[%s411_s12 + $0x28] sm:$0x3] }
  0x10   : > { %v143_v2 = vld [vmem:[%s411_s12] sm:$0x7]  ;;  %v126_v3 = vunpack.c.l.bf16 %v122_v0  ;;  %v135_v4 = vunpack.c.l.bf16 %v339_v1  ;;  %v351_v7 = vld [vmem:[%s411_s12 + $0x28] sm:$0x7]  ;;  %v347_v8 = vld [vmem:[%s411_s12 + $0x3c] sm:$0x3]  ;;  %v172_v12 = vunpack.c.l.bf16 %v343_v6 }
  0x11   : > { %v147_v5 = vunpack.c.l.bf16 %v143_v2  ;;  %v355_v9 = vld [vmem:[%s411_s12 + $0x4] sm:$0x3]  ;;  %v197_v13 = vunpack.c.l.bf16 %v351_v7  ;;  %v340_v15 = vld [vmem:[%s411_s12 + $0x18] sm:$0x3]  ;;  %v344_v19 = vld [vmem:[%s411_s12 + $0x2c] sm:$0x3]  ;;  %v185_v21 = vunpack.c.l.bf16 %v347_v8 }
  0x12   : > { %v139_v10 = vmax.f32 %v126_v3, %v135_v4  ;;  %v123_v14 = vld [vmem:[%s411_s12 + $0x4] sm:$0x3]  ;;  %v136_v17 = vunpack.c.l.bf16 %v340_v15  ;;  %v359_v22 = vld [vmem:[%s411_s12 + $0x18] sm:$0x3]  ;;  %v352_v25 = vld [vmem:[%s411_s12 + $0x2c] sm:$0x7]  ;;  %v222_v26 = vunpack.c.l.bf16 %v355_v9  ;;  %v173_v34 = vunpack.c.l.bf16 %v344_v19 }
  0x13   : > { %v155_v11 = vrot.slane %v147_v5, 1  ;;  %v127_v16 = vunpack.c.l.bf16 %v123_v14  ;;  %v144_v18 = vld [vmem:[%s411_s12 + $0x4] sm:$0x7]  ;;  %v348_v28 = vld [vmem:[%s411_s12 + $0x40] sm:$0x3]  ;;  %v198_v29 = vunpack.c.l.bf16 %v352_v25  ;;  %v205_v32 = vrot.slane %v197_v13, 1 }
  0x14   : > { %v363_v23 = vld [vmem:[%s411_s12 + $0x4] sm:$0x7]  ;;  %v148_v24 = vunpack.c.l.bf16 %v144_v18  ;;  %v364_v30 = vld [vmem:[%s411_s12 + $0x8] sm:$0x7]  ;;  %v341_v36 = vld [vmem:[%s411_s12 + $0x1c] sm:$0x3]  ;;  %v235_v37 = vunpack.c.l.bf16 %v359_v22  ;;  %v186_v45 = vunpack.c.l.bf16 %v348_v28 }
  0x15   : > { %v163_v20 = vmax.f32 %v139_v10, %v155_v11  ;;  %v140_v27 = vmax.f32 %v127_v16, %v136_v17  ;;  %v124_v35 = vld [vmem:[%s411_s12 + $0x8] sm:$0x3]  ;;  %v247_v38 = vunpack.c.l.bf16 %v363_v23  ;;  %v137_v40 = vunpack.c.l.bf16 %v341_v36  ;;  %v345_v42 = vld [vmem:[%s411_s12 + $0x30] sm:$0x3]  ;;  %v349_v48 = vld [vmem:[%s411_s12 + $0x44] sm:$0x3] }
  0x16   : > { %v156_v33 = vrot.slane %v148_v24, 1  ;;  %v128_v39 = vunpack.c.l.bf16 %v124_v35  ;;  %v145_v41 = vld [vmem:[%s411_s12 + $0x8] sm:$0x7]  ;;  %v353_v49 = vld [vmem:[%s411_s12 + $0x30] sm:$0x7]  ;;  %v206_v50 = vrot.slane %v198_v29, 1  ;;  %v248_v52 = vunpack.c.l.bf16 %v364_v30 }
  0x17   : > { %v176_v31 = vmax.f32 %v163_v20, %v172_v12  ;;  %v356_v46 = vld [vmem:[%s411_s12 + $0x8] sm:$0x3]  ;;  %v149_v47 = vunpack.c.l.bf16 %v145_v41  ;;  %v360_v51 = vld [vmem:[%s411_s12 + $0x1c] sm:$0x3]  ;;  %v199_v54 = vunpack.c.l.bf16 %v353_v49  ;;  %v174_v58 = vunpack.c.l.bf16 %v345_v42  ;;  %v125_v59 = vld [vmem:[%s411_s12 + $0xc] sm:$0x3] }
  0x18   : > { %v164_v44 = vmax.f32 %v140_v27, %v156_v33  ;;  %v141_v53 = vmax.f32 %v128_v39, %v137_v40  ;;  %v342_v60 = vld [vmem:[%s411_s12 + $0x20] sm:$0x3]  ;;  %v255_v61 = vrot.slane %v247_v38, 1  ;;  %v223_v62 = vunpack.c.l.bf16 %v356_v46  ;;  %v146_v1 = vld [vmem:[%s411_s12 + $0xc] sm:$0x7] }
  0x19   : > { %v189_v43 = vmax.f32 %v176_v31, %v185_v21  ;;  %v157_v57 = vrot.slane %v149_v47, 1  ;;  %v187_v63 = vunpack.c.l.bf16 %v349_v48  ;;  %v129_v0 = vunpack.c.l.bf16 %v125_v59  ;;  %v357_v5 = vld [vmem:[%s411_s12 + $0xc] sm:$0x3]  ;;  %v346_v7 = vld [vmem:[%s411_s12 + $0x34] sm:$0x3] }
  0x1a   : > { %v177_v56 = vmax.f32 %v164_v44, %v173_v34  ;;  %v138_v6 = vunpack.c.l.bf16 %v342_v60  ;;  %v354_v8 = vld [vmem:[%s411_s12 + $0x34] sm:$0x7]  ;;  %v236_v9 = vunpack.c.l.bf16 %v360_v51  ;;  %v256_v10 = vrot.slane %v248_v52, 1  ;;  %v365_v12 = vld [vmem:[%s411_s12 + $0xc] sm:$0x7] }
  0x1b   : > { %v213_v55 = vmax.f32 %v189_v43, %v205_v32  ;;  %v165_v4 = vmax.f32 %v141_v53, %v157_v57  ;;  %v207_v11 = vrot.slane %v199_v54, 1  ;;  %v150_v13 = vunpack.c.l.bf16 %v146_v1  ;;  %v350_v18 = vld [vmem:[%s411_s12 + $0x48] sm:$0x3]  ;;  %v361_v20 = vld [vmem:[%s411_s12 + $0x20] sm:$0x3] }
  0x1c   : > { %v190_v3 = vmax.f32 %v177_v56, %v186_v45  ;;  %v142_v17 = vmax.f32 %v129_v0, %v138_v6  ;;  %v224_v19 = vunpack.c.l.bf16 %v357_v5  ;;  %v175_v22 = vunpack.c.l.bf16 %v346_v7  ;;  %v358_v34 = vld [vmem:[%s411_s12 + $0x10] sm:$0x3]  ;;  %v362_v41 = vld [vmem:[%s411_s12 + $0x24] sm:$0x3] }
  0x1d   : > { %v226_v2 = vmax.f32 %v213_v55, %v222_v26  ;;  %v178_v16 = vmax.f32 %v165_v4, %v174_v58  ;;  %v158_v21 = vrot.slane %v150_v13, 1  ;;  %v200_v23 = vunpack.c.l.bf16 %v354_v8  ;;  %v366_v35 = vld [vmem:[%s411_s12 + $0x10] sm:$0x7] }
  0x1e   : > { %v214_v15 = vmax.f32 %v190_v3, %v206_v50  ;;  %v249_v27 = vunpack.c.l.bf16 %v365_v12  ;;  %v188_v29 = vunpack.c.l.bf16 %v350_v18  ;;  %v237_v33 = vunpack.c.l.bf16 %v361_v20 }
  0x1f   : > { %v239_v14 = vmax.f32 %v226_v2, %v235_v37  ;;  %v191_v26 = vmax.f32 %v178_v16, %v187_v63  ;;  %v166_v28 = vmax.f32 %v142_v17, %v158_v21  ;;  %v208_v37 = vrot.slane %v200_v23, 1 }
  0x20   : > { %v227_v25 = vmax.f32 %v214_v15, %v223_v62  ;;  %v257_v40 = vrot.slane %v249_v27, 1  ;;  %v225_v43 = vunpack.c.l.bf16 %v358_v34  ;;  %v250_v44 = vunpack.c.l.bf16 %v366_v35 }
  0x21   : > { %v263_v24 = vmax.f32 %v239_v14, %v255_v61  ;;  %v215_v32 = vmax.f32 %v191_v26, %v207_v11  ;;  %v179_v36 = vmax.f32 %v166_v28, %v175_v22  ;;  %v238_v48 = vunpack.c.l.bf16 %v362_v41 }
  0x22   : > { %v240_v31 = vmax.f32 %v227_v25, %v236_v9  ;;  %v258_v51 = vrot.slane %v250_v44, 1 }
  0x23   : > { %v267_v30 = vpack.c.bf16 %v263_v24, %v263_v24  ;;  %v228_v39 = vmax.f32 %v215_v32, %v224_v19  ;;  %v192_v42 = vmax.f32 %v179_v36, %v188_v29 }
  0x24   : > { %v264_v38 = vmax.f32 %v240_v31, %v256_v10 }
  0x25   : > { %271 = vst [vmem:[%s456_s16] sm:$0x3] %v267_v30  ;;  %v241_v46 = vmax.f32 %v228_v39, %v237_v33  ;;  %v216_v47 = vmax.f32 %v192_v42, %v208_v37 }
  0x26   : > { %v268_v45 = vpack.c.bf16 %v264_v38, %v264_v38 }
  0x27   : > { %v265_v49 = vmax.f32 %v241_v46, %v257_v40  ;;  %v229_v50 = vmax.f32 %v216_v47, %v225_v43 }
  0x28   : > { %272 = vst [vmem:[%s456_s16 + $0x2] sm:$0x3] %v268_v45 }
  0x29   : > { %v269_v52 = vpack.c.bf16 %v265_v49, %v265_v49  ;;  %v242_v53 = vmax.f32 %v229_v50, %v238_v48 }
  0x2b   : > { %273 = vst [vmem:[%s456_s16 + $0x4] sm:$0x3] %v269_v52  ;;  %v266_v54 = vmax.f32 %v242_v53, %v258_v51 }
  0x2d   : > { %v270_v55 = vpack.c.bf16 %v266_v54, %v266_v54 }
  0x2f   : > { %274 = vst [vmem:[%s456_s16 + $0x6] sm:$0x3] %v270_v55 }
  0x30 PF: > { %s11_s6 = sadd.s32 1, %s385_s6  }
  0x31   : > { %p8_p5 = scmp.ge.s32.totalorder %s11_s6, 4  }
  0x33   :  { %10 = sbr.rel (!%p8_p5) target bundleno = 1 (0x1), region = 59 }

// kernel: resnet_forward.16
= control target key start
LH: loop header
LB: loop body
LE: loop exit
PB: predicated region body
PF: predicated region fallthrough
CT: control target
= control target key end

     0   :  { %v63_v22 = vmov 0   ;;  %s88_s0 = inlined_call_operand.vmem [shape: f32[8,128], index: 0, kind: input, shape index: {}]   ;;  %s89_s1 = inlined_call_operand.vmem [shape: bf16[8,128], index: 1, kind: input, shape index: {}]   ;;  %s90_s2 = inlined_call_operand.vmem [shape: bf16[8,128], index: 2, kind: output, shape index: {}]  }
   0x1   :  { %v11_v0 = vld [vmem:[%s88_s0] sm:$0xff] }
   0x2   :  { %v12_v1 = vmul.f32 0.125, %v11_v0  ;;  %v42_v16 = vld [vmem:[%s89_s1] sm:$0xf]  ;;  %vm48_vm3 = vcmp.gt.f32.partialorder %v11_v0, 0.5 }
   0x3   :  { %v43_v19 = vunpack.c.l.bf16 %v42_v16  ;;  %v50_v23 = vsel %vm48_vm3, 1, %v63_v22 }
   0x4   :  { %v13_v2 = vmul.f32 %v12_v1, %v12_v1  ;;  %v51_v26 = vperm.slane %v50_v23, 4 }
   0x6   :  { %v15_v3 = vrot.slane %v13_v2, 7  ;;  %vm52_vm4 = vcmp.eq.s32.totalorder %v51_v26, 1 }
   0x8   :  { %v17_v4 = vsub.f32 %v12_v1, %v15_v3 }
   0xa   :  { %v18_v5 = vmax.f32 %v17_v4, 0.0 }
   0xc   :  { %v19_v6 = vadd.f32 1e-05, %v18_v5 }
   0xe   :  { %61 = vrsqrt.f32 %v19_v6  ;;  %vm26_vm0 = vweird.f32 %v19_v6 }
  0x14   :  { %v62_v7 = vpop.eup %61 }
  0x15   :  { %v21_v8 = vmul.f32 %v62_v7, %v19_v6  ;;  %vm27_vm1 = vweird.f32 %v62_v7 }
  0x16   :  { %vm28_vm2 = vmor %vm26_vm0, %vm27_vm1 }
  0x17   :  { %v22_v9 = vmul.f32 %v62_v7, %v21_v8 }
  0x19   :  { %v23_v10 = vmul.f32 0.5, %v22_v9 }
  0x1b   :  { %v24_v11 = vsub.f32 1.5, %v23_v10 }
  0x1d   :  { %v25_v12 = vmul.f32 %v62_v7, %v24_v11 }
  0x1f   :  { %v29_v13 = vsel %vm28_vm2, %v62_v7, %v25_v12 }
  0x20   :  { %v31_v14 = vrot.slane %v29_v13, 7 }
  0x22   :  { %v33_v15 = vmul.f32 %v31_v14, %v11_v0 }
  0x24   :  { %v35_v17 = vrot.slane %v33_v15, 2  ;;  %v44_v20 = vperm.slane %v33_v15, 2 }
  0x26   :  { %v37_v18 = vmul.f32 %v35_v17, %v12_v1  ;;  %v45_v25 = vmul.f32 %v44_v20, %v43_v19 }
  0x28   :  { %v39_v21 = vrot.slane %v37_v18, 5 }
  0x2a   :  { %v41_v24 = vsub.f32 %v11_v0, %v39_v21 }
  0x2c   :  { %v46_v27 = vperm.slane %v41_v24, 3 }
  0x2e   :  { %v47_v28 = vadd.f32 %v46_v27, %v45_v25 }
  0x30   :  { %v49_v29 = vmax.f32 %v47_v28, 0.0 }
  0x32   :  { %v53_v30 = vsel %vm52_vm4, %v49_v29, %v47_v28 }
  0x33   :  { %v54_v31 = vpack.c.bf16 %v53_v30, %v53_v30 }
  0x35   :  { %55 = vst [vmem:[%s90_s2] sm:$0xf] %v54_v31 }

// kernel: resnet_forward.15
= control target key start
LH: loop header
LB: loop body
LE: loop exit
PB: predicated region body
PF: predicated region fallthrough
CT: control target
= control target key end

     0   :  { %s1713_s12 = smov 0   ;;  %s2000_s0 = inlined_call_operand.vmem [shape: bf16[2,5,2,3,128], index: 0, kind: input, shape index: {}]   ;;  %s2001_s1 = inlined_call_operand.vmem [shape: bf16[9,128,128], index: 1, kind: input, shape index: {}]   ;;  %s2002_s2 = inlined_call_operand.vmem [shape: bf16[2,2,2,128], index: 2, kind: output, shape index: {0}]   ;;  %s2003_s3 = inlined_call_operand.vmem [shape: f32[2,2,128], index: 3, kind: output, shape index: {1}]  }
   0x1 LB: > { %s1099_s13 = sadd.s32 4294967295, %s1679_s12   ;;  %p1103_p0 = scmp.ge.s32.totalorder %s1679_s12, 1  ;;  %s1679_s12 = sphi %s1713_s12, %s14_s12  }
   0x2   : > { %p140_p1 = scmp.lt.s32.totalorder %s1679_s12, 3 }
   0x4   : > { %p141_p2 = pnand %p1103_p0, %p140_p1 }
   0x5   : > { %p167_p3 = scmp.lt.s32.totalorder (!%p141_p2), %s1099_s13, 1  ;;  %s1740_s25 = smov (!%p141_p2), 0  }
   0x6   : > { %144 = sbr.rel (%p141_p2) target bundleno = 257 (0x101), region = 28 }
   0xb   : > { %s2007_s13 = smov (!%p167_p3, %s1099_s13), 1  ;;  %v1736_v0 = vmov 0.0   ;;  %v1738_v1 = vmov 0.0  }
   0xc   : > { %s1628_s14 = smul.u32 20, %s2007_s13  ;;  %s1105_s15 = sshll.u32 %s2007_s13, 1 }
   0xd   : > { %s1724_s18 = scalar_lea.vmem %s2002_s2, %s1105_s15  ;;  %s1729_s21 = scalar_lea.vmem %s2003_s3, %s1105_s15 }
   0xe   : > { %s1734_s24 = scalar_lea.vmem %s2000_s0, %s1628_s14 }
   0xf LB: >> { %v1565_v2 = vld [vmem:[%s2001_s1 + $0x78] sm:$0xff]  ;;  %v1564_v6 = vld [vmem:[%s2001_s1 + $0x70] sm:$0xff]  ;;  %v1563_v10 = vld [vmem:[%s2001_s1 + $0x68] sm:$0xff]  ;;  %s1548_s28 = sshll.u32 %s1691_s25, 3  ;;  %vm959_vm0 = vcmask 1041408   ;;  %s957_s19 = scalar_lea.vmem %s1724_s18, %s1691_s25  ;;  %s1691_s25 = sphi %s1740_s25, %s185_s25   ;;  %v1687_v1 = vphi %v1738_v1, %v2005_v1   ;;  %v1683_v0 = vphi %v1736_v0, %v2004_v0  }
  0x10   : >> { %v1573_v3 = vld [vmem:[%s2001_s1 + $0xb8] sm:$0xff]  ;;  %278 = vmatpush.bf16.msra.mxu0 %v1565_v2  ;;  %v1572_v7 = vld [vmem:[%s2001_s1 + $0xb0] sm:$0xff]  ;;  %v1571_v11 = vld [vmem:[%s2001_s1 + $0xa8] sm:$0xff]  ;;  %s1801_s10 = scalar_lea.vmem %s1734_s24, %s1548_s28  ;;  %s185_s25 = sadd.s32 1, %s1691_s25  }
  0x11   : >> { %v1582_v4 = vld [vmem:[%s2001_s1 + $0xf8] sm:$0xff]  ;;  %428 = vmatpush.bf16.msra.mxu2 %v1573_v3  ;;  %v1581_v8 = vld [vmem:[%s2001_s1 + $0xf0] sm:$0xff]  ;;  %v1580_v12 = vld [vmem:[%s2001_s1 + $0xe8] sm:$0xff]  ;;  %p182_p4 = scmp.ge.s32.totalorder %s185_s25, 2  }
  0x12   : >> { %v1556_v5 = vld [vmem:[%s2001_s1 + $0x38] sm:$0xff]  ;;  %512 = vmatpush.bf16.msra.mxu3 %v1582_v4  ;;  %v1555_v9 = vld [vmem:[%s2001_s1 + $0x30] sm:$0xff]  ;;  %v1554_v13 = vld [vmem:[%s2001_s1 + $0x28] sm:$0xff] }
  0x13   : >> { %339 = vmatpush.bf16.msra.mxu1 %v1556_v5  ;;  %v1562_v14 = vld [vmem:[%s2001_s1 + $0x60] sm:$0xff]  ;;  %v1561_v18 = vld [vmem:[%s2001_s1 + $0x58] sm:$0xff]  ;;  %v1560_v23 = vld [vmem:[%s2001_s1 + $0x50] sm:$0xff] }
  0x14   : >> { %279 = vmatpush.bf16.msra.mxu0 %v1564_v6  ;;  %v1570_v15 = vld [vmem:[%s2001_s1 + $0xa0] sm:$0xff]  ;;  %v1569_v19 = vld [vmem:[%s2001_s1 + $0x98] sm:$0xff]  ;;  %v1568_v24 = vld [vmem:[%s2001_s1 + $0x90] sm:$0xff] }
  0x15   : >> { %429 = vmatpush.bf16.msra.mxu2 %v1572_v7  ;;  %v1579_v16 = vld [vmem:[%s2001_s1 + $0xe0] sm:$0xff]  ;;  %v1578_v20 = vld [vmem:[%s2001_s1 + $0xd8] sm:$0xff]  ;;  %v1577_v25 = vld [vmem:[%s2001_s1 + $0xd0] sm:$0xff] }
  0x16   : >> { %513 = vmatpush.bf16.msra.mxu3 %v1581_v8  ;;  %v1553_v17 = vld [vmem:[%s2001_s1 + $0x20] sm:$0xff]  ;;  %v1552_v21 = vld [vmem:[%s2001_s1 + $0x18] sm:$0xff]  ;;  %v1551_v26 = vld [vmem:[%s2001_s1 + $0x10] sm:$0xff] }
  0x17   : >> { %340 = vmatpush.bf16.msra.mxu1 %v1555_v9  ;;  %v352_v22 = vld [vmem:[%s1801_s10] sm:$0x3]  ;;  %v1344_v27 = vld [vmem:[%s1801_s10 + $0x4] sm:$0x3]  ;;  %v1559_v28 = vld [vmem:[%s2001_s1 + $0x48] sm:$0xff] }
  0x18   : >> { %280 = vmatpush.bf16.msra.mxu0 %v1563_v10  ;;  %371 = vst [vmem:[#allocation1] ss:$4 sm:$0xff] %v352_v22  ;;  %v1567_v29 = vld [vmem:[%s2001_s1 + $0x88] sm:$0xff]  ;;  %v1558_v34 = vld [vmem:[%s2001_s1 + $0x40] sm:$0xff]  ;;  %v1592_v38 = vld [vmem:[%s2001_s1 + $0x138] sm:$0xff] }
  0x19   : >> { %430 = vmatpush.bf16.msra.mxu2 %v1571_v11  ;;  %v1576_v30 = vld [vmem:[%s2001_s1 + $0xc8] sm:$0xff]  ;;  %v1566_v35 = vld [vmem:[%s2001_s1 + $0x80] sm:$0xff]  ;;  %v1609_v39 = vld [vmem:[%s2001_s1 + $0x1b8] sm:$0xff] }
  0x1a   : >> { %514 = vmatpush.bf16.msra.mxu3 %v1580_v12  ;;  %v1550_v31 = vld [vmem:[%s2001_s1 + $0x8] sm:$0xff]  ;;  %v1575_v40 = vld [vmem:[%s2001_s1 + $0xc0] sm:$0xff]  ;;  %v1619_v42 = vld [vmem:[%s2001_s1 + $0x1f8] sm:$0xff] }
  0x1b   : >> { %341 = vmatpush.bf16.msra.mxu1 %v1554_v13  ;;  %v1549_v41 = vld [vmem:[%s2001_s1] sm:$0xff]  ;;  %v1600_v43 = vld [vmem:[%s2001_s1 + $0x178] sm:$0xff]  ;;  %v1591_v45 = vld [vmem:[%s2001_s1 + $0x130] sm:$0xff] }
  0x1c   : >> { %281 = vmatpush.bf16.msra.mxu0 %v1562_v14  ;;  %v1608_v46 = vld [vmem:[%s2001_s1 + $0x1b0] sm:$0xff]  ;;  %v1112_v47 = vld [vmem:[%s1801_s10 + $0x2] sm:$0x1]  ;;  %v1243_v49 = vld [vmem:[%s1801_s10 + $0x4] sm:$0x1] }
  0x1d   : >> { %431 = vmatpush.bf16.msra.mxu2 %v1570_v15  ;;  %v1618_v48 = vld [vmem:[%s2001_s1 + $0x1f0] sm:$0xff]  ;;  %v192_v50 = vld [vmem:[%s1801_s10] sm:$0x1]  ;;  %v1496_v53 = vld [vmem:[%s1801_s10 + $0x8] sm:$0x3] }
  0x1e   : >> { %515 = vmatpush.bf16.msra.mxu3 %v1579_v16  ;;  %v1599_v51 = vld [vmem:[%s2001_s1 + $0x170] sm:$0xff]  ;;  %v1590_v54 = vld [vmem:[%s2001_s1 + $0x128] sm:$0xff]  ;;  %v1589_v58 = vld [vmem:[%s2001_s1 + $0x120] sm:$0xff] }
  0x1f   : >> { %342 = vmatpush.bf16.msra.mxu1 %v1553_v17  ;;  %v372_v32 = vld.sshfl [vmem:[#allocation1] sm:$0xff pattern:$0x73625140]  ;;  %v1607_v55 = vld [vmem:[%s2001_s1 + $0x1a8] sm:$0xff]  ;;  %v1588_v62 = vld [vmem:[%s2001_s1 + $0x118] sm:$0xff] }
  0x20   : >> { %282 = vmatpush.bf16.msra.mxu0 %v1561_v18  ;;  %v375_v33 = vshll.u32 %v372_v32, 16  ;;  %628 = vst [vmem:[#allocation1] ss:$4 sm:$0xff] %v1344_v27  ;;  %v373_v36 = vshrl.u32 %v372_v32, 16  ;;  %v1617_v56 = vld [vmem:[%s2001_s1 + $0x1e8] sm:$0xff]  ;;  %v1606_v59 = vld [vmem:[%s2001_s1 + $0x1a0] sm:$0xff] }
  0x21   : >> { %432 = vmatpush.bf16.msra.mxu2 %v1569_v19  ;;  %v1598_v57 = vld [vmem:[%s2001_s1 + $0x168] sm:$0xff]  ;;  %v1616_v60 = vld [vmem:[%s2001_s1 + $0x1e0] sm:$0xff]  ;;  %v1605_v63 = vld [vmem:[%s2001_s1 + $0x198] sm:$0xff] }
  0x22   : >> { %516 = vmatpush.bf16.msra.mxu3 %v1578_v20  ;;  %v377_v37 = vrot.slane %v375_v33, 1  ;;  %v1597_v61 = vld [vmem:[%s2001_s1 + $0x160] sm:$0xff]  ;;  %v1615_v2 = vld [vmem:[%s2001_s1 + $0x1d8] sm:$0xff]  ;;  %v1587_v4 = vld [vmem:[%s2001_s1 + $0x110] sm:$0xff] }
  0x23   : >> { %343 = vmatpush.bf16.msra.mxu1 %v1552_v21  ;;  %v1596_v3 = vld [vmem:[%s2001_s1 + $0x158] sm:$0xff]  ;;  %v1604_v5 = vld [vmem:[%s2001_s1 + $0x190] sm:$0xff]  ;;  %v1586_v8 = vld [vmem:[%s2001_s1 + $0x108] sm:$0xff] }
  0x24   : >> { %283 = vmatpush.bf16.msra.mxu0 %v1560_v23  ;;  %v378_v44 = vor.u32 %v377_v37, %v373_v36  ;;  %v1614_v6 = vld [vmem:[%s2001_s1 + $0x1d0] sm:$0xff]  ;;  %v1603_v9 = vld [vmem:[%s2001_s1 + $0x188] sm:$0xff]  ;;  %v1585_v13 = vld [vmem:[%s2001_s1 + $0x100] sm:$0xff] }
  0x25   : >> { %433 = vmatpush.bf16.msra.mxu2 %v1568_v24  ;;  %v1595_v7 = vld [vmem:[%s2001_s1 + $0x150] sm:$0xff]  ;;  %v1613_v10 = vld [vmem:[%s2001_s1 + $0x1c8] sm:$0xff]  ;;  %v1602_v14 = vld [vmem:[%s2001_s1 + $0x180] sm:$0xff] }
  0x26   : >> { %517 = vmatpush.bf16.msra.mxu3 %v1577_v25  ;;  %v1594_v11 = vld [vmem:[%s2001_s1 + $0x148] sm:$0xff]  ;;  %v1627_v15 = vld [vmem:[%s2001_s1 + $0x238] sm:$0xff]  ;;  %v1612_v16 = vld [vmem:[%s2001_s1 + $0x1c0] sm:$0xff] }
  0x27   : >> { %344 = vmatpush.bf16.msra.mxu1 %v1551_v26  ;;  %v1880_v52 = vld.sshfl [vmem:[#allocation1] sm:$0xff pattern:$0x73625140]  ;;  %v1395_v20 = vld [vmem:[%s1801_s10 + $0x8] sm:$0x1]  ;;  %v1626_v22 = vld [vmem:[%s2001_s1 + $0x230] sm:$0xff] }
  0x28   : >> { %284 = vmatpush.bf16.msra.mxu0 %v1559_v28  ;;  %885 = vst [vmem:[#allocation1] ss:$4 sm:$0xff] %v1496_v53  ;;  %v632_v12 = vshll.u32 %v1880_v52, 16  ;;  %v1593_v17 = vld [vmem:[%s2001_s1 + $0x140] sm:$0xff]  ;;  %v630_v18 = vshrl.u32 %v1880_v52, 16  ;;  %v1625_v25 = vld [vmem:[%s2001_s1 + $0x228] sm:$0xff] }
  0x29   : >> { %434 = vmatpush.bf16.msra.mxu2 %v1567_v29  ;;  %v1295_v21 = vld [vmem:[%s1801_s10 + $0x6] sm:$0x1]  ;;  %v1447_v23 = vld [vmem:[%s1801_s10 + $0xa] sm:$0x1]  ;;  %v1623_v27 = vld [vmem:[%s2001_s1 + $0x218] sm:$0xff] }
  0x2a   : >> { %518 = vmatpush.bf16.msra.mxu3 %v1576_v30  ;;  %v634_v19 = vrot.slane %v632_v12, 1  ;;  %v1624_v26 = vld [vmem:[%s2001_s1 + $0x220] sm:$0xff]  ;;  %v1622_v28 = vld [vmem:[%s2001_s1 + $0x210] sm:$0xff] }
  0x2b   : >> { %345 = vmatpush.bf16.msra.mxu1 %v1550_v31  ;;  %v1621_v31 = vld [vmem:[%s2001_s1 + $0x208] sm:$0xff] }
  0x2c   : >> { %285 = vmatpush.bf16.msra.mxu0 %v1558_v34  ;;  %v635_v24 = vor.u32 %v634_v19, %v630_v18  ;;  %v1620_v34 = vld [vmem:[%s2001_s1 + $0x200] sm:$0xff] }
  0x2d   : >> { %435 = vmatpush.bf16.msra.mxu2 %v1566_v35 }
  0x2e   : >> { %519 = vmatpush.bf16.msra.mxu3 %v1575_v40 }
  0x2f   : >> { %346 = vmatpush.bf16.msra.mxu1 %v1549_v41  ;;  %286 = vmatmul.bf16.vlgmr.msra.gmra.mxu0 %v1112_v47  ;;  %v886_v29 = vld.sshfl [vmem:[#allocation1] sm:$0xff pattern:$0x73625140] }
  0x30   : >> { %595 = vmatpush.bf16.msrb.mxu0 %v1592_v38  ;;  %436 = vmatmul.bf16.vlgmr.msra.gmra.mxu2 %v378_v44  ;;  %v889_v30 = vshll.u32 %v886_v29, 16  ;;  %v887_v32 = vshrl.u32 %v886_v29, 16 }
  0x31   : >> { %769 = vmatpush.bf16.msrb.mxu2 %v1609_v39  ;;  %520 = vmatmul.bf16.vlgmr.msra.gmra.mxu3 %v1243_v49 }
  0x32   : >> { %852 = vmatpush.bf16.msrb.mxu3 %v1619_v42  ;;  %347 = vmatmul.bf16.vlgmr.msra.gmra.mxu1 %v192_v50  ;;  %v891_v33 = vrot.slane %v889_v30, 1 }
  0x33   : >> { %685 = vmatpush.bf16.msrb.mxu1 %v1600_v43 }
  0x34   : >> { %596 = vmatpush.bf16.msrb.mxu0 %v1591_v45  ;;  %v892_v35 = vor.u32 %v891_v33, %v887_v32 }
  0x35   : >> { %770 = vmatpush.bf16.msrb.mxu2 %v1608_v46 }
  0x36   : >> { %853 = vmatpush.bf16.msrb.mxu3 %v1618_v48 }
  0x37   : >> { %686 = vmatpush.bf16.msrb.mxu1 %v1599_v51 }
  0x38   : >> { %597 = vmatpush.bf16.msrb.mxu0 %v1590_v54 }
  0x39   : >> { %771 = vmatpush.bf16.msrb.mxu2 %v1607_v55 }
  0x3a   : >> { %854 = vmatpush.bf16.msrb.mxu3 %v1617_v56 }
  0x3b   : >> { %687 = vmatpush.bf16.msrb.mxu1 %v1598_v57 }
  0x3c   : >> { %598 = vmatpush.bf16.msrb.mxu0 %v1589_v58 }
  0x3d   : >> { %772 = vmatpush.bf16.msrb.mxu2 %v1606_v59 }
  0x3e   : >> { %855 = vmatpush.bf16.msrb.mxu3 %v1616_v60 }
  0x3f   : >> { %688 = vmatpush.bf16.msrb.mxu1 %v1597_v61 }
  0x40   : >> { %599 = vmatpush.bf16.msrb.mxu0 %v1588_v62 }
  0x41   : >> { %773 = vmatpush.bf16.msrb.mxu2 %v1605_v63 }
  0x42   : >> { %856 = vmatpush.bf16.msrb.mxu3 %v1615_v2 }
  0x43   : >> { %689 = vmatpush.bf16.msrb.mxu1 %v1596_v3 }
  0x44   : >> { %600 = vmatpush.bf16.msrb.mxu0 %v1587_v4 }
  0x45   : >> { %774 = vmatpush.bf16.msrb.mxu2 %v1604_v5 }
  0x46   : >> { %857 = vmatpush.bf16.msrb.mxu3 %v1614_v6 }
  0x47   : >> { %690 = vmatpush.bf16.msrb.mxu1 %v1595_v7 }
  0x48   : >> { %601 = vmatpush.bf16.msrb.mxu0 %v1586_v8 }
  0x49   : >> { %775 = vmatpush.bf16.msrb.mxu2 %v1603_v9 }
  0x4a   : >> { %858 = vmatpush.bf16.msrb.mxu3 %v1613_v10 }
  0x4b   : >> { %691 = vmatpush.bf16.msrb.mxu1 %v1594_v11 }
  0x4c   : >> { %602 = vmatpush.bf16.msrb.mxu0 %v1585_v13 }
  0x4d   : >> { %776 = vmatpush.bf16.msrb.mxu2 %v1602_v14 }
  0x4e   : >> { %859 = vmatpush.bf16.msrb.mxu3 %v1612_v16 }
  0x4f   : >> { %692 = vmatpush.bf16.msrb.mxu1 %v1593_v17  ;;  %603 = vmatmul.bf16.vlgmr.msrb.gmra.mxu0 %v1295_v21 }
  0x50   : >> { %942 = vmatpush.bf16.msra.mxu0 %v1627_v15  ;;  %777 = vmatmul.bf16.vlgmr.msrb.gmra.mxu2 %v1395_v20 }
  0x51   : >> { %860 = vmatmul.bf16.vlgmr.msrb.gmra.mxu3 %v1447_v23 }
  0x52   : >> { %693 = vmatmul.bf16.vlgmr.msrb.gmra.mxu1 %v635_v24 }
  0x54   : >> { %943 = vmatpush.bf16.msra.mxu0 %v1626_v22 }
  0x58   : >> { %944 = vmatpush.bf16.msra.mxu0 %v1625_v25 }
  0x5c   : >> { %945 = vmatpush.bf16.msra.mxu0 %v1624_v26 }
  0x60   : >> { %946 = vmatpush.bf16.msra.mxu0 %v1623_v27 }
  0x64   : >> { %947 = vmatpush.bf16.msra.mxu0 %v1622_v28 }
  0x68   : >> { %948 = vmatpush.bf16.msra.mxu0 %v1621_v31 }
  0x6c   : >> { %949 = vmatpush.bf16.msra.mxu0 %v1620_v34 }
  0x6f   : >> { %950 = vmatmul.bf16.vlgmr.msra.gmra.mxu0 %v892_v35 }
  0xac   : >> { %v287_v36 = vpop.f32.mrf.mxu0 }
  0xaf   : >> { %v348_v37 = vpop.f32.mrf.mxu1 }
  0xb0   : >> { %v349_v46 = vadd.f32 %v348_v37, %v287_v36 }
  0xb3   : >> { %v437_v38 = vpop.f32.mrf.mxu2 }
  0xb4   : >> { %v521_v39 = vpop.f32.mrf.mxu3  ;;  %v289_v40 = vpop.f32.mrf.mxu0  ;;  %v441_v48 = vadd.f32 %v437_v38, %v349_v46 }
  0xb6   : >> { %v525_v52 = vadd.f32 %v521_v39, %v441_v48 }
  0xb7   : >> { %v350_v41 = vpop.f32.mrf.mxu1 }
  0xbb   : >> { %v439_v42 = vpop.f32.mrf.mxu2 }
  0xbc   : >> { %v523_v43 = vpop.f32.mrf.mxu3 }
  0xcc   : >> { %v604_v44 = vpop.f32.mrf.mxu0 }
  0xcd   : >> { %v608_v54 = vadd.f32 %v604_v44, %v525_v52 }
  0xcf   : >> { %v694_v45 = vpop.f32.mrf.mxu1 }
  0xd0   : >> { %v698_v56 = vadd.f32 %v694_v45, %v608_v54 }
  0xd3   : >> { %v778_v47 = vpop.f32.mrf.mxu2 }
  0xd4   : >> { %v861_v49 = vpop.f32.mrf.mxu3  ;;  %v606_v50 = vpop.f32.mrf.mxu0  ;;  %v782_v57 = vadd.f32 %v778_v47, %v698_v56 }
  0xd6   : >> { %v865_v58 = vadd.f32 %v861_v49, %v782_v57 }
  0xd7   : >> { %v696_v51 = vpop.f32.mrf.mxu1 }
  0xdb   : >> { %v780_v53 = vpop.f32.mrf.mxu2 }
  0xdc   : >> { %v863_v55 = vpop.f32.mrf.mxu3 }
  0xec   : >> { %v951_v59 = vpop.f32.mrf.mxu0 }
  0xed   : >> { %v955_v60 = vadd.f32 %v951_v59, %v865_v58 }
  0xef   : >> { %v956_v61 = vpack.c.bf16 %v955_v60, %v955_v60  ;;  %v960_v62 = vsel %vm959_vm0, %v955_v60, 0.0  ;;  %v968_v63 = vmul.f32 %v955_v60, %v955_v60 }
  0xf0   : >> { %v961_v2 = vrot.slane %v960_v62, 4 }
  0xf1   : >> { %958 = vst [vmem:[%s957_s19] sm:$0x1] %v956_v61  ;;  %v969_v3 = vsel %vm959_vm0, %v968_v63, 0.0 }
  0xf2   : >> { %v962_v4 = vadd.f32 %v961_v2, %v960_v62  ;;  %v970_v5 = vrot.slane %v969_v3, 4 }
  0xf4   : >> { %v963_v6 = vrot.slane %v962_v4, 2  ;;  %v971_v7 = vadd.f32 %v970_v5, %v969_v3  ;;  %v953_v8 = vpop.f32.mrf.mxu0 }
  0xf6   : >> { %v964_v9 = vadd.f32 %v963_v6, %v962_v4  ;;  %v972_v10 = vrot.slane %v971_v7, 2 }
  0xf8   : >> { %v965_v11 = vrot.slane %v964_v9, 1  ;;  %v973_v12 = vadd.f32 %v972_v10, %v971_v7 }
  0xfa   : >> { %v966_v13 = vadd.f32 %v965_v11, %v964_v9  ;;  %v974_v14 = vrot.slane %v973_v12, 1 }
  0xfc   : >> { %v967_v15 = vadd.f32 %v1687_v1, %v966_v13   ;;  %v975_v16 = vadd.f32 %v974_v14, %v973_v12  ;;  %184 = sbr.rel (!%p182_p4) target bundleno = 15 (0xf), region = 92 }
  0xfe   : >> { %v976_v17 = vadd.f32 %v1683_v0, %v975_v16   ;;  %v2005_v1 = vmov %v967_v15  ;;  %977 = vst [vmem:[%s1729_s21] sm:$0x1] (%p182_p4), %v967_v15 }
 0x100   : >> { %v2004_v0 = vmov %v976_v17  ;;  %978 = vst [vmem:[%s1729_s21 + $0x1] sm:$0x1] (%p182_p4), %v976_v17 }
 0x101 PF: > { %s14_s12 = sadd.s32 1, %s1679_s12  }
 0x102   : > { %p11_p5 = scmp.ge.s32.totalorder %s14_s12, 4  }
 0x104   :  { %13 = sbr.rel (!%p11_p5) target bundleno = 1 (0x1), region = 103 }

// kernel: resnet_forward.18
= control target key start
LH: loop header
LB: loop body
LE: loop exit
PB: predicated region body
PF: predicated region fallthrough
CT: control target
= control target key end

     0   :  { %s95_s0 = inlined_call_operand.vmem [shape: f32[8,128], index: 0, kind: input, shape index: {}]   ;;  %s96_s1 = inlined_call_operand.vmem [shape: bf16[8,128], index: 1, kind: input, shape index: {}]   ;;  %s97_s2 = inlined_call_operand.vmem [shape: bf16[8,128], index: 2, kind: input, shape index: {}]   ;;  %s98_s3 = inlined_call_operand.vmem [shape: bf16[8,128], index: 3, kind: output, shape index: {}]  }
   0x1   :  { %v14_v0 = vld [vmem:[%s95_s0] sm:$0xff] }
   0x2   :  { %v15_v1 = vmul.f32 0.125, %v14_v0  ;;  %v45_v16 = vld [vmem:[%s96_s1] sm:$0xf] }
   0x3   :  { %v46_v19 = vunpack.c.l.bf16 %v45_v16  ;;  %v51_v22 = vld [vmem:[%s97_s2] sm:$0xf] }
   0x4   :  { %v16_v2 = vmul.f32 %v15_v1, %v15_v1  ;;  %v52_v26 = vunpack.c.l.bf16 %v51_v22 }
   0x6   :  { %v18_v3 = vrot.slane %v16_v2, 7 }
   0x8   :  { %v20_v4 = vsub.f32 %v15_v1, %v18_v3 }
   0xa   :  { %v21_v5 = vmax.f32 %v20_v4, 0.0 }
   0xc   :  { %v22_v6 = vadd.f32 1e-05, %v21_v5 }
   0xe   :  { %61 = vrsqrt.f32 %v22_v6  ;;  %vm29_vm0 = vweird.f32 %v22_v6 }
  0x14   :  { %v62_v7 = vpop.eup %61 }
  0x15   :  { %v24_v8 = vmul.f32 %v62_v7, %v22_v6  ;;  %vm30_vm1 = vweird.f32 %v62_v7 }
  0x16   :  { %vm31_vm2 = vmor %vm29_vm0, %vm30_vm1 }
  0x17   :  { %v25_v9 = vmul.f32 %v62_v7, %v24_v8 }
  0x19   :  { %v26_v10 = vmul.f32 0.5, %v25_v9 }
  0x1b   :  { %v27_v11 = vsub.f32 1.5, %v26_v10 }
  0x1d   :  { %v28_v12 = vmul.f32 %v62_v7, %v27_v11 }
  0x1f   :  { %v32_v13 = vsel %vm31_vm2, %v62_v7, %v28_v12 }
  0x20   :  { %v34_v14 = vrot.slane %v32_v13, 7 }
  0x22   :  { %v36_v15 = vmul.f32 %v34_v14, %v14_v0 }
  0x24   :  { %v38_v17 = vrot.slane %v36_v15, 2  ;;  %v47_v20 = vperm.slane %v36_v15, 2 }
  0x26   :  { %v40_v18 = vmul.f32 %v38_v17, %v15_v1  ;;  %v48_v24 = vmul.f32 %v47_v20, %v46_v19 }
  0x28   :  { %v42_v21 = vrot.slane %v40_v18, 5 }
  0x2a   :  { %v44_v23 = vsub.f32 %v14_v0, %v42_v21 }
  0x2c   :  { %v49_v25 = vperm.slane %v44_v23, 3 }
  0x2e   :  { %v50_v27 = vadd.f32 %v49_v25, %v48_v24 }
  0x30   :  { %v53_v28 = vadd.f32 %v52_v26, %v50_v27 }
  0x32   :  { %v54_v29 = vmax.f32 %v53_v28, 0.0 }
  0x34   :  { %v55_v30 = vpack.c.bf16 %v54_v29, %v54_v29 }
  0x36   :  { %56 = vst [vmem:[%s98_s3] sm:$0xf] %v55_v30 }

// kernel: resnet_forward.17
= control target key start
LH: loop header
LB: loop body
LE: loop exit
PB: predicated region body
PF: predicated region fallthrough
CT: control target
= control target key end

     0   :  { %s1681_s12 = smov 0   ;;  %s1964_s0 = inlined_call_operand.vmem [shape: bf16[2,4,4,128], index: 0, kind: input, shape index: {}]   ;;  %s1965_s1 = inlined_call_operand.vmem [shape: bf16[9,128,128], index: 1, kind: input, shape index: {}]   ;;  %s1966_s2 = inlined_call_operand.vmem [shape: bf16[2,2,2,128], index: 2, kind: output, shape index: {0}]   ;;  %s1967_s3 = inlined_call_operand.vmem [shape: f32[2,2,128], index: 3, kind: output, shape index: {1}]  }
   0x1 LB: > { %s1088_s13 = sadd.s32 4294967295, %s1647_s12   ;;  %p1092_p0 = scmp.ge.s32.totalorder %s1647_s12, 1  ;;  %s1647_s12 = sphi %s1681_s12, %s14_s12  }
   0x2   : > { %p140_p1 = scmp.lt.s32.totalorder %s1647_s12, 3 }
   0x4   : > { %p141_p2 = pnand %p1092_p0, %p140_p1 }
   0x5   : > { %p167_p3 = scmp.lt.s32.totalorder (!%p141_p2), %s1088_s13, 1  ;;  %s1708_s25 = smov (!%p141_p2), 0  }
   0x6   : > { %144 = sbr.rel (%p141_p2) target bundleno = 257 (0x101), region = 28 }
   0xb   : > { %s1971_s13 = smov (!%p167_p3, %s1088_s13), 1  ;;  %v1704_v0 = vmov 0.0   ;;  %v1706_v1 = vmov 0.0  }
   0xc   : > { %s1524_s14 = sshll.u32 %s1971_s13, 3  ;;  %s1095_s15 = sshll.u32 %s1971_s13, 1 }
   0xd   : > { %s1692_s18 = scalar_lea.vmem %s1964_s0, %s1524_s14  ;;  %s1697_s21 = scalar_lea.vmem %s1966_s2, %s1095_s15 }
   0xe   : > { %s1702_s24 = scalar_lea.vmem %s1967_s3, %s1095_s15 }
   0xf LB: >> { %v1540_v2 = vld [vmem:[%s1965_s1 + $0x78] sm:$0xff]  ;;  %v1539_v6 = vld [vmem:[%s1965_s1 + $0x70] sm:$0xff]  ;;  %v1538_v10 = vld [vmem:[%s1965_s1 + $0x68] sm:$0xff]  ;;  %s1097_s28 = sshll.u32 %s1659_s25, 1  ;;  %vm964_vm0 = vcmask 1041408   ;;  %s962_s19 = scalar_lea.vmem %s1697_s21, %s1659_s25  ;;  %s1659_s25 = sphi %s1708_s25, %s185_s25   ;;  %v1655_v1 = vphi %v1706_v1, %v1969_v1   ;;  %v1651_v0 = vphi %v1704_v0, %v1968_v0  }
  0x10   : >> { %v1548_v3 = vld [vmem:[%s1965_s1 + $0xb8] sm:$0xff]  ;;  %283 = vmatpush.bf16.msra.mxu0 %v1540_v2  ;;  %v1547_v7 = vld [vmem:[%s1965_s1 + $0xb0] sm:$0xff]  ;;  %v1546_v11 = vld [vmem:[%s1965_s1 + $0xa8] sm:$0xff]  ;;  %s1769_s10 = scalar_lea.vmem %s1692_s18, %s1097_s28  ;;  %s185_s25 = sadd.s32 1, %s1659_s25  }
  0x11   : >> { %v1556_v4 = vld [vmem:[%s1965_s1 + $0xf8] sm:$0xff]  ;;  %429 = vmatpush.bf16.msra.mxu2 %v1548_v3  ;;  %v1555_v8 = vld [vmem:[%s1965_s1 + $0xf0] sm:$0xff]  ;;  %v1554_v12 = vld [vmem:[%s1965_s1 + $0xe8] sm:$0xff]  ;;  %p182_p4 = scmp.ge.s32.totalorder %s185_s25, 2  }
  0x12   : >> { %v1532_v5 = vld [vmem:[%s1965_s1 + $0x38] sm:$0xff]  ;;  %512 = vmatpush.bf16.msra.mxu3 %v1556_v4  ;;  %v1531_v9 = vld [vmem:[%s1965_s1 + $0x30] sm:$0xff]  ;;  %v1530_v13 = vld [vmem:[%s1965_s1 + $0x28] sm:$0xff] }
  0x13   : >> { %344 = vmatpush.bf16.msra.mxu1 %v1532_v5  ;;  %v1537_v14 = vld [vmem:[%s1965_s1 + $0x60] sm:$0xff]  ;;  %v1536_v18 = vld [vmem:[%s1965_s1 + $0x58] sm:$0xff]  ;;  %v1535_v23 = vld [vmem:[%s1965_s1 + $0x50] sm:$0xff] }
  0x14   : >> { %284 = vmatpush.bf16.msra.mxu0 %v1539_v6  ;;  %v1545_v15 = vld [vmem:[%s1965_s1 + $0xa0] sm:$0xff]  ;;  %v1544_v19 = vld [vmem:[%s1965_s1 + $0x98] sm:$0xff]  ;;  %v1543_v24 = vld [vmem:[%s1965_s1 + $0x90] sm:$0xff] }
  0x15   : >> { %430 = vmatpush.bf16.msra.mxu2 %v1547_v7  ;;  %v1553_v16 = vld [vmem:[%s1965_s1 + $0xe0] sm:$0xff]  ;;  %v1552_v20 = vld [vmem:[%s1965_s1 + $0xd8] sm:$0xff]  ;;  %v1551_v25 = vld [vmem:[%s1965_s1 + $0xd0] sm:$0xff] }
  0x16   : >> { %513 = vmatpush.bf16.msra.mxu3 %v1555_v8  ;;  %v1529_v17 = vld [vmem:[%s1965_s1 + $0x20] sm:$0xff]  ;;  %v1528_v21 = vld [vmem:[%s1965_s1 + $0x18] sm:$0xff]  ;;  %v1527_v26 = vld [vmem:[%s1965_s1 + $0x10] sm:$0xff] }
  0x17   : >> { %345 = vmatpush.bf16.msra.mxu1 %v1531_v9  ;;  %v207_v22 = vld [vmem:[%s1769_s10] sm:$0x3]  ;;  %v1534_v28 = vld [vmem:[%s1965_s1 + $0x48] sm:$0xff]  ;;  %v1564_v38 = vld [vmem:[%s1965_s1 + $0x138] sm:$0xff] }
  0x18   : >> { %285 = vmatpush.bf16.msra.mxu0 %v1538_v10  ;;  %226 = vst [vmem:[#allocation1] ss:$4 sm:$0xff] %v207_v22  ;;  %v357_v27 = vld [vmem:[%s1769_s10] sm:$0x2]  ;;  %v1542_v29 = vld [vmem:[%s1965_s1 + $0x88] sm:$0xff]  ;;  %v1580_v39 = vld [vmem:[%s1965_s1 + $0x1b8] sm:$0xff] }
  0x19   : >> { %431 = vmatpush.bf16.msra.mxu2 %v1546_v11  ;;  %v1550_v30 = vld [vmem:[%s1965_s1 + $0xc8] sm:$0xff]  ;;  %v1533_v34 = vld [vmem:[%s1965_s1 + $0x40] sm:$0xff]  ;;  %v1588_v42 = vld [vmem:[%s1965_s1 + $0x1f8] sm:$0xff] }
  0x1a   : >> { %514 = vmatpush.bf16.msra.mxu3 %v1554_v12  ;;  %v1526_v31 = vld [vmem:[%s1965_s1 + $0x8] sm:$0xff]  ;;  %v1541_v35 = vld [vmem:[%s1965_s1 + $0x80] sm:$0xff]  ;;  %v1572_v43 = vld [vmem:[%s1965_s1 + $0x178] sm:$0xff] }
  0x1b   : >> { %346 = vmatpush.bf16.msra.mxu1 %v1530_v13  ;;  %v1549_v40 = vld [vmem:[%s1965_s1 + $0xc0] sm:$0xff]  ;;  %v1563_v46 = vld [vmem:[%s1965_s1 + $0x130] sm:$0xff]  ;;  %v1562_v54 = vld [vmem:[%s1965_s1 + $0x128] sm:$0xff] }
  0x1c   : >> { %286 = vmatpush.bf16.msra.mxu0 %v1537_v14  ;;  %v1525_v41 = vld [vmem:[%s1965_s1] sm:$0xff]  ;;  %v1579_v47 = vld [vmem:[%s1965_s1 + $0x1b0] sm:$0xff]  ;;  %v1578_v55 = vld [vmem:[%s1965_s1 + $0x1a8] sm:$0xff] }
  0x1d   : >> { %432 = vmatpush.bf16.msra.mxu2 %v1545_v15  ;;  %v1276_v44 = vld [vmem:[%s1769_s10 + $0x2] sm:$0x3]  ;;  %v1587_v49 = vld [vmem:[%s1965_s1 + $0x1f0] sm:$0xff]  ;;  %v190_v53 = vld [vmem:[%s1769_s10] sm:$0x1] }
  0x1e   : >> { %515 = vmatpush.bf16.msra.mxu3 %v1553_v16  ;;  %v1571_v51 = vld [vmem:[%s1965_s1 + $0x170] sm:$0xff]  ;;  %v1227_v52 = vld [vmem:[%s1769_s10 + $0x2] sm:$0x1]  ;;  %v1586_v56 = vld [vmem:[%s1965_s1 + $0x1e8] sm:$0xff] }
  0x1f   : >> { %347 = vmatpush.bf16.msra.mxu1 %v1529_v17  ;;  %v227_v32 = vld.sshfl [vmem:[#allocation1] sm:$0xff pattern:$0x73625140]  ;;  %v1570_v57 = vld [vmem:[%s1965_s1 + $0x168] sm:$0xff]  ;;  %v1560_v2 = vld [vmem:[%s1965_s1 + $0x118] sm:$0xff] }
  0x20   : >> { %287 = vmatpush.bf16.msra.mxu0 %v1536_v18  ;;  %376 = vst [vmem:[#allocation1] ss:$4 sm:$0xff] %v357_v27  ;;  %v230_v33 = vshll.u32 %v227_v32, 16  ;;  %v228_v36 = vshrl.u32 %v227_v32, 16  ;;  %v1325_v58 = vld [vmem:[%s1769_s10 + $0x2] sm:$0x2] }
  0x21   : >> { %433 = vmatpush.bf16.msra.mxu2 %v1544_v19  ;;  %v1561_v59 = vld [vmem:[%s1965_s1 + $0x120] sm:$0xff]  ;;  %v1576_v3 = vld [vmem:[%s1965_s1 + $0x198] sm:$0xff]  ;;  %v1559_v7 = vld [vmem:[%s1965_s1 + $0x110] sm:$0xff] }
  0x22   : >> { %516 = vmatpush.bf16.msra.mxu3 %v1552_v20  ;;  %v232_v37 = vrot.slane %v230_v33, 1  ;;  %v1577_v60 = vld [vmem:[%s1965_s1 + $0x1a0] sm:$0xff]  ;;  %v1584_v4 = vld [vmem:[%s1965_s1 + $0x1d8] sm:$0xff]  ;;  %v1575_v8 = vld [vmem:[%s1965_s1 + $0x190] sm:$0xff] }
  0x23   : >> { %348 = vmatpush.bf16.msra.mxu1 %v1528_v21  ;;  %v1585_v62 = vld [vmem:[%s1965_s1 + $0x1e0] sm:$0xff]  ;;  %v1568_v5 = vld [vmem:[%s1965_s1 + $0x158] sm:$0xff]  ;;  %v1583_v10 = vld [vmem:[%s1965_s1 + $0x1d0] sm:$0xff] }
  0x24   : >> { %288 = vmatpush.bf16.msra.mxu0 %v1535_v23  ;;  %v233_v45 = vor.u32 %v232_v37, %v228_v36  ;;  %v1569_v63 = vld [vmem:[%s1965_s1 + $0x160] sm:$0xff]  ;;  %v1567_v11 = vld [vmem:[%s1965_s1 + $0x150] sm:$0xff]  ;;  %v1558_v13 = vld [vmem:[%s1965_s1 + $0x108] sm:$0xff] }
  0x25   : >> { %434 = vmatpush.bf16.msra.mxu2 %v1543_v24  ;;  %v1424_v6 = vld [vmem:[%s1769_s10 + $0x4] sm:$0x3]  ;;  %v1574_v14 = vld [vmem:[%s1965_s1 + $0x188] sm:$0xff]  ;;  %v1596_v23 = vld [vmem:[%s1965_s1 + $0x238] sm:$0xff] }
  0x26   : >> { %517 = vmatpush.bf16.msra.mxu3 %v1551_v25  ;;  %v1582_v15 = vld [vmem:[%s1965_s1 + $0x1c8] sm:$0xff]  ;;  %v1473_v17 = vld [vmem:[%s1769_s10 + $0x4] sm:$0x2]  ;;  %v1592_v36 = vld [vmem:[%s1965_s1 + $0x218] sm:$0xff] }
  0x27   : >> { %349 = vmatpush.bf16.msra.mxu1 %v1527_v26  ;;  %v377_v48 = vld.sshfl [vmem:[#allocation1] sm:$0xff pattern:$0x73625140]  ;;  %v1566_v16 = vld [vmem:[%s1965_s1 + $0x148] sm:$0xff]  ;;  %v1591_v37 = vld [vmem:[%s1965_s1 + $0x210] sm:$0xff] }
  0x28   : >> { %289 = vmatpush.bf16.msra.mxu0 %v1534_v28  ;;  %v379_v50 = vrot.slane %v377_v48, 1  ;;  %545 = vst [vmem:[#allocation1] ss:$4 sm:$0xff] %v1276_v44  ;;  %v1557_v20 = vld [vmem:[%s1965_s1 + $0x100] sm:$0xff] }
  0x29   : >> { %435 = vmatpush.bf16.msra.mxu2 %v1542_v29  ;;  %v1573_v21 = vld [vmem:[%s1965_s1 + $0x180] sm:$0xff] }
  0x2a   : >> { %518 = vmatpush.bf16.msra.mxu3 %v1550_v30  ;;  %v1581_v26 = vld [vmem:[%s1965_s1 + $0x1c0] sm:$0xff] }
  0x2b   : >> { %350 = vmatpush.bf16.msra.mxu1 %v1526_v31  ;;  %v1565_v27 = vld [vmem:[%s1965_s1 + $0x140] sm:$0xff]  ;;  %v1595_v31 = vld [vmem:[%s1965_s1 + $0x230] sm:$0xff] }
  0x2c   : >> { %290 = vmatpush.bf16.msra.mxu0 %v1533_v34  ;;  %v1375_v30 = vld [vmem:[%s1769_s10 + $0x4] sm:$0x1]  ;;  %v1594_v34 = vld [vmem:[%s1965_s1 + $0x228] sm:$0xff] }
  0x2d   : >> { %436 = vmatpush.bf16.msra.mxu2 %v1541_v35  ;;  %v1593_v35 = vld [vmem:[%s1965_s1 + $0x220] sm:$0xff] }
  0x2e   : >> { %519 = vmatpush.bf16.msra.mxu3 %v1549_v40 }
  0x2f   : >> { %351 = vmatpush.bf16.msra.mxu1 %v1525_v41  ;;  %291 = vmatmul.bf16.vlgmr.msra.gmra.mxu0 %v233_v45  ;;  %v546_v61 = vld.sshfl [vmem:[#allocation1] sm:$0xff pattern:$0x73625140] }
  0x30   : >> { %602 = vmatpush.bf16.msrb.mxu0 %v1564_v38  ;;  %437 = vmatmul.bf16.vlgmr.msra.gmra.mxu2 %v379_v50  ;;  %635 = vst [vmem:[#allocation1] ss:$4 sm:$0xff] %v1325_v58  ;;  %v549_v12 = vshll.u32 %v546_v61, 16  ;;  %v547_v18 = vshrl.u32 %v546_v61, 16  ;;  %v1590_v38 = vld [vmem:[%s1965_s1 + $0x208] sm:$0xff] }
  0x31   : >> { %771 = vmatpush.bf16.msrb.mxu2 %v1580_v39  ;;  %520 = vmatmul.bf16.vlgmr.msra.gmra.mxu3 %v1227_v52  ;;  %v1589_v39 = vld [vmem:[%s1965_s1 + $0x200] sm:$0xff] }
  0x32   : >> { %861 = vmatpush.bf16.msrb.mxu3 %v1588_v42  ;;  %352 = vmatmul.bf16.vlgmr.msra.gmra.mxu1 %v190_v53  ;;  %v551_v19 = vrot.slane %v549_v12, 1 }
  0x33   : >> { %688 = vmatpush.bf16.msrb.mxu1 %v1572_v43 }
  0x34   : >> { %603 = vmatpush.bf16.msrb.mxu0 %v1563_v46  ;;  %v552_v28 = vor.u32 %v551_v19, %v547_v18 }
  0x35   : >> { %772 = vmatpush.bf16.msrb.mxu2 %v1579_v47 }
  0x36   : >> { %862 = vmatpush.bf16.msrb.mxu3 %v1587_v49 }
  0x37   : >> { %689 = vmatpush.bf16.msrb.mxu1 %v1571_v51  ;;  %v636_v9 = vld.sshfl [vmem:[#allocation1] sm:$0xff pattern:$0x73625140] }
  0x38   : >> { %604 = vmatpush.bf16.msrb.mxu0 %v1562_v54  ;;  %804 = vst [vmem:[#allocation1] ss:$4 sm:$0xff] %v1424_v6  ;;  %v638_v33 = vrot.slane %v636_v9, 1 }
  0x39   : >> { %773 = vmatpush.bf16.msrb.mxu2 %v1578_v55 }
  0x3a   : >> { %863 = vmatpush.bf16.msrb.mxu3 %v1586_v56 }
  0x3b   : >> { %690 = vmatpush.bf16.msrb.mxu1 %v1570_v57 }
  0x3c   : >> { %605 = vmatpush.bf16.msrb.mxu0 %v1561_v59 }
  0x3d   : >> { %774 = vmatpush.bf16.msrb.mxu2 %v1577_v60 }
  0x3e   : >> { %864 = vmatpush.bf16.msrb.mxu3 %v1585_v62 }
  0x3f   : >> { %691 = vmatpush.bf16.msrb.mxu1 %v1569_v63  ;;  %v805_v22 = vld.sshfl [vmem:[#allocation1] sm:$0xff pattern:$0x73625140] }
  0x40   : >> { %606 = vmatpush.bf16.msrb.mxu0 %v1560_v2  ;;  %v806_v24 = vshrl.u32 %v805_v22, 16  ;;  %v808_v25 = vshll.u32 %v805_v22, 16  ;;  %894 = vst [vmem:[#allocation1] ss:$4 sm:$0xff] %v1473_v17 }
  0x41   : >> { %775 = vmatpush.bf16.msrb.mxu2 %v1576_v3 }
  0x42   : >> { %865 = vmatpush.bf16.msrb.mxu3 %v1584_v4  ;;  %v810_v29 = vrot.slane %v808_v25, 1 }
  0x43   : >> { %692 = vmatpush.bf16.msrb.mxu1 %v1568_v5 }
  0x44   : >> { %607 = vmatpush.bf16.msrb.mxu0 %v1559_v7  ;;  %v811_v32 = vor.u32 %v810_v29, %v806_v24 }
  0x45   : >> { %776 = vmatpush.bf16.msrb.mxu2 %v1575_v8 }
  0x46   : >> { %866 = vmatpush.bf16.msrb.mxu3 %v1583_v10 }
  0x47   : >> { %693 = vmatpush.bf16.msrb.mxu1 %v1567_v11  ;;  %v895_v40 = vld.sshfl [vmem:[#allocation1] sm:$0xff pattern:$0x73625140] }
  0x48   : >> { %608 = vmatpush.bf16.msrb.mxu0 %v1558_v13  ;;  %v897_v41 = vrot.slane %v895_v40, 1 }
  0x49   : >> { %777 = vmatpush.bf16.msrb.mxu2 %v1574_v14 }
  0x4a   : >> { %867 = vmatpush.bf16.msrb.mxu3 %v1582_v15 }
  0x4b   : >> { %694 = vmatpush.bf16.msrb.mxu1 %v1566_v16 }
  0x4c   : >> { %609 = vmatpush.bf16.msrb.mxu0 %v1557_v20 }
  0x4d   : >> { %778 = vmatpush.bf16.msrb.mxu2 %v1573_v21 }
  0x4e   : >> { %868 = vmatpush.bf16.msrb.mxu3 %v1581_v26 }
  0x4f   : >> { %695 = vmatpush.bf16.msrb.mxu1 %v1565_v27  ;;  %610 = vmatmul.bf16.vlgmr.msrb.gmra.mxu0 %v552_v28 }
  0x50   : >> { %947 = vmatpush.bf16.msra.mxu0 %v1596_v23  ;;  %779 = vmatmul.bf16.vlgmr.msrb.gmra.mxu2 %v1375_v30 }
  0x51   : >> { %869 = vmatmul.bf16.vlgmr.msrb.gmra.mxu3 %v811_v32 }
  0x52   : >> { %696 = vmatmul.bf16.vlgmr.msrb.gmra.mxu1 %v638_v33 }
  0x54   : >> { %948 = vmatpush.bf16.msra.mxu0 %v1595_v31 }
  0x58   : >> { %949 = vmatpush.bf16.msra.mxu0 %v1594_v34 }
  0x5c   : >> { %950 = vmatpush.bf16.msra.mxu0 %v1593_v35 }
  0x60   : >> { %951 = vmatpush.bf16.msra.mxu0 %v1592_v36 }
  0x64   : >> { %952 = vmatpush.bf16.msra.mxu0 %v1591_v37 }
  0x68   : >> { %953 = vmatpush.bf16.msra.mxu0 %v1590_v38 }
  0x6c   : >> { %954 = vmatpush.bf16.msra.mxu0 %v1589_v39 }
  0x6f   : >> { %955 = vmatmul.bf16.vlgmr.msra.gmra.mxu0 %v897_v41 }
  0xac   : >> { %v292_v42 = vpop.f32.mrf.mxu0 }
  0xaf   : >> { %v353_v43 = vpop.f32.mrf.mxu1 }
  0xb0   : >> { %v354_v52 = vadd.f32 %v353_v43, %v292_v42 }
  0xb3   : >> { %v438_v44 = vpop.f32.mrf.mxu2 }
  0xb4   : >> { %v521_v45 = vpop.f32.mrf.mxu3  ;;  %v294_v46 = vpop.f32.mrf.mxu0  ;;  %v442_v54 = vadd.f32 %v438_v44, %v354_v52 }
  0xb6   : >> { %v525_v58 = vadd.f32 %v521_v45, %v442_v54 }
  0xb7   : >> { %v355_v47 = vpop.f32.mrf.mxu1 }
  0xbb   : >> { %v440_v48 = vpop.f32.mrf.mxu2 }
  0xbc   : >> { %v523_v49 = vpop.f32.mrf.mxu3 }
  0xcc   : >> { %v611_v50 = vpop.f32.mrf.mxu0 }
  0xcd   : >> { %v615_v60 = vadd.f32 %v611_v50, %v525_v58 }
  0xcf   : >> { %v697_v51 = vpop.f32.mrf.mxu1 }
  0xd0   : >> { %v701_v62 = vadd.f32 %v697_v51, %v615_v60 }
  0xd3   : >> { %v780_v53 = vpop.f32.mrf.mxu2 }
  0xd4   : >> { %v870_v55 = vpop.f32.mrf.mxu3  ;;  %v613_v56 = vpop.f32.mrf.mxu0  ;;  %v784_v63 = vadd.f32 %v780_v53, %v701_v62 }
  0xd6   : >> { %v874_v2 = vadd.f32 %v870_v55, %v784_v63 }
  0xd7   : >> { %v699_v57 = vpop.f32.mrf.mxu1 }
  0xdb   : >> { %v782_v59 = vpop.f32.mrf.mxu2 }
  0xdc   : >> { %v872_v61 = vpop.f32.mrf.mxu3 }
  0xec   : >> { %v956_v3 = vpop.f32.mrf.mxu0 }
  0xed   : >> { %v960_v4 = vadd.f32 %v956_v3, %v874_v2 }
  0xef   : >> { %v961_v5 = vpack.c.bf16 %v960_v4, %v960_v4  ;;  %v965_v6 = vsel %vm964_vm0, %v960_v4, 0.0  ;;  %v973_v7 = vmul.f32 %v960_v4, %v960_v4 }
  0xf0   : >> { %v966_v8 = vrot.slane %v965_v6, 4 }
  0xf1   : >> { %963 = vst [vmem:[%s962_s19] sm:$0x1] %v961_v5  ;;  %v974_v9 = vsel %vm964_vm0, %v973_v7, 0.0 }
  0xf2   : >> { %v967_v10 = vadd.f32 %v966_v8, %v965_v6  ;;  %v975_v11 = vrot.slane %v974_v9, 4 }
  0xf4   : >> { %v968_v12 = vrot.slane %v967_v10, 2  ;;  %v976_v13 = vadd.f32 %v975_v11, %v974_v9  ;;  %v958_v14 = vpop.f32.mrf.mxu0 }
  0xf6   : >> { %v969_v15 = vadd.f32 %v968_v12, %v967_v10  ;;  %v977_v16 = vrot.slane %v976_v13, 2 }
  0xf8   : >> { %v970_v17 = vrot.slane %v969_v15, 1  ;;  %v978_v18 = vadd.f32 %v977_v16, %v976_v13 }
  0xfa   : >> { %v971_v19 = vadd.f32 %v970_v17, %v969_v15  ;;  %v979_v20 = vrot.slane %v978_v18, 1 }
  0xfc   : >> { %v972_v21 = vadd.f32 %v1655_v1, %v971_v19   ;;  %v980_v22 = vadd.f32 %v979_v20, %v978_v18  ;;  %184 = sbr.rel (!%p182_p4) target bundleno = 15 (0xf), region = 89 }
  0xfe   : >> { %v981_v23 = vadd.f32 %v1651_v0, %v980_v22   ;;  %v1969_v1 = vmov %v972_v21  ;;  %982 = vst [vmem:[%s1702_s24] sm:$0x1] (%p182_p4), %v972_v21 }
 0x100   : >> { %v1968_v0 = vmov %v981_v23  ;;  %983 = vst [vmem:[%s1702_s24 + $0x1] sm:$0x1] (%p182_p4), %v981_v23 }
 0x101 PF: > { %s14_s12 = sadd.s32 1, %s1647_s12  }
 0x102   : > { %p11_p5 = scmp.ge.s32.totalorder %s14_s12, 4  }
 0x104   :  { %13 = sbr.rel (!%p11_p5) target bundleno = 1 (0x1), region = 100 }

// kernel: resnet_forward.23
= control target key start
LH: loop header
LB: loop body
LE: loop exit
PB: predicated region body
PF: predicated region fallthrough
CT: control target
= control target key end

     0   :  { %s161_s1 = inlined_call_operand.vmem [shape: f32[128,128], index: 1, kind: input, shape index: {}]   ;;  %s162_s2 = inlined_call_operand.vmem [shape: f32[1,128], index: 2, kind: input, shape index: {}]   ;;  %s163_s0 = inlined_call_operand.vmem [shape: bf16[4,8,128], index: 0, kind: input, shape index: {}]   ;;  %s164_s3 = inlined_call_operand.vmem [shape: f32[8,128], index: 3, kind: output, shape index: {}]  }
   0x1   :  { %v41_v0 = vld [vmem:[%s161_s1 + $0x78] sm:$0xff]  ;;  %v40_v1 = vld [vmem:[%s161_s1 + $0x70] sm:$0xff]  ;;  %v39_v2 = vld [vmem:[%s161_s1 + $0x68] sm:$0xff] }
   0x2   :  { %46 = vmatpush.msra.mxu0 %v41_v0  ;;  %v38_v3 = vld [vmem:[%s161_s1 + $0x60] sm:$0xff]  ;;  %v37_v4 = vld [vmem:[%s161_s1 + $0x58] sm:$0xff]  ;;  %v36_v5 = vld [vmem:[%s161_s1 + $0x50] sm:$0xff] }
   0x3   :  { %v72_v6 = vld [vmem:[%s163_s0] sm:$0xff]   ;;  %v35_v7 = vld [vmem:[%s161_s1 + $0x48] sm:$0xff]  ;;  %v33_v12 = vld [vmem:[%s161_s1 + $0x38] sm:$0xff] }
   0x4   :  { %47 = vmatpush.msra.mxu0 %v40_v1  ;;  %v34_v8 = vld [vmem:[%s161_s1 + $0x40] sm:$0xff]  ;;  %v73_v9 = vunpack.c.l.bf16 %v72_v6  ;;  %v74_v10 = vunpack.c.h.bf16 %v72_v6  ;;  %v79_v11 = vld [vmem:[%s163_s0 + $0x8] sm:$0xff]   ;;  %v32_v13 = vld [vmem:[%s161_s1 + $0x30] sm:$0xff] }
   0x5   :  { %v77_v14 = vunpack.c.l.bf16 %v79_v11  ;;  %v31_v16 = vld [vmem:[%s161_s1 + $0x28] sm:$0xff]  ;;  %v30_v17 = vld [vmem:[%s161_s1 + $0x20] sm:$0xff]  ;;  %v78_v18 = vunpack.c.h.bf16 %v79_v11  ;;  %v29_v20 = vld [vmem:[%s161_s1 + $0x18] sm:$0xff] }
   0x6   :  { %48 = vmatpush.msra.mxu0 %v39_v2  ;;  %v22_v15 = vadd.f32 %v74_v10, %v73_v9  ;;  %v28_v21 = vld [vmem:[%s161_s1 + $0x10] sm:$0xff]  ;;  %v27_v23 = vld [vmem:[%s161_s1 + $0x8] sm:$0xff]  ;;  %v26_v24 = vld [vmem:[%s161_s1] sm:$0xff] }
   0x7   :  { %v80_v26 = vld [vmem:[%s162_s2] ss:$0 sm:$0xff] }
   0x8   :  { %49 = vmatpush.msra.mxu0 %v38_v3  ;;  %v23_v19 = vadd.f32 %v77_v14, %v22_v15 }
   0xa   :  { %50 = vmatpush.msra.mxu0 %v37_v4  ;;  %v24_v22 = vadd.f32 %v78_v18, %v23_v19 }
   0xc   :  { %51 = vmatpush.msra.mxu0 %v36_v5  ;;  %v25_v25 = vmul.f32 0.25, %v24_v22 }
   0xe   :  { %52 = vmatpush.msra.mxu0 %v35_v7 }
  0x10   :  { %53 = vmatpush.msra.mxu0 %v34_v8 }
  0x12   :  { %54 = vmatpush.msra.mxu0 %v33_v12 }
  0x14   :  { %55 = vmatpush.msra.mxu0 %v32_v13 }
  0x16   :  { %56 = vmatpush.msra.mxu0 %v31_v16 }
  0x18   :  { %57 = vmatpush.msra.mxu0 %v30_v17 }
  0x1a   :  { %58 = vmatpush.msra.mxu0 %v29_v20 }
  0x1c   :  { %59 = vmatpush.msra.mxu0 %v28_v21 }
  0x1e   :  { %60 = vmatpush.msra.mxu0 %v27_v23 }
  0x20   :  { %61 = vmatpush.msra.mxu0 %v26_v24 }
  0x21   :  { %62 = vmatmul.f32.vlgmr.msra.gmra.mxu0 %v25_v25 }
  0x9e   :  { %v63_v27 = vpop.f32.mrf.mxu0 }
  0x9f   :  { %v64_v28 = vadd.f32 %v80_v26, %v63_v27 }
  0xa1   :  { %66 = vst [vmem:[%s164_s3] sm:$0xff] %v64_v28 }

// kernel: resnet_forward.12
= control target key start
LH: loop header
LB: loop body
LE: loop exit
PB: predicated region body
PF: predicated region fallthrough
CT: control target
= control target key end

     0   :  { %s7626_s12 = smov 0   ;;  %s9014_s0 = inlined_call_operand.vmem [shape: bf16[2,21,2,11,128], index: 0, kind: input, shape index: {}]   ;;  %s9015_s1 = inlined_call_operand.vmem [shape: bf16[49,128,128], index: 1, kind: input, shape index: {}]   ;;  %s9016_s2 = inlined_call_operand.vmem [shape: bf16[2,8,8,128], index: 2, kind: output, shape index: {0}]   ;;  %s9017_s3 = inlined_call_operand.vmem [shape: f32[2,2,128], index: 3, kind: output, shape index: {1}]  }
   0x1 LB: > { %s4686_s13 = sadd.s32 4294967295, %s7592_s12   ;;  %p4690_p0 = scmp.ge.s32.totalorder %s7592_s12, 1  ;;  %s7592_s12 = sphi %s7626_s12, %s14_s12  }
   0x2   : > { %p140_p1 = scmp.lt.s32.totalorder %s7592_s12, 3 }
   0x4   : > { %p141_p2 = pnand %p4690_p0, %p140_p1 }
   0x5   : > { %p168_p3 = scmp.lt.s32.totalorder (!%p141_p2), %s4686_s13, 1  ;;  %s7653_s26 = smov (!%p141_p2), 0  }
   0x6   : > { %144 = sbr.rel (%p141_p2) target bundleno = 576 (0x240), region = 28 }
   0xb   : > { %s9021_s13 = smov (!%p168_p3, %s4686_s13), 1  ;;  %v7649_v0 = vmov 0.0   ;;  %v7651_v1 = vmov 0.0  }
   0xc   : > { %s7541_s14 = smul.u32 336, %s9021_s13  ;;  %s7127_s15 = sshll.u32 %s9021_s13, 5 }
   0xd   : > { %s7637_s18 = scalar_lea.vmem %s9016_s2, %s7127_s15  ;;  %s4694_s19 = sshll.u32 %s9021_s13, 1 }
   0xe   : > { %s7642_s22 = scalar_lea.vmem %s9014_s0, %s7541_s14  ;;  %s7647_s25 = scalar_lea.vmem %s9017_s3, %s4694_s19 }
   0xf LB: >> { %v7146_v2 = vld [vmem:[%s9015_s1 + $0x78] sm:$0xff]  ;;  %v7145_v6 = vld [vmem:[%s9015_s1 + $0x70] sm:$0xff]  ;;  %v7144_v10 = vld [vmem:[%s9015_s1 + $0x68] sm:$0xff]  ;;  %s7129_s6 = sshll.u32 %s7604_s26, 5  ;;  %s7604_s26 = sphi %s7653_s26, %s187_s26   ;;  %v7600_v1 = vphi %v7651_v1, %v9019_v1   ;;  %v7596_v0 = vphi %v7649_v0, %v9018_v0  }
  0x10   : >> { %v7154_v3 = vld [vmem:[%s9015_s1 + $0xb8] sm:$0xff]  ;;  %280 = vmatpush.bf16.msra.mxu0 %v7146_v2  ;;  %v7153_v7 = vld [vmem:[%s9015_s1 + $0xb0] sm:$0xff]  ;;  %v7152_v11 = vld [vmem:[%s9015_s1 + $0xa8] sm:$0xff]  ;;  %s7714_s11 = scalar_lea.vmem %s7642_s22, %s7129_s6  ;;  %s7124_s6 = sshll.u32 %s7604_s26, 2 }
  0x11   : >> { %v7137_v4 = vld [vmem:[%s9015_s1 + $0x38] sm:$0xff]  ;;  %434 = vmatpush.bf16.msra.mxu2 %v7154_v3  ;;  %v7136_v8 = vld [vmem:[%s9015_s1 + $0x30] sm:$0xff]  ;;  %v7135_v12 = vld [vmem:[%s9015_s1 + $0x28] sm:$0xff]  ;;  %s4508_s7 = scalar_lea.vmem %s7637_s18, %s7124_s6  ;;  %s187_s26 = sadd.s32 1, %s7604_s26  }
  0x12   : >> { %v7162_v5 = vld [vmem:[%s9015_s1 + $0xf8] sm:$0xff]  ;;  %341 = vmatpush.bf16.msra.mxu1 %v7137_v4  ;;  %v7161_v9 = vld [vmem:[%s9015_s1 + $0xf0] sm:$0xff]  ;;  %v7160_v13 = vld [vmem:[%s9015_s1 + $0xe8] sm:$0xff]  ;;  %p184_p4 = scmp.ge.s32.totalorder %s187_s26, 8  }
  0x13   : >> { %528 = vmatpush.bf16.msra.mxu3 %v7162_v5  ;;  %v7143_v14 = vld [vmem:[%s9015_s1 + $0x60] sm:$0xff]  ;;  %v7142_v18 = vld [vmem:[%s9015_s1 + $0x58] sm:$0xff]  ;;  %v7141_v23 = vld [vmem:[%s9015_s1 + $0x50] sm:$0xff] }
  0x14   : >> { %281 = vmatpush.bf16.msra.mxu0 %v7145_v6  ;;  %v7151_v15 = vld [vmem:[%s9015_s1 + $0xa0] sm:$0xff]  ;;  %v7150_v19 = vld [vmem:[%s9015_s1 + $0x98] sm:$0xff]  ;;  %v7149_v26 = vld [vmem:[%s9015_s1 + $0x90] sm:$0xff] }
  0x15   : >> { %435 = vmatpush.bf16.msra.mxu2 %v7153_v7  ;;  %v7134_v16 = vld [vmem:[%s9015_s1 + $0x20] sm:$0xff]  ;;  %v7133_v20 = vld [vmem:[%s9015_s1 + $0x18] sm:$0xff]  ;;  %v4829_v28 = vld [vmem:[%s7714_s11 + $0x8] sm:$0xf] }
  0x16   : >> { %342 = vmatpush.bf16.msra.mxu1 %v7136_v8  ;;  %v7159_v17 = vld [vmem:[%s9015_s1 + $0xe0] sm:$0xff]  ;;  %v7158_v21 = vld [vmem:[%s9015_s1 + $0xd8] sm:$0xff]  ;;  %v7741_v29 = vld [vmem:[%s7714_s11 + $0xc] sm:$0x1]  ;;  %v469_v32 = vunpack.c.l.b16 %v4829_v28 }
  0x17   : >> { %529 = vmatpush.bf16.msra.mxu3 %v7161_v9  ;;  %v354_v22 = vld [vmem:[%s7714_s11] sm:$0xf]  ;;  %v7733_v24 = vld [vmem:[%s7714_s11 + $0x4] sm:$0x1]  ;;  %v7132_v30 = vld [vmem:[%s9015_s1 + $0x10] sm:$0xff]  ;;  %v470_v33 = vunpack.c.l.b16 %v7741_v29 }
  0x18   : >> { %282 = vmatpush.bf16.msra.mxu0 %v7144_v10  ;;  %v375_v25 = vunpack.c.l.b16 %v354_v22  ;;  %v376_v27 = vunpack.c.l.b16 %v7733_v24  ;;  %v7157_v31 = vld [vmem:[%s9015_s1 + $0xd0] sm:$0xff]  ;;  %v7140_v36 = vld [vmem:[%s9015_s1 + $0x48] sm:$0xff]  ;;  %v7139_v42 = vld [vmem:[%s9015_s1 + $0x40] sm:$0xff] }
  0x19   : >> { %436 = vmatpush.bf16.msra.mxu2 %v7152_v11  ;;  %v471_v35 = vpack.c.b16 %v470_v33, %v469_v32  ;;  %v7148_v37 = vld [vmem:[%s9015_s1 + $0x88] sm:$0xff]  ;;  %v7147_v43 = vld [vmem:[%s9015_s1 + $0x80] sm:$0xff]  ;;  %v7170_v46 = vld [vmem:[%s9015_s1 + $0x138] sm:$0xff] }
  0x1a   : >> { %343 = vmatpush.bf16.msra.mxu1 %v7135_v12  ;;  %v377_v34 = vpack.c.b16 %v376_v27, %v375_v25  ;;  %v7131_v39 = vld [vmem:[%s9015_s1 + $0x8] sm:$0xff]  ;;  %v7186_v47 = vld [vmem:[%s9015_s1 + $0x1b8] sm:$0xff]  ;;  %v7130_v48 = vld [vmem:[%s9015_s1] sm:$0xff] }
  0x1b   : >> { %530 = vmatpush.bf16.msra.mxu3 %v7160_v13  ;;  %v7156_v40 = vld [vmem:[%s9015_s1 + $0xc8] sm:$0xff]  ;;  %v475_v41 = vshll.u32 %v471_v35, 16  ;;  %v7155_v49 = vld [vmem:[%s9015_s1 + $0xc0] sm:$0xff]  ;;  %v473_v50 = vshrl.u32 %v471_v35, 16  ;;  %v7178_v52 = vld [vmem:[%s9015_s1 + $0x178] sm:$0xff] }
  0x1c   : >> { %283 = vmatpush.bf16.msra.mxu0 %v7143_v14  ;;  %v381_v38 = vshll.u32 %v377_v34, 16  ;;  %v379_v44 = vshrl.u32 %v377_v34, 16  ;;  %v7195_v53 = vld [vmem:[%s9015_s1 + $0x1f8] sm:$0xff]  ;;  %v7169_v55 = vld [vmem:[%s9015_s1 + $0x130] sm:$0xff]  ;;  %v4700_v57 = vld [vmem:[%s7714_s11 + $0x8] sm:$0xf] }
  0x1d   : >> { %437 = vmatpush.bf16.msra.mxu2 %v7151_v15  ;;  %v477_v51 = vrot.slane %v475_v41, 1  ;;  %v7185_v56 = vld [vmem:[%s9015_s1 + $0x1b0] sm:$0xff]  ;;  %v194_v61 = vld [vmem:[%s7714_s11] sm:$0xf]  ;;  %v7168_v62 = vld [vmem:[%s9015_s1 + $0x128] sm:$0xff] }
  0x1e   : >> { %344 = vmatpush.bf16.msra.mxu1 %v7134_v16  ;;  %v383_v45 = vrot.slane %v381_v38, 1  ;;  %v7177_v59 = vld [vmem:[%s9015_s1 + $0x170] sm:$0xff]  ;;  %v7184_v63 = vld [vmem:[%s9015_s1 + $0x1a8] sm:$0xff]  ;;  %v7167_v4 = vld [vmem:[%s9015_s1 + $0x120] sm:$0xff] }
  0x1f   : >> { %531 = vmatpush.bf16.msra.mxu3 %v7159_v17  ;;  %v478_v58 = vor.u32 %v477_v51, %v473_v50  ;;  %v7194_v60 = vld [vmem:[%s9015_s1 + $0x1f0] sm:$0xff]  ;;  %v7176_v2 = vld [vmem:[%s9015_s1 + $0x168] sm:$0xff]  ;;  %v7183_v5 = vld [vmem:[%s9015_s1 + $0x1a0] sm:$0xff] }
  0x20   : >> { %284 = vmatpush.bf16.msra.mxu0 %v7142_v18  ;;  %v384_v54 = vor.u32 %v383_v45, %v379_v44  ;;  %v7193_v3 = vld [vmem:[%s9015_s1 + $0x1e8] sm:$0xff]  ;;  %v542_v6 = vld [vmem:[%s7714_s11] sm:$0xe]  ;;  %v712_v7 = vld [vmem:[%s7714_s11 + $0x4] sm:$0x3] }
  0x21   : >> { %438 = vmatpush.bf16.msra.mxu2 %v7150_v19  ;;  %v7175_v8 = vld [vmem:[%s9015_s1 + $0x160] sm:$0xff]  ;;  %v7166_v10 = vld [vmem:[%s9015_s1 + $0x118] sm:$0xff]  ;;  %v561_v12 = vunpack.c.l.b16 %v542_v6  ;;  %v731_v13 = vunpack.c.l.b16 %v712_v7  ;;  %v7165_v16 = vld [vmem:[%s9015_s1 + $0x110] sm:$0xff] }
  0x22   : >> { %345 = vmatpush.bf16.msra.mxu1 %v7133_v20  ;;  %v7192_v9 = vld [vmem:[%s9015_s1 + $0x1e0] sm:$0xff]  ;;  %v7182_v11 = vld [vmem:[%s9015_s1 + $0x198] sm:$0xff]  ;;  %v7181_v17 = vld [vmem:[%s9015_s1 + $0x190] sm:$0xff] }
  0x23   : >> { %532 = vmatpush.bf16.msra.mxu3 %v7158_v21  ;;  %v7174_v14 = vld [vmem:[%s9015_s1 + $0x158] sm:$0xff]  ;;  %v732_v18 = vpack.c.b16 %v731_v13, %v561_v12  ;;  %v7173_v19 = vld [vmem:[%s9015_s1 + $0x150] sm:$0xff]  ;;  %v4927_v21 = vld [vmem:[%s7714_s11 + $0x8] sm:$0xe] }
  0x24   : >> { %285 = vmatpush.bf16.msra.mxu0 %v7141_v23  ;;  %v7191_v15 = vld [vmem:[%s9015_s1 + $0x1d8] sm:$0xff]  ;;  %v7190_v20 = vld [vmem:[%s9015_s1 + $0x1d0] sm:$0xff]  ;;  %v7164_v22 = vld [vmem:[%s9015_s1 + $0x108] sm:$0xff] }
  0x25   : >> { %439 = vmatpush.bf16.msra.mxu2 %v7149_v26  ;;  %v7180_v23 = vld [vmem:[%s9015_s1 + $0x188] sm:$0xff]  ;;  %v734_v25 = vshrl.u32 %v732_v18, 16  ;;  %v737_v26 = vshll.u32 %v732_v18, 16  ;;  %v7163_v32 = vld [vmem:[%s9015_s1 + $0x100] sm:$0xff]  ;;  %v7205_v38 = vld [vmem:[%s9015_s1 + $0x238] sm:$0xff] }
  0x26   : >> { %346 = vmatpush.bf16.msra.mxu1 %v7132_v30  ;;  %v7172_v28 = vld [vmem:[%s9015_s1 + $0x148] sm:$0xff]  ;;  %v7179_v34 = vld [vmem:[%s9015_s1 + $0x180] sm:$0xff]  ;;  %v7204_v29 = vld [vmem:[%s9015_s1 + $0x230] sm:$0xff] }
  0x27   : >> { %533 = vmatpush.bf16.msra.mxu3 %v7157_v31  ;;  %v7189_v30 = vld [vmem:[%s9015_s1 + $0x1c8] sm:$0xff]  ;;  %v646_v31 = vunpack.c.l.b16 %v4927_v21  ;;  %v736_v35 = vrot.slane %v734_v25, 1  ;;  %v7188_v41 = vld [vmem:[%s9015_s1 + $0x1c0] sm:$0xff]  ;;  %v7225_v6 = vld [vmem:[%s9015_s1 + $0x2d8] sm:$0xff] }
  0x28   : >> { %286 = vmatpush.bf16.msra.mxu0 %v7140_v36  ;;  %v739_v36 = vrot.slane %v737_v26, 2  ;;  %v7219_v50 = vld [vmem:[%s9015_s1 + $0x2a8] sm:$0xff]  ;;  %v7966_v13 = vld [vmem:[%s7714_s11 + $0x10] sm:$0xe]  ;;  %v7214_v25 = vld [vmem:[%s9015_s1 + $0x280] sm:$0xff] }
  0x29   : >> { %440 = vmatpush.bf16.msra.mxu2 %v7148_v37  ;;  %v562_v37 = vpack.c.b16 %v376_v27, %v561_v12  ;;  %v647_v24 = vpack.c.b16 %v470_v33, %v646_v31  ;;  %v7213_v27 = vld [vmem:[%s9015_s1 + $0x278] sm:$0xff]  ;;  %v7220_v33 = vld [vmem:[%s9015_s1 + $0x2b0] sm:$0xff]  ;;  %v7211_v51 = vld [vmem:[%s9015_s1 + $0x268] sm:$0xff]  ;;  %v1178_v18 = vunpack.c.l.b16 %v7966_v13 }
  0x2a   : >> { %347 = vmatpush.bf16.msra.mxu1 %v7131_v39  ;;  %v7221_v39 = vld [vmem:[%s9015_s1 + $0x2b8] sm:$0xff]  ;;  %v7224_v12 = vld [vmem:[%s9015_s1 + $0x2d0] sm:$0xff] }
  0x2b   : >> { %534 = vmatpush.bf16.msra.mxu3 %v7156_v40  ;;  %v7171_v40 = vld [vmem:[%s9015_s1 + $0x140] sm:$0xff]  ;;  %v563_v44 = vrot.slane %v562_v37, 1  ;;  %v648_v45 = vrot.slane %v647_v24, 1  ;;  %v7237_v26 = vld [vmem:[%s9015_s1 + $0x338] sm:$0xff]  ;;  %v7236_v24 = vld [vmem:[%s9015_s1 + $0x330] sm:$0xff] }
  0x2c   : >> { %287 = vmatpush.bf16.msra.mxu0 %v7139_v42  ;;  %v7229_v42 = vld [vmem:[%s9015_s1 + $0x2f8] sm:$0xff] }
  0x2d   : >> { %441 = vmatpush.bf16.msra.mxu2 %v7147_v43  ;;  %v740_v43 = vor.u32 %v739_v36, %v736_v35  ;;  %v7222_v35 = vld [vmem:[%s9015_s1 + $0x2c0] sm:$0xff]  ;;  %v5078_v37 = vld [vmem:[%s7714_s11 + $0x18] sm:$0xf] }
  0x2e   : >> { %348 = vmatpush.bf16.msra.mxu1 %v7130_v48  ;;  %v7228_v48 = vld [vmem:[%s9015_s1 + $0x2f0] sm:$0xff] }
  0x2f   : >> { %535 = vmatpush.bf16.msra.mxu3 %v7155_v49  ;;  %288 = vmatmul.bf16.vlgmr.msra.gmra.mxu0 %v4700_v57  ;;  %v7203_v49 = vld [vmem:[%s9015_s1 + $0x228] sm:$0xff]  ;;  %v7210_v57 = vld [vmem:[%s9015_s1 + $0x260] sm:$0xff] }
  0x30   : >> { %613 = vmatpush.bf16.msrb.mxu0 %v7170_v46  ;;  %442 = vmatmul.bf16.vlgmr.msra.gmra.mxu2 %v384_v54  ;;  %v5026_v46 = vld [vmem:[%s7714_s11 + $0x10] sm:$0xf]  ;;  %v7218_v54 = vld [vmem:[%s9015_s1 + $0x2a0] sm:$0xff] }
  0x31   : >> { %790 = vmatpush.bf16.msrb.mxu2 %v7186_v47  ;;  %349 = vmatmul.bf16.vlgmr.msra.gmra.mxu1 %v194_v61  ;;  %v7212_v47 = vld [vmem:[%s9015_s1 + $0x270] sm:$0xff] }
  0x32   : >> { %698 = vmatpush.bf16.msrb.mxu1 %v7178_v52  ;;  %536 = vmatmul.bf16.vlgmr.msra.gmra.mxu3 %v478_v58  ;;  %v7227_v52 = vld [vmem:[%s9015_s1 + $0x2e8] sm:$0xff]  ;;  %v7226_v58 = vld [vmem:[%s9015_s1 + $0x2e0] sm:$0xff] }
  0x33   : >> { %874 = vmatpush.bf16.msrb.mxu3 %v7195_v53  ;;  %v7202_v53 = vld [vmem:[%s9015_s1 + $0x220] sm:$0xff] }
  0x34   : >> { %614 = vmatpush.bf16.msrb.mxu0 %v7169_v55  ;;  %v5177_v55 = vld [vmem:[%s7714_s11 + $0x18] sm:$0xf] }
  0x35   : >> { %791 = vmatpush.bf16.msrb.mxu2 %v7185_v56  ;;  %v7928_v56 = vld [vmem:[%s7714_s11 + $0x1c] sm:$0x1]  ;;  %v1086_v61 = vunpack.c.l.b16 %v5177_v55 }
  0x36   : >> { %699 = vmatpush.bf16.msrb.mxu1 %v7177_v59  ;;  %v5127_v59 = vld [vmem:[%s7714_s11 + $0x10] sm:$0xf]  ;;  %v7260_v55 = vld [vmem:[%s9015_s1 + $0x3d8] sm:$0xff] }
  0x37   : >> { %875 = vmatpush.bf16.msrb.mxu3 %v7194_v60  ;;  %v5128_v60 = vld [vmem:[%s7714_s11 + $0x14] sm:$0x1] }
  0x38   : >> { %615 = vmatpush.bf16.msrb.mxu0 %v7168_v62  ;;  %v1087_v62 = vunpack.c.l.b16 %v7928_v56  ;;  %v7288_v56 = vld [vmem:[%s9015_s1 + $0x4b8] sm:$0xff] }
  0x39   : >> { %792 = vmatpush.bf16.msrb.mxu2 %v7184_v63  ;;  %v7201_v63 = vld [vmem:[%s9015_s1 + $0x218] sm:$0xff] }
  0x3a   : >> { %700 = vmatpush.bf16.msrb.mxu1 %v7176_v2  ;;  %v7217_v2 = vld [vmem:[%s9015_s1 + $0x298] sm:$0xff]  ;;  %v1088_v7 = vpack.c.b16 %v1087_v62, %v1086_v61  ;;  %v7240_v61 = vld [vmem:[%s9015_s1 + $0x350] sm:$0xff] }
  0x3b   : >> { %876 = vmatpush.bf16.msrb.mxu3 %v7193_v3  ;;  %v992_v3 = vunpack.c.l.b16 %v5127_v59  ;;  %v5276_v59 = vld [vmem:[%s7714_s11 + $0x18] sm:$0xe] }
  0x3c   : >> { %616 = vmatpush.bf16.msrb.mxu0 %v7167_v4  ;;  %v993_v4 = vunpack.c.l.b16 %v5128_v60  ;;  %v1090_v21 = vshrl.u32 %v1088_v7, 16 }
  0x3d   : >> { %793 = vmatpush.bf16.msrb.mxu2 %v7183_v5  ;;  %v7209_v5 = vld [vmem:[%s9015_s1 + $0x258] sm:$0xff] }
  0x3e   : >> { %701 = vmatpush.bf16.msrb.mxu1 %v7175_v8  ;;  %v7200_v8 = vld [vmem:[%s9015_s1 + $0x210] sm:$0xff] }
  0x3f   : >> { %877 = vmatpush.bf16.msrb.mxu3 %v7192_v9  ;;  %v7216_v9 = vld [vmem:[%s9015_s1 + $0x290] sm:$0xff] }
  0x40   : >> { %617 = vmatpush.bf16.msrb.mxu0 %v7166_v10  ;;  %v994_v10 = vpack.c.b16 %v993_v4, %v992_v3  ;;  %v7231_v3 = vld [vmem:[%s9015_s1 + $0x308] sm:$0xff] }
  0x41   : >> { %794 = vmatpush.bf16.msrb.mxu2 %v7182_v11  ;;  %v7208_v11 = vld [vmem:[%s9015_s1 + $0x250] sm:$0xff] }
  0x42   : >> { %702 = vmatpush.bf16.msrb.mxu1 %v7174_v14  ;;  %v1092_v14 = vshll.u32 %v1088_v7, 16  ;;  %v7239_v7 = vld [vmem:[%s9015_s1 + $0x348] sm:$0xff] }
  0x43   : >> { %878 = vmatpush.bf16.msrb.mxu3 %v7191_v15  ;;  %v7199_v15 = vld [vmem:[%s9015_s1 + $0x208] sm:$0xff] }
  0x44   : >> { %618 = vmatpush.bf16.msrb.mxu0 %v7165_v16  ;;  %v7215_v16 = vld [vmem:[%s9015_s1 + $0x288] sm:$0xff] }
  0x45   : >> { %795 = vmatpush.bf16.msrb.mxu2 %v7181_v17  ;;  %v998_v17 = vshll.u32 %v994_v10, 16 }
  0x46   : >> { %703 = vmatpush.bf16.msrb.mxu1 %v7173_v19  ;;  %v7207_v19 = vld [vmem:[%s9015_s1 + $0x248] sm:$0xff] }
  0x47   : >> { %879 = vmatpush.bf16.msrb.mxu3 %v7190_v20  ;;  %v7223_v20 = vld [vmem:[%s9015_s1 + $0x2c8] sm:$0xff]  ;;  %v1000_v31 = vrot.slane %v998_v17, 1  ;;  %v5376_v17 = vld [vmem:[%s7714_s11 + $0x20] sm:$0xf] }
  0x48   : >> { %619 = vmatpush.bf16.msrb.mxu0 %v7164_v22  ;;  %v1094_v22 = vrot.slane %v1092_v14, 1  ;;  %v7238_v14 = vld [vmem:[%s9015_s1 + $0x340] sm:$0xff] }
  0x49   : >> { %796 = vmatpush.bf16.msrb.mxu2 %v7180_v23  ;;  %v7198_v23 = vld [vmem:[%s9015_s1 + $0x200] sm:$0xff] }
  0x4a   : >> { %704 = vmatpush.bf16.msrb.mxu1 %v7172_v28  ;;  %v7254_v28 = vld [vmem:[%s9015_s1 + $0x3b8] sm:$0xff]  ;;  %v1095_v36 = vor.u32 %v1094_v22, %v1090_v21  ;;  %v5428_v21 = vld [vmem:[%s7714_s11 + $0x28] sm:$0xf]  ;;  %v7271_v22 = vld [vmem:[%s9015_s1 + $0x430] sm:$0xff] }
  0x4b   : >> { %880 = vmatpush.bf16.msrb.mxu3 %v7189_v30  ;;  %v996_v30 = vshrl.u32 %v994_v10, 16  ;;  %v7230_v10 = vld [vmem:[%s9015_s1 + $0x300] sm:$0xff] }
  0x4c   : >> { %620 = vmatpush.bf16.msrb.mxu0 %v7163_v32  ;;  %v1179_v32 = vpack.c.b16 %v993_v4, %v1178_v18  ;;  %v7248_v4 = vld [vmem:[%s9015_s1 + $0x388] sm:$0xff] }
  0x4d   : >> { %797 = vmatpush.bf16.msrb.mxu2 %v7179_v34  ;;  %v7206_v34 = vld [vmem:[%s9015_s1 + $0x240] sm:$0xff] }
  0x4e   : >> { %705 = vmatpush.bf16.msrb.mxu1 %v7171_v40  ;;  %v1001_v40 = vor.u32 %v1000_v31, %v996_v30  ;;  %v7286_v30 = vld [vmem:[%s9015_s1 + $0x4a8] sm:$0xff] }
  0x4f   : >> { %881 = vmatpush.bf16.msrb.mxu3 %v7188_v41  ;;  %621 = vmatmul.bf16.vlgmr.msrb.gmra.mxu0 %v563_v44  ;;  %v1180_v41 = vrot.slane %v1179_v32, 1  ;;  %v7235_v44 = vld [vmem:[%s9015_s1 + $0x328] sm:$0xff] }
  0x50   : >> { %957 = vmatpush.bf16.msra.mxu0 %v7205_v38  ;;  %798 = vmatmul.bf16.vlgmr.msrb.gmra.mxu2 %v740_v43  ;;  %v7245_v38 = vld [vmem:[%s9015_s1 + $0x378] sm:$0xff]  ;;  %v7263_v43 = vld [vmem:[%s9015_s1 + $0x3f0] sm:$0xff]  ;;  %v7278_v31 = vld [vmem:[%s9015_s1 + $0x468] sm:$0xff] }
  0x51   : >> { %1145 = vmatpush.bf16.msra.mxu2 %v7221_v39  ;;  %706 = vmatmul.bf16.vlgmr.msrb.gmra.mxu1 %v648_v45  ;;  %v7264_v39 = vld [vmem:[%s9015_s1 + $0x3f8] sm:$0xff]  ;;  %v7262_v45 = vld [vmem:[%s9015_s1 + $0x3e8] sm:$0xff] }
  0x52   : >> { %1051 = vmatpush.bf16.msra.mxu1 %v7213_v27  ;;  %882 = vmatmul.bf16.vlgmr.msrb.gmra.mxu3 %v5026_v46  ;;  %v7253_v27 = vld [vmem:[%s9015_s1 + $0x3b0] sm:$0xff]  ;;  %v7234_v46 = vld [vmem:[%s9015_s1 + $0x320] sm:$0xff]  ;;  %v7294_v32 = vld [vmem:[%s9015_s1 + $0x4e8] sm:$0xff] }
  0x53   : >> { %1230 = vmatpush.bf16.msra.mxu3 %v7229_v42  ;;  %v7244_v42 = vld [vmem:[%s9015_s1 + $0x370] sm:$0xff] }
  0x54   : >> { %958 = vmatpush.bf16.msra.mxu0 %v7204_v29  ;;  %v7252_v29 = vld [vmem:[%s9015_s1 + $0x3a8] sm:$0xff] }
  0x55   : >> { %1146 = vmatpush.bf16.msra.mxu2 %v7220_v33  ;;  %v7243_v33 = vld [vmem:[%s9015_s1 + $0x368] sm:$0xff] }
  0x56   : >> { %1052 = vmatpush.bf16.msra.mxu1 %v7212_v47  ;;  %v7251_v47 = vld [vmem:[%s9015_s1 + $0x3a0] sm:$0xff] }
  0x57   : >> { %1231 = vmatpush.bf16.msra.mxu3 %v7228_v48  ;;  %v7242_v48 = vld [vmem:[%s9015_s1 + $0x360] sm:$0xff] }
  0x58   : >> { %959 = vmatpush.bf16.msra.mxu0 %v7203_v49  ;;  %v7261_v49 = vld [vmem:[%s9015_s1 + $0x3e0] sm:$0xff] }
  0x59   : >> { %1147 = vmatpush.bf16.msra.mxu2 %v7219_v50  ;;  %v5325_v50 = vld [vmem:[%s7714_s11 + $0x14] sm:$0x3] }
  0x5a   : >> { %1053 = vmatpush.bf16.msra.mxu1 %v7211_v51  ;;  %v7233_v51 = vld [vmem:[%s9015_s1 + $0x318] sm:$0xff] }
  0x5b   : >> { %1232 = vmatpush.bf16.msra.mxu3 %v7227_v52  ;;  %v7250_v52 = vld [vmem:[%s9015_s1 + $0x398] sm:$0xff] }
  0x5c   : >> { %960 = vmatpush.bf16.msra.mxu0 %v7202_v53  ;;  %v1348_v53 = vunpack.c.l.b16 %v5325_v50 }
  0x5d   : >> { %1148 = vmatpush.bf16.msra.mxu2 %v7218_v54  ;;  %v7241_v54 = vld [vmem:[%s9015_s1 + $0x358] sm:$0xff] }
  0x5e   : >> { %1054 = vmatpush.bf16.msra.mxu1 %v7210_v57  ;;  %v7232_v57 = vld [vmem:[%s9015_s1 + $0x310] sm:$0xff]  ;;  %v1349_v60 = vpack.c.b16 %v1348_v53, %v1178_v18  ;;  %v7280_v18 = vld [vmem:[%s9015_s1 + $0x478] sm:$0xff]  ;;  %v5626_v53 = vld [vmem:[%s7714_s11 + $0x28] sm:$0xe] }
  0x5f   : >> { %1233 = vmatpush.bf16.msra.mxu3 %v7226_v58  ;;  %v7249_v58 = vld [vmem:[%s9015_s1 + $0x390] sm:$0xff] }
  0x60   : >> { %961 = vmatpush.bf16.msra.mxu0 %v7201_v63  ;;  %v7259_v63 = vld [vmem:[%s9015_s1 + $0x3d0] sm:$0xff] }
  0x61   : >> { %1149 = vmatpush.bf16.msra.mxu2 %v7217_v2  ;;  %v1263_v2 = vunpack.c.l.b16 %v5276_v59 }
  0x62   : >> { %1055 = vmatpush.bf16.msra.mxu1 %v7209_v5  ;;  %v1351_v5 = vshrl.u32 %v1349_v60, 16 }
  0x63   : >> { %1234 = vmatpush.bf16.msra.mxu3 %v7225_v6  ;;  %v1354_v6 = vshll.u32 %v1349_v60, 16  ;;  %v1880_v60 = vunpack.c.l.b16 %v5626_v53 }
  0x64   : >> { %962 = vmatpush.bf16.msra.mxu0 %v7200_v8  ;;  %v7258_v8 = vld [vmem:[%s9015_s1 + $0x3c8] sm:$0xff] }
  0x65   : >> { %1150 = vmatpush.bf16.msra.mxu2 %v7216_v9  ;;  %v1264_v9 = vpack.c.b16 %v1087_v62, %v1263_v2  ;;  %v1353_v62 = vrot.slane %v1351_v5, 1  ;;  %v1356_v13 = vrot.slane %v1354_v6, 2  ;;  %v7265_v5 = vld [vmem:[%s9015_s1 + $0x400] sm:$0xff] }
  0x66   : >> { %1056 = vmatpush.bf16.msra.mxu1 %v7208_v11  ;;  %v7247_v11 = vld [vmem:[%s9015_s1 + $0x380] sm:$0xff] }
  0x67   : >> { %1235 = vmatpush.bf16.msra.mxu3 %v7224_v12  ;;  %v7272_v12 = vld [vmem:[%s9015_s1 + $0x438] sm:$0xff]  ;;  %v7281_v6 = vld [vmem:[%s9015_s1 + $0x480] sm:$0xff] }
  0x68   : >> { %963 = vmatpush.bf16.msra.mxu0 %v7199_v15  ;;  %v7257_v15 = vld [vmem:[%s9015_s1 + $0x3c0] sm:$0xff] }
  0x69   : >> { %1151 = vmatpush.bf16.msra.mxu2 %v7215_v16  ;;  %v1265_v16 = vrot.slane %v1264_v9, 1 }
  0x6a   : >> { %1057 = vmatpush.bf16.msra.mxu1 %v7207_v19  ;;  %v7296_v19 = vld [vmem:[%s9015_s1 + $0x4f8] sm:$0xff] }
  0x6b   : >> { %1236 = vmatpush.bf16.msra.mxu3 %v7223_v20  ;;  %v1357_v20 = vor.u32 %v1356_v13, %v1353_v62 }
  0x6c   : >> { %964 = vmatpush.bf16.msra.mxu0 %v7198_v23  ;;  %v7287_v23 = vld [vmem:[%s9015_s1 + $0x4b0] sm:$0xff] }
  0x6d   : >> { %1152 = vmatpush.bf16.msra.mxu2 %v7214_v25  ;;  %v7279_v25 = vld [vmem:[%s9015_s1 + $0x470] sm:$0xff] }
  0x6e   : >> { %1058 = vmatpush.bf16.msra.mxu1 %v7206_v34  ;;  %v7269_v34 = vld [vmem:[%s9015_s1 + $0x420] sm:$0xff] }
  0x6f   : >> { %1237 = vmatpush.bf16.msra.mxu3 %v7222_v35  ;;  %965 = vmatmul.bf16.vlgmr.msra.gmra.mxu0 %v5078_v37  ;;  %v7285_v35 = vld [vmem:[%s9015_s1 + $0x4a0] sm:$0xff] }
  0x70   : >> { %1315 = vmatpush.bf16.msrb.mxu0 %v7237_v26  ;;  %1153 = vmatmul.bf16.vlgmr.msra.gmra.mxu2 %v1095_v36  ;;  %v7295_v26 = vld [vmem:[%s9015_s1 + $0x4f0] sm:$0xff]  ;;  %v5477_v36 = vld [vmem:[%s7714_s11 + $0x20] sm:$0xf]  ;;  %v5478_v37 = vld [vmem:[%s7714_s11 + $0x24] sm:$0x1] }
  0x71   : >> { %1491 = vmatpush.bf16.msrb.mxu2 %v7254_v28  ;;  %1059 = vmatmul.bf16.vlgmr.msra.gmra.mxu1 %v1001_v40  ;;  %v7270_v28 = vld [vmem:[%s9015_s1 + $0x428] sm:$0xff] }
  0x72   : >> { %1407 = vmatpush.bf16.msrb.mxu1 %v7245_v38  ;;  %1238 = vmatmul.bf16.vlgmr.msra.gmra.mxu3 %v1180_v41  ;;  %v7277_v38 = vld [vmem:[%s9015_s1 + $0x460] sm:$0xff]  ;;  %v5527_v40 = vld [vmem:[%s7714_s11 + $0x28] sm:$0xf]  ;;  %v5528_v41 = vld [vmem:[%s7714_s11 + $0x2c] sm:$0x1] }
  0x73   : >> { %1574 = vmatpush.bf16.msrb.mxu3 %v7264_v39  ;;  %v7293_v39 = vld [vmem:[%s9015_s1 + $0x4e0] sm:$0xff] }
  0x74   : >> { %1316 = vmatpush.bf16.msrb.mxu0 %v7236_v24  ;;  %v1609_v24 = vunpack.c.l.b16 %v5477_v36  ;;  %v5827_v36 = vld [vmem:[%s7714_s11 + $0x30] sm:$0xf] }
  0x75   : >> { %1492 = vmatpush.bf16.msrb.mxu2 %v7253_v27  ;;  %v1610_v27 = vunpack.c.l.b16 %v5478_v37  ;;  %v8258_v37 = vld [vmem:[%s7714_s11 + $0x34] sm:$0x1] }
  0x76   : >> { %1408 = vmatpush.bf16.msrb.mxu1 %v7244_v42  ;;  %v7268_v42 = vld [vmem:[%s9015_s1 + $0x418] sm:$0xff] }
  0x77   : >> { %1575 = vmatpush.bf16.msrb.mxu3 %v7263_v43  ;;  %v7284_v43 = vld [vmem:[%s9015_s1 + $0x498] sm:$0xff] }
  0x78   : >> { %1317 = vmatpush.bf16.msrb.mxu0 %v7235_v44  ;;  %v1703_v44 = vunpack.c.l.b16 %v5527_v40  ;;  %v7300_v40 = vld [vmem:[%s9015_s1 + $0x518] sm:$0xff] }
  0x79   : >> { %1493 = vmatpush.bf16.msrb.mxu2 %v7252_v29  ;;  %v1704_v29 = vunpack.c.l.b16 %v5528_v41  ;;  %v7319_v41 = vld [vmem:[%s9015_s1 + $0x598] sm:$0xff] }
  0x7a   : >> { %1409 = vmatpush.bf16.msrb.mxu1 %v7243_v33  ;;  %v7276_v33 = vld [vmem:[%s9015_s1 + $0x458] sm:$0xff] }
  0x7b   : >> { %1576 = vmatpush.bf16.msrb.mxu3 %v7262_v45  ;;  %v7292_v45 = vld [vmem:[%s9015_s1 + $0x4d8] sm:$0xff]  ;;  %v1705_v50 = vpack.c.b16 %v1704_v29, %v1703_v44 }
  0x7c   : >> { %1318 = vmatpush.bf16.msrb.mxu0 %v7234_v46  ;;  %v1611_v46 = vpack.c.b16 %v1610_v27, %v1609_v24  ;;  %v7327_v44 = vld [vmem:[%s9015_s1 + $0x5d8] sm:$0xff] }
  0x7d   : >> { %1494 = vmatpush.bf16.msrb.mxu2 %v7251_v47  ;;  %v7267_v47 = vld [vmem:[%s9015_s1 + $0x410] sm:$0xff]  ;;  %v1709_v59 = vshll.u32 %v1705_v50, 16  ;;  %v1707_v9 = vshrl.u32 %v1705_v50, 16 }
  0x7e   : >> { %1410 = vmatpush.bf16.msrb.mxu1 %v7242_v48  ;;  %v7283_v48 = vld [vmem:[%s9015_s1 + $0x490] sm:$0xff]  ;;  %v1613_v2 = vshrl.u32 %v1611_v46, 16 }
  0x7f   : >> { %1577 = vmatpush.bf16.msrb.mxu3 %v7261_v49  ;;  %v8171_v49 = vld [vmem:[%s7714_s11 + $0x20] sm:$0xe] }
  0x80   : >> { %1319 = vmatpush.bf16.msrb.mxu0 %v7233_v51  ;;  %v7275_v51 = vld [vmem:[%s9015_s1 + $0x450] sm:$0xff] }
  0x81   : >> { %1495 = vmatpush.bf16.msrb.mxu2 %v7250_v52  ;;  %v7291_v52 = vld [vmem:[%s9015_s1 + $0x4d0] sm:$0xff] }
  0x82   : >> { %1411 = vmatpush.bf16.msrb.mxu1 %v7241_v54  ;;  %v1615_v54 = vshll.u32 %v1611_v46, 16  ;;  %v7318_v46 = vld [vmem:[%s9015_s1 + $0x590] sm:$0xff] }
  0x83   : >> { %1578 = vmatpush.bf16.msrb.mxu3 %v7260_v55  ;;  %v1795_v55 = vunpack.c.l.b16 %v8171_v49  ;;  %v7308_v49 = vld [vmem:[%s9015_s1 + $0x550] sm:$0xff] }
  0x84   : >> { %1320 = vmatpush.bf16.msrb.mxu0 %v7232_v57  ;;  %v7266_v57 = vld [vmem:[%s9015_s1 + $0x408] sm:$0xff] }
  0x85   : >> { %1496 = vmatpush.bf16.msrb.mxu2 %v7249_v58  ;;  %v7282_v58 = vld [vmem:[%s9015_s1 + $0x488] sm:$0xff] }
  0x86   : >> { %1412 = vmatpush.bf16.msrb.mxu1 %v7240_v61  ;;  %v7274_v61 = vld [vmem:[%s9015_s1 + $0x448] sm:$0xff] }
  0x87   : >> { %1579 = vmatpush.bf16.msrb.mxu3 %v7259_v63  ;;  %v7290_v63 = vld [vmem:[%s9015_s1 + $0x4c8] sm:$0xff] }
  0x88   : >> { %1321 = vmatpush.bf16.msrb.mxu0 %v7231_v3  ;;  %v1617_v3 = vrot.slane %v1615_v54, 1 }
  0x89   : >> { %1497 = vmatpush.bf16.msrb.mxu2 %v7248_v4  ;;  %v1796_v4 = vpack.c.b16 %v1610_v27, %v1795_v55  ;;  %v2226_v27 = vunpack.c.l.b16 %v5827_v36 }
  0x8a   : >> { %1413 = vmatpush.bf16.msrb.mxu1 %v7239_v7  ;;  %v7304_v7 = vld [vmem:[%s9015_s1 + $0x538] sm:$0xff]  ;;  %v1618_v62 = vor.u32 %v1617_v3, %v1613_v2 }
  0x8b   : >> { %1580 = vmatpush.bf16.msrb.mxu3 %v7258_v8  ;;  %v7323_v8 = vld [vmem:[%s9015_s1 + $0x5b8] sm:$0xff]  ;;  %v1797_v13 = vrot.slane %v1796_v4, 1 }
  0x8c   : >> { %1322 = vmatpush.bf16.msrb.mxu0 %v7230_v10  ;;  %v1711_v10 = vrot.slane %v1709_v59, 1  ;;  %v7317_v59 = vld [vmem:[%s9015_s1 + $0x588] sm:$0xff] }
  0x8d   : >> { %1498 = vmatpush.bf16.msrb.mxu2 %v7247_v11  ;;  %v1881_v11 = vpack.c.b16 %v1704_v29, %v1880_v60 }
  0x8e   : >> { %1414 = vmatpush.bf16.msrb.mxu1 %v7238_v14  ;;  %v7313_v14 = vld [vmem:[%s9015_s1 + $0x578] sm:$0xff] }
  0x8f   : >> { %1581 = vmatpush.bf16.msrb.mxu3 %v7257_v15  ;;  %1323 = vmatmul.bf16.vlgmr.msrb.gmra.mxu0 %v1265_v16  ;;  %v7331_v15 = vld [vmem:[%s9015_s1 + $0x5f8] sm:$0xff]  ;;  %v1712_v16 = vor.u32 %v1711_v10, %v1707_v9 }
  0x90   : >> { %1668 = vmatpush.bf16.msra.mxu0 %v7272_v12  ;;  %1499 = vmatmul.bf16.vlgmr.msrb.gmra.mxu2 %v5376_v17  ;;  %v7273_v12 = vld [vmem:[%s9015_s1 + $0x440] sm:$0xff]  ;;  %v1882_v17 = vrot.slane %v1881_v11, 1 }
  0x91   : >> { %1847 = vmatpush.bf16.msra.mxu2 %v7288_v56  ;;  %1415 = vmatmul.bf16.vlgmr.msrb.gmra.mxu1 %v1357_v20  ;;  %v7289_v56 = vld [vmem:[%s9015_s1 + $0x4c0] sm:$0xff]  ;;  %v7312_v20 = vld [vmem:[%s9015_s1 + $0x570] sm:$0xff] }
  0x92   : >> { %1762 = vmatpush.bf16.msra.mxu1 %v7280_v18  ;;  %1582 = vmatmul.bf16.vlgmr.msrb.gmra.mxu3 %v5428_v21  ;;  %v7303_v18 = vld [vmem:[%s9015_s1 + $0x530] sm:$0xff] }
  0x93   : >> { %1932 = vmatpush.bf16.msra.mxu3 %v7296_v19  ;;  %v7322_v19 = vld [vmem:[%s9015_s1 + $0x5b0] sm:$0xff] }
  0x94   : >> { %1669 = vmatpush.bf16.msra.mxu0 %v7271_v22  ;;  %v7330_v21 = vld [vmem:[%s9015_s1 + $0x5f0] sm:$0xff]  ;;  %v7302_v22 = vld [vmem:[%s9015_s1 + $0x528] sm:$0xff] }
  0x95   : >> { %1848 = vmatpush.bf16.msra.mxu2 %v7287_v23  ;;  %v7321_v23 = vld [vmem:[%s9015_s1 + $0x5a8] sm:$0xff] }
  0x96   : >> { %1763 = vmatpush.bf16.msra.mxu1 %v7279_v25  ;;  %v7311_v25 = vld [vmem:[%s9015_s1 + $0x568] sm:$0xff] }
  0x97   : >> { %1933 = vmatpush.bf16.msra.mxu3 %v7295_v26  ;;  %v7329_v26 = vld [vmem:[%s9015_s1 + $0x5e8] sm:$0xff] }
  0x98   : >> { %1670 = vmatpush.bf16.msra.mxu0 %v7270_v28  ;;  %v7301_v28 = vld [vmem:[%s9015_s1 + $0x520] sm:$0xff] }
  0x99   : >> { %1849 = vmatpush.bf16.msra.mxu2 %v7286_v30  ;;  %v7320_v30 = vld [vmem:[%s9015_s1 + $0x5a0] sm:$0xff] }
  0x9a   : >> { %1764 = vmatpush.bf16.msra.mxu1 %v7278_v31  ;;  %v5675_v31 = vld [vmem:[%s7714_s11 + $0x24] sm:$0x3] }
  0x9b   : >> { %1934 = vmatpush.bf16.msra.mxu3 %v7294_v32  ;;  %v7310_v32 = vld [vmem:[%s9015_s1 + $0x560] sm:$0xff] }
  0x9c   : >> { %1671 = vmatpush.bf16.msra.mxu0 %v7269_v34 }
  0x9d   : >> { %1850 = vmatpush.bf16.msra.mxu2 %v7285_v35  ;;  %v7328_v35 = vld [vmem:[%s9015_s1 + $0x5e0] sm:$0xff] }
  0x9e   : >> { %1765 = vmatpush.bf16.msra.mxu1 %v7277_v38 }
  0x9f   : >> { %1935 = vmatpush.bf16.msra.mxu3 %v7293_v39  ;;  %v1965_v39 = vunpack.c.l.b16 %v5675_v31 }
  0xa0   : >> { %1672 = vmatpush.bf16.msra.mxu0 %v7268_v42  ;;  %v2227_v42 = vunpack.c.l.b16 %v8258_v37  ;;  %v7382_v37 = vld [vmem:[%s9015_s1 + $0x778] sm:$0xff] }
  0xa1   : >> { %1851 = vmatpush.bf16.msra.mxu2 %v7284_v43  ;;  %v7309_v43 = vld [vmem:[%s9015_s1 + $0x558] sm:$0xff]  ;;  %v1966_v29 = vpack.c.b16 %v1965_v39, %v1795_v55 }
  0xa2   : >> { %1766 = vmatpush.bf16.msra.mxu1 %v7276_v33 }
  0xa3   : >> { %1936 = vmatpush.bf16.msra.mxu3 %v7292_v45  ;;  %v7299_v45 = vld [vmem:[%s9015_s1 + $0x510] sm:$0xff]  ;;  %v1968_v54 = vshrl.u32 %v1966_v29, 16  ;;  %v1971_v55 = vshll.u32 %v1966_v29, 16  ;;  %v7351_v29 = vld [vmem:[%s9015_s1 + $0x698] sm:$0xff] }
  0xa4   : >> { %1673 = vmatpush.bf16.msra.mxu0 %v7267_v47 }
  0xa5   : >> { %1852 = vmatpush.bf16.msra.mxu2 %v7283_v48  ;;  %v2228_v48 = vpack.c.b16 %v2227_v42, %v2226_v27  ;;  %v1970_v2 = vrot.slane %v1968_v54, 1  ;;  %v1973_v3 = vrot.slane %v1971_v55, 2  ;;  %v5976_v54 = vld [vmem:[%s7714_s11 + $0x38] sm:$0xe] }
  0xa6   : >> { %1767 = vmatpush.bf16.msra.mxu1 %v7275_v51 }
  0xa7   : >> { %1937 = vmatpush.bf16.msra.mxu3 %v7291_v52  ;;  %v7326_v52 = vld [vmem:[%s9015_s1 + $0x5d0] sm:$0xff]  ;;  %v2232_v60 = vshll.u32 %v2228_v48, 16  ;;  %v2230_v9 = vshrl.u32 %v2228_v48, 16 }
  0xa8   : >> { %1674 = vmatpush.bf16.msra.mxu0 %v7266_v57 }
  0xa9   : >> { %1853 = vmatpush.bf16.msra.mxu2 %v7282_v58  ;;  %v7298_v58 = vld [vmem:[%s9015_s1 + $0x508] sm:$0xff]  ;;  %v2234_v10 = vrot.slane %v2232_v60, 1  ;;  %v7358_v60 = vld [vmem:[%s9015_s1 + $0x6d0] sm:$0xff] }
  0xaa   : >> { %1768 = vmatpush.bf16.msra.mxu1 %v7274_v61  ;;  %v7307_v61 = vld [vmem:[%s9015_s1 + $0x548] sm:$0xff] }
  0xab   : >> { %1938 = vmatpush.bf16.msra.mxu3 %v7290_v63  ;;  %v7325_v63 = vld [vmem:[%s9015_s1 + $0x5c8] sm:$0xff] }
  0xac   : >> { %1675 = vmatpush.bf16.msra.mxu0 %v7265_v5  ;;  %v289_v34 = vpop.f32.mrf.mxu0  ;;  %v7297_v5 = vld [vmem:[%s9015_s1 + $0x500] sm:$0xff] }
  0xad   : >> { %1854 = vmatpush.bf16.msra.mxu2 %v7281_v6  ;;  %v7316_v6 = vld [vmem:[%s9015_s1 + $0x580] sm:$0xff] }
  0xae   : >> { %1769 = vmatpush.bf16.msra.mxu1 %v7273_v12  ;;  %v350_v38 = vpop.f32.mrf.mxu1  ;;  %v7306_v12 = vld [vmem:[%s9015_s1 + $0x540] sm:$0xff] }
  0xaf   : >> { %1939 = vmatpush.bf16.msra.mxu3 %v7289_v56  ;;  %1676 = vmatmul.bf16.vlgmr.msra.gmra.mxu0 %v1618_v62  ;;  %v351_v24 = vadd.f32 %v350_v38, %v289_v34  ;;  %v7324_v56 = vld [vmem:[%s9015_s1 + $0x5c0] sm:$0xff]  ;;  %v1974_v62 = vor.u32 %v1973_v3, %v1970_v2  ;;  %v5878_v34 = vld [vmem:[%s7714_s11 + $0x3c] sm:$0x1]  ;;  %v2497_v2 = vunpack.c.l.b16 %v5976_v54  ;;  %v7333_v3 = vld [vmem:[%s9015_s1 + $0x608] sm:$0xff] }
  0xb0   : >> { %2024 = vmatpush.bf16.msrb.mxu0 %v7304_v7  ;;  %1855 = vmatmul.bf16.vlgmr.msra.gmra.mxu2 %v1797_v13  ;;  %v7339_v7 = vld [vmem:[%s9015_s1 + $0x638] sm:$0xff]  ;;  %v7360_v38 = vld [vmem:[%s9015_s1 + $0x6e0] sm:$0xff] }
  0xb1   : >> { %2191 = vmatpush.bf16.msrb.mxu2 %v7323_v8  ;;  %1770 = vmatmul.bf16.vlgmr.msra.gmra.mxu1 %v1712_v16  ;;  %v7355_v8 = vld [vmem:[%s9015_s1 + $0x6b8] sm:$0xff]  ;;  %v2235_v16 = vor.u32 %v2234_v10, %v2230_v9 }
  0xb2   : >> { %2108 = vmatpush.bf16.msrb.mxu1 %v7313_v14  ;;  %1940 = vmatmul.bf16.vlgmr.msra.gmra.mxu3 %v1882_v17  ;;  %v5778_v13 = vld [vmem:[%s7714_s11 + $0x38] sm:$0xf]  ;;  %v5726_v17 = vld [vmem:[%s7714_s11 + $0x30] sm:$0xf] }
  0xb3   : >> { %2285 = vmatpush.bf16.msrb.mxu3 %v7331_v15  ;;  %v443_v33 = vpop.f32.mrf.mxu2  ;;  %v7347_v14 = vld [vmem:[%s9015_s1 + $0x678] sm:$0xff] }
  0xb4   : >> { %2025 = vmatpush.bf16.msrb.mxu0 %v7303_v18  ;;  %v447_v47 = vadd.f32 %v443_v33, %v351_v24  ;;  %v291_v51 = vpop.f32.mrf.mxu0  ;;  %v7363_v15 = vld [vmem:[%s9015_s1 + $0x6f8] sm:$0xff]  ;;  %v7338_v18 = vld [vmem:[%s9015_s1 + $0x630] sm:$0xff] }
  0xb5   : >> { %2192 = vmatpush.bf16.msrb.mxu2 %v7322_v19  ;;  %v537_v50 = vpop.f32.mrf.mxu3  ;;  %v7354_v19 = vld [vmem:[%s9015_s1 + $0x6b0] sm:$0xff] }
  0xb6   : >> { %2109 = vmatpush.bf16.msrb.mxu1 %v7312_v20  ;;  %v8289_v53 = vadd.f32 %v537_v50, %v447_v47  ;;  %v352_v57 = vpop.f32.mrf.mxu1  ;;  %v7346_v20 = vld [vmem:[%s9015_s1 + $0x670] sm:$0xff]  ;;  %v7359_v47 = vld [vmem:[%s9015_s1 + $0x6d8] sm:$0xff] }
  0xb7   : >> { %2286 = vmatpush.bf16.msrb.mxu3 %v7330_v21  ;;  %v7362_v21 = vld [vmem:[%s9015_s1 + $0x6f0] sm:$0xff] }
  0xb8   : >> { %2026 = vmatpush.bf16.msrb.mxu0 %v7302_v22  ;;  %v7337_v22 = vld [vmem:[%s9015_s1 + $0x628] sm:$0xff] }
  0xb9   : >> { %2193 = vmatpush.bf16.msrb.mxu2 %v7321_v23  ;;  %v7353_v23 = vld [vmem:[%s9015_s1 + $0x6a8] sm:$0xff] }
  0xba   : >> { %2110 = vmatpush.bf16.msrb.mxu1 %v7311_v25  ;;  %v7345_v25 = vld [vmem:[%s9015_s1 + $0x668] sm:$0xff] }
  0xbb   : >> { %2287 = vmatpush.bf16.msrb.mxu3 %v7329_v26  ;;  %v445_v4 = vpop.f32.mrf.mxu2  ;;  %v7361_v26 = vld [vmem:[%s9015_s1 + $0x6e8] sm:$0xff] }
  0xbc   : >> { %2027 = vmatpush.bf16.msrb.mxu0 %v7301_v28  ;;  %v7336_v28 = vld [vmem:[%s9015_s1 + $0x620] sm:$0xff]  ;;  %v7349_v4 = vld [vmem:[%s9015_s1 + $0x688] sm:$0xff] }
  0xbd   : >> { %2194 = vmatpush.bf16.msrb.mxu2 %v7320_v30  ;;  %v539_v11 = vpop.f32.mrf.mxu3  ;;  %v7352_v30 = vld [vmem:[%s9015_s1 + $0x6a0] sm:$0xff] }
  0xbe   : >> { %2111 = vmatpush.bf16.msrb.mxu1 %v7310_v32  ;;  %v5877_v32 = vld [vmem:[%s7714_s11 + $0x38] sm:$0xf] }
  0xbf   : >> { %2288 = vmatpush.bf16.msrb.mxu3 %v7328_v35  ;;  %v7344_v35 = vld [vmem:[%s9015_s1 + $0x660] sm:$0xff]  ;;  %v2320_v27 = vunpack.c.l.b16 %v5877_v32  ;;  %v7370_v32 = vld [vmem:[%s9015_s1 + $0x728] sm:$0xff] }
  0xc0   : >> { %2028 = vmatpush.bf16.msrb.mxu0 %v7300_v40  ;;  %v5927_v40 = vld [vmem:[%s7714_s11 + $0x30] sm:$0xe] }
  0xc1   : >> { %2195 = vmatpush.bf16.msrb.mxu2 %v7319_v41  ;;  %v6025_v41 = vld [vmem:[%s7714_s11 + $0x34] sm:$0x3]  ;;  %v2412_v33 = vunpack.c.l.b16 %v5927_v40  ;;  %v7369_v40 = vld [vmem:[%s9015_s1 + $0x720] sm:$0xff] }
  0xc2   : >> { %2112 = vmatpush.bf16.msrb.mxu1 %v7309_v43  ;;  %v2321_v43 = vunpack.c.l.b16 %v5878_v34  ;;  %v7388_v34 = vld [vmem:[%s9015_s1 + $0x7a8] sm:$0xff] }
  0xc3   : >> { %2289 = vmatpush.bf16.msrb.mxu3 %v7327_v44  ;;  %v7335_v44 = vld [vmem:[%s9015_s1 + $0x618] sm:$0xff] }
  0xc4   : >> { %2029 = vmatpush.bf16.msrb.mxu0 %v7299_v45  ;;  %v2582_v45 = vunpack.c.l.b16 %v6025_v41  ;;  %v2322_v51 = vpack.c.b16 %v2321_v43, %v2320_v27  ;;  %v7387_v41 = vld [vmem:[%s9015_s1 + $0x7a0] sm:$0xff] }
  0xc5   : >> { %2196 = vmatpush.bf16.msrb.mxu2 %v7318_v46  ;;  %v7343_v46 = vld [vmem:[%s9015_s1 + $0x658] sm:$0xff]  ;;  %v6177_v27 = vld [vmem:[%s7714_s11 + $0x40] sm:$0xf] }
  0xc6   : >> { %2113 = vmatpush.bf16.msrb.mxu1 %v7308_v49  ;;  %v7334_v49 = vld [vmem:[%s9015_s1 + $0x610] sm:$0xff]  ;;  %v2324_v10 = vshrl.u32 %v2322_v51, 16 }
  0xc7   : >> { %2290 = vmatpush.bf16.msrb.mxu3 %v7326_v52  ;;  %v7350_v52 = vld [vmem:[%s9015_s1 + $0x690] sm:$0xff] }
  0xc8   : >> { %2030 = vmatpush.bf16.msrb.mxu0 %v7298_v58  ;;  %v2583_v58 = vpack.c.b16 %v2582_v45, %v2412_v33  ;;  %v6227_v45 = vld [vmem:[%s7714_s11 + $0x48] sm:$0xf] }
  0xc9   : >> { %2197 = vmatpush.bf16.msrb.mxu2 %v7317_v59  ;;  %v7342_v59 = vld [vmem:[%s9015_s1 + $0x650] sm:$0xff] }
  0xca   : >> { %2114 = vmatpush.bf16.msrb.mxu1 %v7307_v61 }
  0xcb   : >> { %2291 = vmatpush.bf16.msrb.mxu3 %v7325_v63  ;;  %v2326_v63 = vshll.u32 %v2322_v51, 16  ;;  %v7386_v51 = vld [vmem:[%s9015_s1 + $0x798] sm:$0xff] }
  0xcc   : >> { %2031 = vmatpush.bf16.msrb.mxu0 %v7297_v5  ;;  %v622_v31 = vpop.f32.mrf.mxu0  ;;  %v2585_v5 = vshrl.u32 %v2583_v58, 16 }
  0xcd   : >> { %2198 = vmatpush.bf16.msrb.mxu2 %v7316_v6  ;;  %v626_v36 = vadd.f32 %v622_v31, %v8289_v53  ;;  %v2588_v6 = vshll.u32 %v2583_v58, 16  ;;  %v2328_v11 = vrot.slane %v2326_v63, 1  ;;  %v7397_v31 = vld [vmem:[%s9015_s1 + $0x7f0] sm:$0xff] }
  0xce   : >> { %2115 = vmatpush.bf16.msrb.mxu1 %v7306_v12  ;;  %v707_v39 = vpop.f32.mrf.mxu1  ;;  %v2498_v12 = vpack.c.b16 %v2321_v43, %v2497_v2  ;;  %v8468_v43 = vld [vmem:[%s7714_s11 + $0x44] sm:$0x1]  ;;  %v7367_v63 = vld [vmem:[%s9015_s1 + $0x710] sm:$0xff] }
  0xcf   : >> { %2292 = vmatpush.bf16.msrb.mxu3 %v7324_v56  ;;  %2032 = vmatmul.bf16.vlgmr.msrb.gmra.mxu0 %v1974_v62  ;;  %v711_v24 = vadd.f32 %v707_v39, %v626_v36  ;;  %v7332_v56 = vld [vmem:[%s9015_s1 + $0x600] sm:$0xff]  ;;  %v7396_v36 = vld [vmem:[%s9015_s1 + $0x7e8] sm:$0xff]  ;;  %v7385_v2 = vld [vmem:[%s9015_s1 + $0x790] sm:$0xff] }
  0xd0   : >> { %2379 = vmatpush.bf16.msra.mxu0 %v7339_v7  ;;  %2199 = vmatmul.bf16.vlgmr.msrb.gmra.mxu2 %v5778_v13  ;;  %v7341_v7 = vld [vmem:[%s9015_s1 + $0x648] sm:$0xff]  ;;  %v7348_v62 = vld [vmem:[%s9015_s1 + $0x680] sm:$0xff] }
  0xd1   : >> { %2549 = vmatpush.bf16.msra.mxu2 %v7355_v8  ;;  %2116 = vmatmul.bf16.vlgmr.msrb.gmra.mxu1 %v5726_v17  ;;  %v7357_v8 = vld [vmem:[%s9015_s1 + $0x6c8] sm:$0xff]  ;;  %v2587_v17 = vrot.slane %v2585_v5, 1  ;;  %v7377_v5 = vld [vmem:[%s9015_s1 + $0x750] sm:$0xff] }
  0xd2   : >> { %2464 = vmatpush.bf16.msra.mxu1 %v7347_v14  ;;  %2293 = vmatmul.bf16.vlgmr.msrb.gmra.mxu3 %v2235_v16  ;;  %v7372_v14 = vld [vmem:[%s9015_s1 + $0x738] sm:$0xff]  ;;  %v2413_v16 = vpack.c.b16 %v2227_v42, %v2412_v33  ;;  %v7395_v33 = vld [vmem:[%s9015_s1 + $0x7e0] sm:$0xff] }
  0xd3   : >> { %2641 = vmatpush.bf16.msra.mxu3 %v7363_v15  ;;  %v799_v48 = vpop.f32.mrf.mxu2  ;;  %v7390_v15 = vld [vmem:[%s9015_s1 + $0x7b8] sm:$0xff] }
  0xd4   : >> { %2380 = vmatpush.bf16.msra.mxu0 %v7338_v18  ;;  %v803_v50 = vadd.f32 %v799_v48, %v711_v24  ;;  %v624_v55 = vpop.f32.mrf.mxu0  ;;  %v2590_v18 = vrot.slane %v2588_v6, 2  ;;  %v7398_v42 = vld [vmem:[%s9015_s1 + $0x7f8] sm:$0xff]  ;;  %v2844_v48 = vunpack.c.l.b16 %v8468_v43  ;;  %v7393_v6 = vld [vmem:[%s9015_s1 + $0x7d0] sm:$0xff] }
  0xd5   : >> { %2550 = vmatpush.bf16.msra.mxu2 %v7354_v19  ;;  %v883_v53 = vpop.f32.mrf.mxu3  ;;  %v7340_v19 = vld [vmem:[%s9015_s1 + $0x640] sm:$0xff]  ;;  %v7378_v55 = vld [vmem:[%s9015_s1 + $0x758] sm:$0xff] }
  0xd6   : >> { %2465 = vmatpush.bf16.msra.mxu1 %v7346_v20  ;;  %v8389_v57 = vadd.f32 %v883_v53, %v803_v50  ;;  %v709_v61 = vpop.f32.mrf.mxu1  ;;  %v7356_v20 = vld [vmem:[%s9015_s1 + $0x6c0] sm:$0xff]  ;;  %v7368_v50 = vld [vmem:[%s9015_s1 + $0x718] sm:$0xff]  ;;  %v2937_v53 = vunpack.c.l.b16 %v6227_v45 }
  0xd7   : >> { %2642 = vmatpush.bf16.msra.mxu3 %v7362_v21  ;;  %v2329_v21 = vor.u32 %v2328_v11, %v2324_v10  ;;  %v7457_v43 = vld [vmem:[%s9015_s1 + $0x9b8] sm:$0xff] }
  0xd8   : >> { %2381 = vmatpush.bf16.msra.mxu0 %v7337_v22  ;;  %v2499_v22 = vrot.slane %v2498_v12, 1  ;;  %v7376_v12 = vld [vmem:[%s9015_s1 + $0x748] sm:$0xff] }
  0xd9   : >> { %2551 = vmatpush.bf16.msra.mxu2 %v7353_v23  ;;  %v2414_v23 = vrot.slane %v2413_v16, 1  ;;  %v7383_v16 = vld [vmem:[%s9015_s1 + $0x780] sm:$0xff] }
  0xda   : >> { %2466 = vmatpush.bf16.msra.mxu1 %v7345_v25  ;;  %v2591_v25 = vor.u32 %v2590_v18, %v2587_v17  ;;  %v7406_v17 = vld [vmem:[%s9015_s1 + $0x838] sm:$0xff] }
  0xdb   : >> { %2643 = vmatpush.bf16.msra.mxu3 %v7361_v26  ;;  %v801_v9 = vpop.f32.mrf.mxu2  ;;  %v7371_v26 = vld [vmem:[%s9015_s1 + $0x730] sm:$0xff]  ;;  %v7422_v18 = vld [vmem:[%s9015_s1 + $0x8b8] sm:$0xff] }
  0xdc   : >> { %2382 = vmatpush.bf16.msra.mxu0 %v7336_v28  ;;  %v7389_v28 = vld [vmem:[%s9015_s1 + $0x7b0] sm:$0xff]  ;;  %v7384_v9 = vld [vmem:[%s9015_s1 + $0x788] sm:$0xff] }
  0xdd   : >> { %2552 = vmatpush.bf16.msra.mxu2 %v7352_v30  ;;  %v885_v13 = vpop.f32.mrf.mxu3  ;;  %v7381_v30 = vld [vmem:[%s9015_s1 + $0x770] sm:$0xff] }
  0xde   : >> { %2467 = vmatpush.bf16.msra.mxu1 %v7344_v35  ;;  %v7380_v35 = vld [vmem:[%s9015_s1 + $0x768] sm:$0xff] }
  0xdf   : >> { %2644 = vmatpush.bf16.msra.mxu3 %v7360_v38 }
  0xe0   : >> { %2383 = vmatpush.bf16.msra.mxu0 %v7335_v44 }
  0xe1   : >> { %2553 = vmatpush.bf16.msra.mxu2 %v7351_v29  ;;  %v7379_v29 = vld [vmem:[%s9015_s1 + $0x760] sm:$0xff] }
  0xe2   : >> { %2468 = vmatpush.bf16.msra.mxu1 %v7343_v46  ;;  %v8478_v46 = vld [vmem:[%s7714_s11 + $0x4c] sm:$0x1] }
  0xe3   : >> { %2645 = vmatpush.bf16.msra.mxu3 %v7359_v47  ;;  %v2843_v47 = vunpack.c.l.b16 %v6177_v27  ;;  %v2938_v54 = vunpack.c.l.b16 %v8478_v46  ;;  %v7419_v27 = vld [vmem:[%s9015_s1 + $0x8a0] sm:$0xff]  ;;  %v7449_v46 = vld [vmem:[%s9015_s1 + $0x978] sm:$0xff] }
  0xe4   : >> { %2384 = vmatpush.bf16.msra.mxu0 %v7334_v49 }
  0xe5   : >> { %2554 = vmatpush.bf16.msra.mxu2 %v7350_v52  ;;  %v2845_v61 = vpack.c.b16 %v2844_v48, %v2843_v47  ;;  %v7411_v47 = vld [vmem:[%s9015_s1 + $0x860] sm:$0xff] }
  0xe6   : >> { %2469 = vmatpush.bf16.msra.mxu1 %v7342_v59 }
  0xe7   : >> { %2646 = vmatpush.bf16.msra.mxu3 %v7358_v60  ;;  %v2847_v13 = vshrl.u32 %v2845_v61, 16 }
  0xe8   : >> { %2385 = vmatpush.bf16.msra.mxu0 %v7333_v3 }
  0xe9   : >> { %2555 = vmatpush.bf16.msra.mxu2 %v7349_v4  ;;  %v2939_v4 = vpack.c.b16 %v2938_v54, %v2937_v53  ;;  %v7418_v53 = vld [vmem:[%s9015_s1 + $0x898] sm:$0xff] }
  0xea   : >> { %2470 = vmatpush.bf16.msra.mxu1 %v7341_v7  ;;  %v2849_v7 = vshll.u32 %v2845_v61, 16 }
  0xeb   : >> { %2647 = vmatpush.bf16.msra.mxu3 %v7357_v8  ;;  %v7366_v8 = vld [vmem:[%s9015_s1 + $0x708] sm:$0xff]  ;;  %v2943_v11 = vshll.u32 %v2939_v4, 16 }
  0xec   : >> { %2386 = vmatpush.bf16.msra.mxu0 %v7332_v56  ;;  %v966_v38 = vpop.f32.mrf.mxu0  ;;  %v7392_v56 = vld [vmem:[%s9015_s1 + $0x7c8] sm:$0xff] }
  0xed   : >> { %2556 = vmatpush.bf16.msra.mxu2 %v7348_v62  ;;  %v970_v39 = vadd.f32 %v966_v38, %v8389_v57  ;;  %v7394_v57 = vld [vmem:[%s9015_s1 + $0x7d8] sm:$0xff]  ;;  %v7412_v38 = vld [vmem:[%s9015_s1 + $0x868] sm:$0xff] }
  0xee   : >> { %2471 = vmatpush.bf16.msra.mxu1 %v7340_v19  ;;  %v1060_v24 = vpop.f32.mrf.mxu1  ;;  %v2941_v19 = vshrl.u32 %v2939_v4, 16  ;;  %v7417_v4 = vld [vmem:[%s9015_s1 + $0x890] sm:$0xff] }
  0xef   : >> { %2648 = vmatpush.bf16.msra.mxu3 %v7356_v20  ;;  %2387 = vmatmul.bf16.vlgmr.msra.gmra.mxu0 %v2329_v21  ;;  %v1064_v44 = vadd.f32 %v1060_v24, %v970_v39  ;;  %v2945_v20 = vrot.slane %v2943_v11, 1  ;;  %v7375_v21 = vld [vmem:[%s9015_s1 + $0x740] sm:$0xff]  ;;  %v7429_v39 = vld [vmem:[%s9015_s1 + $0x8e8] sm:$0xff] }
  0xf0   : >> { %2725 = vmatpush.bf16.msrb.mxu0 %v7372_v14  ;;  %2557 = vmatmul.bf16.vlgmr.msra.gmra.mxu2 %v2499_v22  ;;  %v2851_v14 = vrot.slane %v2849_v7, 1  ;;  %v7391_v22 = vld [vmem:[%s9015_s1 + $0x7c0] sm:$0xff]  ;;  %v7426_v7 = vld [vmem:[%s9015_s1 + $0x8d0] sm:$0xff]  ;;  %v7400_v11 = vld [vmem:[%s9015_s1 + $0x808] sm:$0xff] }
  0xf1   : >> { %2902 = vmatpush.bf16.msrb.mxu2 %v7390_v15  ;;  %2472 = vmatmul.bf16.vlgmr.msra.gmra.mxu1 %v2414_v23  ;;  %v7365_v15 = vld [vmem:[%s9015_s1 + $0x700] sm:$0xff]  ;;  %v7414_v23 = vld [vmem:[%s9015_s1 + $0x878] sm:$0xff] }
  0xf2   : >> { %2808 = vmatpush.bf16.msrb.mxu1 %v7382_v37  ;;  %2649 = vmatmul.bf16.vlgmr.msra.gmra.mxu3 %v2591_v25  ;;  %v2852_v37 = vor.u32 %v2851_v14, %v2847_v13  ;;  %v7431_v25 = vld [vmem:[%s9015_s1 + $0x8f8] sm:$0xff]  ;;  %v7403_v24 = vld [vmem:[%s9015_s1 + $0x820] sm:$0xff]  ;;  %v7408_v13 = vld [vmem:[%s9015_s1 + $0x848] sm:$0xff] }
  0xf3   : >> { %2996 = vmatpush.bf16.msrb.mxu3 %v7398_v42  ;;  %v1154_v49 = vpop.f32.mrf.mxu2  ;;  %v6076_v42 = vld [vmem:[%s7714_s11 + $0x40] sm:$0xf]  ;;  %v7425_v14 = vld [vmem:[%s9015_s1 + $0x8c8] sm:$0xff] }
  0xf4   : >> { %2726 = vmatpush.bf16.msrb.mxu0 %v7371_v26  ;;  %v1158_v52 = vadd.f32 %v1154_v49, %v1064_v44  ;;  %v968_v59 = vpop.f32.mrf.mxu0  ;;  %v2946_v26 = vor.u32 %v2945_v20, %v2941_v19  ;;  %v7399_v19 = vld [vmem:[%s9015_s1 + $0x800] sm:$0xff] }
  0xf5   : >> { %2903 = vmatpush.bf16.msrb.mxu2 %v7389_v28  ;;  %v1239_v58 = vpop.f32.mrf.mxu3  ;;  %v6128_v28 = vld [vmem:[%s7714_s11 + $0x48] sm:$0xf]  ;;  %v7427_v59 = vld [vmem:[%s9015_s1 + $0x8d8] sm:$0xff]  ;;  %v7415_v20 = vld [vmem:[%s9015_s1 + $0x880] sm:$0xff] }
  0xf6   : >> { %2809 = vmatpush.bf16.msrb.mxu1 %v7381_v30  ;;  %v8494_v60 = vadd.f32 %v1239_v58, %v1158_v52  ;;  %v1062_v3 = vpop.f32.mrf.mxu1  ;;  %v7405_v30 = vld [vmem:[%s9015_s1 + $0x830] sm:$0xff]  ;;  %v7402_v52 = vld [vmem:[%s9015_s1 + $0x818] sm:$0xff] }
  0xf7   : >> { %2997 = vmatpush.bf16.msrb.mxu3 %v7397_v31  ;;  %v7421_v31 = vld [vmem:[%s9015_s1 + $0x8b0] sm:$0xff]  ;;  %v7410_v58 = vld [vmem:[%s9015_s1 + $0x858] sm:$0xff] }
  0xf8   : >> { %2727 = vmatpush.bf16.msrb.mxu0 %v7370_v32  ;;  %v7413_v32 = vld [vmem:[%s9015_s1 + $0x870] sm:$0xff] }
  0xf9   : >> { %2904 = vmatpush.bf16.msrb.mxu2 %v7388_v34  ;;  %v7430_v34 = vld [vmem:[%s9015_s1 + $0x8f0] sm:$0xff] }
  0xfa   : >> { %2810 = vmatpush.bf16.msrb.mxu1 %v7380_v35  ;;  %v7404_v35 = vld [vmem:[%s9015_s1 + $0x828] sm:$0xff]  ;;  %v7401_v3 = vld [vmem:[%s9015_s1 + $0x810] sm:$0xff] }
  0xfb   : >> { %2998 = vmatpush.bf16.msrb.mxu3 %v7396_v36  ;;  %v1156_v10 = vpop.f32.mrf.mxu2  ;;  %v7420_v36 = vld [vmem:[%s9015_s1 + $0x8a8] sm:$0xff] }
  0xfc   : >> { %2728 = vmatpush.bf16.msrb.mxu0 %v7369_v40 }
  0xfd   : >> { %2905 = vmatpush.bf16.msrb.mxu2 %v7387_v41  ;;  %v1241_v62 = vpop.f32.mrf.mxu3 }
  0xfe   : >> { %2811 = vmatpush.bf16.msrb.mxu1 %v7379_v29  ;;  %v6277_v29 = vld [vmem:[%s7714_s11 + $0x40] sm:$0xe] }
  0xff   : >> { %2999 = vmatpush.bf16.msrb.mxu3 %v7395_v33  ;;  %v6375_v33 = vld [vmem:[%s7714_s11 + $0x44] sm:$0x3] }
 0x100   : >> { %2729 = vmatpush.bf16.msrb.mxu0 %v7368_v50  ;;  %v7428_v50 = vld [vmem:[%s9015_s1 + $0x8e0] sm:$0xff]  ;;  %v3199_v49 = vunpack.c.l.b16 %v6375_v33 }
 0x101   : >> { %2906 = vmatpush.bf16.msrb.mxu2 %v7386_v51  ;;  %v3029_v51 = vunpack.c.l.b16 %v6277_v29  ;;  %v8690_v29 = vld [vmem:[%s7714_s11 + $0x5c] sm:$0x1] }
 0x102   : >> { %2812 = vmatpush.bf16.msrb.mxu1 %v7378_v55 }
 0x103   : >> { %3000 = vmatpush.bf16.msrb.mxu3 %v7394_v57 }
 0x104   : >> { %2730 = vmatpush.bf16.msrb.mxu0 %v7367_v63 }
 0x105   : >> { %2907 = vmatpush.bf16.msrb.mxu2 %v7385_v2  ;;  %v3200_v2 = vpack.c.b16 %v3199_v49, %v3029_v51 }
 0x106   : >> { %2813 = vmatpush.bf16.msrb.mxu1 %v7377_v5 }
 0x107   : >> { %3001 = vmatpush.bf16.msrb.mxu3 %v7393_v6  ;;  %v7409_v6 = vld [vmem:[%s9015_s1 + $0x850] sm:$0xff]  ;;  %v3205_v10 = vshll.u32 %v3200_v2, 16 }
 0x108   : >> { %2731 = vmatpush.bf16.msrb.mxu0 %v7366_v8  ;;  %v6326_v8 = vld [vmem:[%s7714_s11 + $0x48] sm:$0xe] }
 0x109   : >> { %2908 = vmatpush.bf16.msrb.mxu2 %v7384_v9  ;;  %v3202_v9 = vshrl.u32 %v3200_v2, 16  ;;  %v3114_v62 = vunpack.c.l.b16 %v6326_v8 }
 0x10a   : >> { %2814 = vmatpush.bf16.msrb.mxu1 %v7376_v12  ;;  %v7416_v12 = vld [vmem:[%s9015_s1 + $0x888] sm:$0xff] }
 0x10b   : >> { %3002 = vmatpush.bf16.msrb.mxu3 %v7392_v56 }
 0x10c   : >> { %2732 = vmatpush.bf16.msrb.mxu0 %v7365_v15  ;;  %v1324_v40 = vpop.f32.mrf.mxu0 }
 0x10d   : >> { %2909 = vmatpush.bf16.msrb.mxu2 %v7383_v16  ;;  %v1328_v41 = vadd.f32 %v1324_v40, %v8494_v60  ;;  %v3030_v16 = vpack.c.b16 %v2844_v48, %v3029_v51  ;;  %v3115_v48 = vpack.c.b16 %v2938_v54, %v3114_v62  ;;  %v7465_v54 = vld [vmem:[%s9015_s1 + $0x9f8] sm:$0xff]  ;;  %v6528_v51 = vld [vmem:[%s7714_s11 + $0x54] sm:$0x1]  ;;  %v7435_v62 = vld [vmem:[%s9015_s1 + $0x908] sm:$0xff] }
 0x10e   : >> { %2815 = vmatpush.bf16.msrb.mxu1 %v7375_v21  ;;  %v1416_v44 = vpop.f32.mrf.mxu1  ;;  %v7441_v21 = vld [vmem:[%s9015_s1 + $0x938] sm:$0xff] }
 0x10f   : >> { %3003 = vmatpush.bf16.msrb.mxu3 %v7391_v22  ;;  %2733 = vmatmul.bf16.vlgmr.msrb.gmra.mxu0 %v6076_v42  ;;  %v1420_v45 = vadd.f32 %v1416_v44, %v1328_v41  ;;  %v7407_v22 = vld [vmem:[%s9015_s1 + $0x840] sm:$0xff]  ;;  %v3031_v42 = vrot.slane %v3030_v16, 1  ;;  %v6577_v44 = vld [vmem:[%s7714_s11 + $0x58] sm:$0xf] }
 0x110   : >> { %3081 = vmatpush.bf16.msra.mxu0 %v7406_v17  ;;  %2910 = vmatmul.bf16.vlgmr.msrb.gmra.mxu2 %v2852_v37  ;;  %v3204_v17 = vrot.slane %v3202_v9, 1  ;;  %v7424_v37 = vld [vmem:[%s9015_s1 + $0x8c0] sm:$0xff]  ;;  %v3554_v49 = vunpack.c.l.b16 %v6577_v44 }
 0x111   : >> { %3258 = vmatpush.bf16.msra.mxu2 %v7422_v18  ;;  %2816 = vmatmul.bf16.vlgmr.msrb.gmra.mxu1 %v6128_v28  ;;  %v3207_v18 = vrot.slane %v3205_v10, 2  ;;  %v7440_v28 = vld [vmem:[%s9015_s1 + $0x930] sm:$0xff]  ;;  %v7438_v41 = vld [vmem:[%s9015_s1 + $0x920] sm:$0xff] }
 0x112   : >> { %3166 = vmatpush.bf16.msra.mxu1 %v7414_v23  ;;  %3004 = vmatmul.bf16.vlgmr.msrb.gmra.mxu3 %v2946_v26  ;;  %v6426_v26 = vld [vmem:[%s7714_s11 + $0x50] sm:$0xf] }
 0x113   : >> { %3342 = vmatpush.bf16.msra.mxu3 %v7431_v25  ;;  %v1500_v55 = vpop.f32.mrf.mxu2  ;;  %v3208_v23 = vor.u32 %v3207_v18, %v3204_v17  ;;  %v3116_v25 = vrot.slane %v3115_v48, 1  ;;  %v7444_v10 = vld [vmem:[%s9015_s1 + $0x950] sm:$0xff]  ;;  %v7443_v17 = vld [vmem:[%s9015_s1 + $0x948] sm:$0xff]  ;;  %v7450_v48 = vld [vmem:[%s9015_s1 + $0x980] sm:$0xff] }
 0x114   : >> { %3082 = vmatpush.bf16.msra.mxu0 %v7405_v30  ;;  %v1504_v57 = vadd.f32 %v1500_v55, %v1420_v45  ;;  %v1326_v61 = vpop.f32.mrf.mxu0  ;;  %v7456_v30 = vld [vmem:[%s9015_s1 + $0x9b0] sm:$0xff]  ;;  %v7446_v45 = vld [vmem:[%s9015_s1 + $0x960] sm:$0xff]  ;;  %v7453_v55 = vld [vmem:[%s9015_s1 + $0x998] sm:$0xff] }
 0x115   : >> { %3259 = vmatpush.bf16.msra.mxu2 %v7421_v31  ;;  %v1583_v60 = vpop.f32.mrf.mxu3  ;;  %v7448_v31 = vld [vmem:[%s9015_s1 + $0x970] sm:$0xff]  ;;  %v7445_v61 = vld [vmem:[%s9015_s1 + $0x958] sm:$0xff]  ;;  %v7459_v18 = vld [vmem:[%s9015_s1 + $0x9c8] sm:$0xff] }
 0x116   : >> { %3167 = vmatpush.bf16.msra.mxu1 %v7413_v32  ;;  %v8601_v63 = vadd.f32 %v1583_v60, %v1504_v57  ;;  %v1418_v5 = vpop.f32.mrf.mxu1  ;;  %v7464_v32 = vld [vmem:[%s9015_s1 + $0x9f0] sm:$0xff]  ;;  %v3461_v60 = vunpack.c.l.b16 %v6528_v51 }
 0x117   : >> { %3343 = vmatpush.bf16.msra.mxu3 %v7430_v34  ;;  %v7439_v34 = vld [vmem:[%s9015_s1 + $0x928] sm:$0xff] }
 0x118   : >> { %3083 = vmatpush.bf16.msra.mxu0 %v7404_v35  ;;  %v7455_v35 = vld [vmem:[%s9015_s1 + $0x9a8] sm:$0xff] }
 0x119   : >> { %3260 = vmatpush.bf16.msra.mxu2 %v7420_v36  ;;  %v7447_v36 = vld [vmem:[%s9015_s1 + $0x968] sm:$0xff] }
 0x11a   : >> { %3168 = vmatpush.bf16.msra.mxu1 %v7412_v38  ;;  %v7463_v38 = vld [vmem:[%s9015_s1 + $0x9e8] sm:$0xff] }
 0x11b   : >> { %3344 = vmatpush.bf16.msra.mxu3 %v7429_v39  ;;  %v1502_v56 = vpop.f32.mrf.mxu2 }
 0x11c   : >> { %3084 = vmatpush.bf16.msra.mxu0 %v7403_v24  ;;  %v7454_v24 = vld [vmem:[%s9015_s1 + $0x9a0] sm:$0xff] }
 0x11d   : >> { %3261 = vmatpush.bf16.msra.mxu2 %v7419_v27  ;;  %v1585_v15 = vpop.f32.mrf.mxu3 }
 0x11e   : >> { %3169 = vmatpush.bf16.msra.mxu1 %v7411_v47  ;;  %v7462_v47 = vld [vmem:[%s9015_s1 + $0x9e0] sm:$0xff] }
 0x11f   : >> { %3345 = vmatpush.bf16.msra.mxu3 %v7428_v50  ;;  %v6527_v50 = vld [vmem:[%s7714_s11 + $0x50] sm:$0xf] }
 0x120   : >> { %3085 = vmatpush.bf16.msra.mxu0 %v7402_v52  ;;  %v3555_v52 = vunpack.c.l.b16 %v8690_v29  ;;  %v7524_v29 = vld [vmem:[%s9015_s1 + $0xbb8] sm:$0xff] }
 0x121   : >> { %3262 = vmatpush.bf16.msra.mxu2 %v7418_v53  ;;  %v7437_v53 = vld [vmem:[%s9015_s1 + $0x918] sm:$0xff] }
 0x122   : >> { %3170 = vmatpush.bf16.msra.mxu1 %v7410_v58  ;;  %v3556_v5 = vpack.c.b16 %v3555_v52, %v3554_v49  ;;  %v7478_v49 = vld [vmem:[%s9015_s1 + $0xa60] sm:$0xff] }
 0x123   : >> { %3346 = vmatpush.bf16.msra.mxu3 %v7427_v59  ;;  %v3460_v59 = vunpack.c.l.b16 %v6527_v50 }
 0x124   : >> { %3086 = vmatpush.bf16.msra.mxu0 %v7401_v3  ;;  %v3560_v56 = vshll.u32 %v3556_v5, 16 }
 0x125   : >> { %3263 = vmatpush.bf16.msra.mxu2 %v7417_v4  ;;  %v3462_v9 = vpack.c.b16 %v3461_v60, %v3460_v59 }
 0x126   : >> { %3171 = vmatpush.bf16.msra.mxu1 %v7409_v6  ;;  %v7436_v6 = vld [vmem:[%s9015_s1 + $0x910] sm:$0xff] }
 0x127   : >> { %3347 = vmatpush.bf16.msra.mxu3 %v7426_v7  ;;  %v7452_v7 = vld [vmem:[%s9015_s1 + $0x990] sm:$0xff]  ;;  %v3466_v15 = vshll.u32 %v3462_v9, 16 }
 0x128   : >> { %3087 = vmatpush.bf16.msra.mxu0 %v7400_v11  ;;  %v7460_v11 = vld [vmem:[%s9015_s1 + $0x9d0] sm:$0xff] }
 0x129   : >> { %3264 = vmatpush.bf16.msra.mxu2 %v7416_v12  ;;  %v8730_v12 = vld [vmem:[%s7714_s11 + $0x50] sm:$0xe] }
 0x12a   : >> { %3172 = vmatpush.bf16.msra.mxu1 %v7408_v13  ;;  %v7451_v13 = vld [vmem:[%s9015_s1 + $0x988] sm:$0xff]  ;;  %v3646_v16 = vunpack.c.l.b16 %v8730_v12 }
 0x12b   : >> { %3348 = vmatpush.bf16.msra.mxu3 %v7425_v14  ;;  %v7484_v12 = vld [vmem:[%s9015_s1 + $0xa88] sm:$0xff] }
 0x12c   : >> { %3088 = vmatpush.bf16.msra.mxu0 %v7399_v19  ;;  %v1677_v39 = vpop.f32.mrf.mxu0 }
 0x12d   : >> { %3265 = vmatpush.bf16.msra.mxu2 %v7415_v20  ;;  %v1681_v40 = vadd.f32 %v1677_v39, %v8601_v63  ;;  %v7461_v63 = vld [vmem:[%s9015_s1 + $0x9d8] sm:$0xff]  ;;  %v3558_v20 = vshrl.u32 %v3556_v5, 16  ;;  %v7499_v39 = vld [vmem:[%s9015_s1 + $0xaf0] sm:$0xff] }
 0x12e   : >> { %3173 = vmatpush.bf16.msra.mxu1 %v7407_v22  ;;  %v1771_v27 = vpop.f32.mrf.mxu1  ;;  %v7473_v22 = vld [vmem:[%s9015_s1 + $0xa38] sm:$0xff] }
 0x12f   : >> { %3349 = vmatpush.bf16.msra.mxu3 %v7424_v37  ;;  %3089 = vmatmul.bf16.vlgmr.msra.gmra.mxu0 %v3031_v42  ;;  %v1775_v33 = vadd.f32 %v1771_v27, %v1681_v40  ;;  %v7490_v37 = vld [vmem:[%s9015_s1 + $0xab8] sm:$0xff]  ;;  %v3464_v42 = vshrl.u32 %v3462_v9, 16  ;;  %v7471_v40 = vld [vmem:[%s9015_s1 + $0xa28] sm:$0xff] }
 0x130   : >> { %3425 = vmatpush.bf16.msrb.mxu0 %v7441_v21  ;;  %3266 = vmatmul.bf16.vlgmr.msra.gmra.mxu2 %v3208_v23  ;;  %v3562_v21 = vrot.slane %v3560_v56, 1  ;;  %v3468_v23 = vrot.slane %v3466_v15, 1  ;;  %v7498_v27 = vld [vmem:[%s9015_s1 + $0xae8] sm:$0xff]  ;;  %v7495_v56 = vld [vmem:[%s9015_s1 + $0xad0] sm:$0xff] }
 0x131   : >> { %3613 = vmatpush.bf16.msrb.mxu2 %v7457_v43  ;;  %3174 = vmatmul.bf16.vlgmr.msra.gmra.mxu1 %v3116_v25  ;;  %v7434_v43 = vld [vmem:[%s9015_s1 + $0x900] sm:$0xff] }
 0x132   : >> { %3519 = vmatpush.bf16.msrb.mxu1 %v7449_v46  ;;  %3350 = vmatmul.bf16.vlgmr.msra.gmra.mxu3 %v6426_v26  ;;  %v3647_v46 = vpack.c.b16 %v3461_v60, %v3646_v16  ;;  %v7458_v25 = vld [vmem:[%s9015_s1 + $0x9c0] sm:$0xff]  ;;  %v3563_v26 = vor.u32 %v3562_v21, %v3558_v20 }
 0x133   : >> { %3698 = vmatpush.bf16.msrb.mxu3 %v7465_v54  ;;  %v1856_v57 = vpop.f32.mrf.mxu2  ;;  %v7442_v54 = vld [vmem:[%s9015_s1 + $0x940] sm:$0xff] }
 0x134   : >> { %3426 = vmatpush.bf16.msrb.mxu0 %v7440_v28  ;;  %v1860_v58 = vadd.f32 %v1856_v57, %v1775_v33  ;;  %v1679_v3 = vpop.f32.mrf.mxu0  ;;  %v6478_v28 = vld [vmem:[%s7714_s11 + $0x58] sm:$0xf]  ;;  %v7466_v21 = vld [vmem:[%s9015_s1 + $0xa00] sm:$0xff] }
 0x135   : >> { %3614 = vmatpush.bf16.msrb.mxu2 %v7456_v30  ;;  %v1941_v2 = vpop.f32.mrf.mxu3  ;;  %v7481_v30 = vld [vmem:[%s9015_s1 + $0xa78] sm:$0xff] }
 0x136   : >> { %3520 = vmatpush.bf16.msrb.mxu1 %v7448_v31  ;;  %v8713_v4 = vadd.f32 %v1941_v2, %v1860_v58  ;;  %v1773_v8 = vpop.f32.mrf.mxu1  ;;  %v7500_v31 = vld [vmem:[%s9015_s1 + $0xaf8] sm:$0xff] }
 0x137   : >> { %3699 = vmatpush.bf16.msrb.mxu3 %v7464_v32  ;;  %v3469_v32 = vor.u32 %v3468_v23, %v3464_v42  ;;  %v7469_v57 = vld [vmem:[%s9015_s1 + $0xa18] sm:$0xff]  ;;  %v7493_v42 = vld [vmem:[%s9015_s1 + $0xac0] sm:$0xff] }
 0x138   : >> { %3427 = vmatpush.bf16.msrb.mxu0 %v7439_v34  ;;  %v3648_v34 = vrot.slane %v3647_v46, 1  ;;  %v7486_v58 = vld [vmem:[%s9015_s1 + $0xa98] sm:$0xff]  ;;  %v6776_v46 = vld [vmem:[%s7714_s11 + $0x60] sm:$0xf] }
 0x139   : >> { %3615 = vmatpush.bf16.msrb.mxu2 %v7455_v35  ;;  %v7472_v35 = vld [vmem:[%s9015_s1 + $0xa30] sm:$0xff]  ;;  %v7496_v2 = vld [vmem:[%s9015_s1 + $0xad8] sm:$0xff] }
 0x13a   : >> { %3521 = vmatpush.bf16.msrb.mxu1 %v7447_v36  ;;  %v7489_v36 = vld [vmem:[%s9015_s1 + $0xab0] sm:$0xff]  ;;  %v6676_v8 = vld [vmem:[%s7714_s11 + $0x58] sm:$0xe] }
 0x13b   : >> { %3700 = vmatpush.bf16.msrb.mxu3 %v7463_v38  ;;  %v1858_v14 = vpop.f32.mrf.mxu2  ;;  %v7480_v38 = vld [vmem:[%s9015_s1 + $0xa70] sm:$0xff] }
 0x13c   : >> { %3428 = vmatpush.bf16.msrb.mxu0 %v7438_v41  ;;  %v7488_v41 = vld [vmem:[%s9015_s1 + $0xaa8] sm:$0xff] }
 0x13d   : >> { %3616 = vmatpush.bf16.msrb.mxu2 %v7454_v24  ;;  %v1943_v19 = vpop.f32.mrf.mxu3  ;;  %v7479_v24 = vld [vmem:[%s9015_s1 + $0xa68] sm:$0xff] }
 0x13e   : >> { %3522 = vmatpush.bf16.msrb.mxu1 %v7446_v45  ;;  %v7470_v45 = vld [vmem:[%s9015_s1 + $0xa20] sm:$0xff] }
 0x13f   : >> { %3701 = vmatpush.bf16.msrb.mxu3 %v7462_v47  ;;  %v7487_v47 = vld [vmem:[%s9015_s1 + $0xaa0] sm:$0xff] }
 0x140   : >> { %3429 = vmatpush.bf16.msrb.mxu0 %v7437_v53  ;;  %v7497_v53 = vld [vmem:[%s9015_s1 + $0xae0] sm:$0xff] }
 0x141   : >> { %3617 = vmatpush.bf16.msrb.mxu2 %v7453_v55  ;;  %v6725_v55 = vld [vmem:[%s7714_s11 + $0x54] sm:$0x3] }
 0x142   : >> { %3523 = vmatpush.bf16.msrb.mxu1 %v7445_v61  ;;  %v3816_v61 = vunpack.c.l.b16 %v6725_v55 }
 0x143   : >> { %3702 = vmatpush.bf16.msrb.mxu3 %v7461_v63  ;;  %v7477_v63 = vld [vmem:[%s9015_s1 + $0xa58] sm:$0xff] }
 0x144   : >> { %3430 = vmatpush.bf16.msrb.mxu0 %v7436_v6  ;;  %v7468_v6 = vld [vmem:[%s9015_s1 + $0xa10] sm:$0xff] }
 0x145   : >> { %3618 = vmatpush.bf16.msrb.mxu2 %v7452_v7  ;;  %v7485_v7 = vld [vmem:[%s9015_s1 + $0xa90] sm:$0xff] }
 0x146   : >> { %3524 = vmatpush.bf16.msrb.mxu1 %v7444_v10  ;;  %v3817_v10 = vpack.c.b16 %v3816_v61, %v3646_v16 }
 0x147   : >> { %3703 = vmatpush.bf16.msrb.mxu3 %v7460_v11  ;;  %v7476_v11 = vld [vmem:[%s9015_s1 + $0xa50] sm:$0xff] }
 0x148   : >> { %3431 = vmatpush.bf16.msrb.mxu0 %v7435_v62  ;;  %v3731_v62 = vunpack.c.l.b16 %v6676_v8  ;;  %v3819_v15 = vshrl.u32 %v3817_v10, 16  ;;  %v3822_v16 = vshll.u32 %v3817_v10, 16  ;;  %v7519_v10 = vld [vmem:[%s9015_s1 + $0xb90] sm:$0xff] }
 0x149   : >> { %3619 = vmatpush.bf16.msrb.mxu2 %v7451_v13  ;;  %v7467_v13 = vld [vmem:[%s9015_s1 + $0xa08] sm:$0xff] }
 0x14a   : >> { %3525 = vmatpush.bf16.msrb.mxu1 %v7443_v17  ;;  %v7475_v17 = vld [vmem:[%s9015_s1 + $0xa48] sm:$0xff]  ;;  %v3732_v20 = vpack.c.b16 %v3555_v52, %v3731_v62  ;;  %v3821_v52 = vrot.slane %v3819_v15, 1 }
 0x14b   : >> { %3704 = vmatpush.bf16.msrb.mxu3 %v7459_v18  ;;  %v7494_v18 = vld [vmem:[%s9015_s1 + $0xac8] sm:$0xff] }
 0x14c   : >> { %3432 = vmatpush.bf16.msrb.mxu0 %v7434_v43  ;;  %v2033_v44 = vpop.f32.mrf.mxu0  ;;  %v7483_v43 = vld [vmem:[%s9015_s1 + $0xa80] sm:$0xff]  ;;  %v3733_v23 = vrot.slane %v3732_v20, 1 }
 0x14d   : >> { %3620 = vmatpush.bf16.msrb.mxu2 %v7450_v48  ;;  %v2037_v33 = vadd.f32 %v2033_v44, %v8713_v4  ;;  %v7508_v48 = vld [vmem:[%s9015_s1 + $0xb38] sm:$0xff] }
 0x14e   : >> { %3526 = vmatpush.bf16.msrb.mxu1 %v7442_v54  ;;  %v2117_v50 = vpop.f32.mrf.mxu1  ;;  %v7516_v54 = vld [vmem:[%s9015_s1 + $0xb78] sm:$0xff] }
 0x14f   : >> { %3705 = vmatpush.bf16.msrb.mxu3 %v7458_v25  ;;  %3433 = vmatmul.bf16.vlgmr.msrb.gmra.mxu0 %v6478_v28  ;;  %v2121_v51 = vadd.f32 %v2117_v50, %v2037_v33  ;;  %v7532_v25 = vld [vmem:[%s9015_s1 + $0xbf8] sm:$0xff]  ;;  %v6828_v28 = vld [vmem:[%s7714_s11 + $0x68] sm:$0xf]  ;;  %v6877_v33 = vld [vmem:[%s7714_s11 + $0x60] sm:$0xf] }
 0x150   : >> { %3783 = vmatpush.bf16.msra.mxu0 %v7473_v22  ;;  %3621 = vmatmul.bf16.vlgmr.msrb.gmra.mxu2 %v3563_v26  ;;  %v3824_v22 = vrot.slane %v3822_v16, 2  ;;  %v7513_v50 = vld [vmem:[%s9015_s1 + $0xb60] sm:$0xff]  ;;  %v4077_v55 = vunpack.c.l.b16 %v6877_v33 }
 0x151   : >> { %3959 = vmatpush.bf16.msra.mxu2 %v7490_v37  ;;  %3527 = vmatmul.bf16.vlgmr.msrb.gmra.mxu1 %v3469_v32  ;;  %v7474_v37 = vld [vmem:[%s9015_s1 + $0xa40] sm:$0xff]  ;;  %v7515_v32 = vld [vmem:[%s9015_s1 + $0xb70] sm:$0xff] }
 0x152   : >> { %3875 = vmatpush.bf16.msra.mxu1 %v7481_v30  ;;  %3706 = vmatmul.bf16.vlgmr.msrb.gmra.mxu3 %v3648_v34  ;;  %v3825_v26 = vor.u32 %v3824_v22, %v3821_v52  ;;  %v7507_v30 = vld [vmem:[%s9015_s1 + $0xb30] sm:$0xff] }
 0x153   : >> { %4042 = vmatpush.bf16.msra.mxu3 %v7500_v31  ;;  %v2200_v59 = vpop.f32.mrf.mxu2  ;;  %v7523_v31 = vld [vmem:[%s9015_s1 + $0xbb0] sm:$0xff] }
 0x154   : >> { %3784 = vmatpush.bf16.msra.mxu0 %v7472_v35  ;;  %v2204_v60 = vadd.f32 %v2200_v59, %v2121_v51  ;;  %v2035_v4 = vpop.f32.mrf.mxu0  ;;  %v7531_v34 = vld [vmem:[%s9015_s1 + $0xbf0] sm:$0xff]  ;;  %v7506_v35 = vld [vmem:[%s9015_s1 + $0xb28] sm:$0xff]  ;;  %v7529_v51 = vld [vmem:[%s9015_s1 + $0xbe0] sm:$0xff] }
 0x155   : >> { %3960 = vmatpush.bf16.msra.mxu2 %v7489_v36  ;;  %v2294_v3 = vpop.f32.mrf.mxu3  ;;  %v7522_v36 = vld [vmem:[%s9015_s1 + $0xba8] sm:$0xff]  ;;  %v7520_v59 = vld [vmem:[%s9015_s1 + $0xb98] sm:$0xff] }
 0x156   : >> { %3876 = vmatpush.bf16.msra.mxu1 %v7480_v38  ;;  %v8822_v5 = vadd.f32 %v2294_v3, %v2204_v60  ;;  %v2119_v9 = vpop.f32.mrf.mxu1  ;;  %v7514_v38 = vld [vmem:[%s9015_s1 + $0xb68] sm:$0xff]  ;;  %v7512_v3 = vld [vmem:[%s9015_s1 + $0xb58] sm:$0xff] }
 0x157   : >> { %4043 = vmatpush.bf16.msra.mxu3 %v7499_v39  ;;  %v7530_v39 = vld [vmem:[%s9015_s1 + $0xbe8] sm:$0xff]  ;;  %v7528_v4 = vld [vmem:[%s9015_s1 + $0xbd8] sm:$0xff]  ;;  %v7503_v9 = vld [vmem:[%s9015_s1 + $0xb10] sm:$0xff] }
 0x158   : >> { %3785 = vmatpush.bf16.msra.mxu0 %v7471_v40 }
 0x159   : >> { %3961 = vmatpush.bf16.msra.mxu2 %v7488_v41 }
 0x15a   : >> { %3877 = vmatpush.bf16.msra.mxu1 %v7479_v24  ;;  %v7505_v24 = vld [vmem:[%s9015_s1 + $0xb20] sm:$0xff] }
 0x15b   : >> { %4044 = vmatpush.bf16.msra.mxu3 %v7498_v27  ;;  %v2202_v14 = vpop.f32.mrf.mxu2  ;;  %v7521_v27 = vld [vmem:[%s9015_s1 + $0xba0] sm:$0xff] }
 0x15c   : >> { %3786 = vmatpush.bf16.msra.mxu0 %v7470_v45  ;;  %v6878_v45 = vld [vmem:[%s7714_s11 + $0x64] sm:$0x1]  ;;  %v7026_v14 = vld [vmem:[%s7714_s11 + $0x68] sm:$0xe] }
 0x15d   : >> { %3962 = vmatpush.bf16.msra.mxu2 %v7487_v47  ;;  %v2296_v19 = vpop.f32.mrf.mxu3 }
 0x15e   : >> { %3878 = vmatpush.bf16.msra.mxu1 %v7478_v49  ;;  %v6927_v49 = vld [vmem:[%s7714_s11 + $0x68] sm:$0xf] }
 0x15f   : >> { %4045 = vmatpush.bf16.msra.mxu3 %v7497_v53  ;;  %v6928_v53 = vld [vmem:[%s7714_s11 + $0x6c] sm:$0x1] }
 0x160   : >> { %3787 = vmatpush.bf16.msra.mxu0 %v7469_v57  ;;  %v4078_v57 = vunpack.c.l.b16 %v6878_v45  ;;  %v7536_v45 = vld [vmem:[%s9015_s1 + $0xc18] sm:$0xff] }
 0x161   : >> { %3963 = vmatpush.bf16.msra.mxu2 %v7486_v58  ;;  %v7504_v58 = vld [vmem:[%s9015_s1 + $0xb18] sm:$0xff] }
 0x162   : >> { %3879 = vmatpush.bf16.msra.mxu1 %v7477_v63  ;;  %v4171_v63 = vunpack.c.l.b16 %v6927_v49  ;;  %v4079_v8 = vpack.c.b16 %v4078_v57, %v4077_v55 }
 0x163   : >> { %4046 = vmatpush.bf16.msra.mxu3 %v7496_v2  ;;  %v4172_v2 = vunpack.c.l.b16 %v6928_v53 }
 0x164   : >> { %3788 = vmatpush.bf16.msra.mxu0 %v7468_v6  ;;  %v4083_v15 = vshll.u32 %v4079_v8, 16  ;;  %v4081_v52 = vshrl.u32 %v4079_v8, 16 }
 0x165   : >> { %3964 = vmatpush.bf16.msra.mxu2 %v7485_v7  ;;  %v4173_v62 = vpack.c.b16 %v4172_v2, %v4171_v63 }
 0x166   : >> { %3880 = vmatpush.bf16.msra.mxu1 %v7476_v11  ;;  %v8939_v11 = vld [vmem:[%s7714_s11 + $0x60] sm:$0xe]  ;;  %v4085_v22 = vrot.slane %v4083_v15, 1 }
 0x167   : >> { %4047 = vmatpush.bf16.msra.mxu3 %v7495_v56  ;;  %v4263_v16 = vunpack.c.l.b16 %v8939_v11  ;;  %v4177_v20 = vshll.u32 %v4173_v62, 16 }
 0x168   : >> { %3789 = vmatpush.bf16.msra.mxu0 %v7467_v13  ;;  %v7511_v13 = vld [vmem:[%s9015_s1 + $0xb50] sm:$0xff] }
 0x169   : >> { %3965 = vmatpush.bf16.msra.mxu2 %v7484_v12  ;;  %v7527_v12 = vld [vmem:[%s9015_s1 + $0xbd0] sm:$0xff] }
 0x16a   : >> { %3881 = vmatpush.bf16.msra.mxu1 %v7475_v17  ;;  %v7502_v17 = vld [vmem:[%s9015_s1 + $0xb08] sm:$0xff] }
 0x16b   : >> { %4048 = vmatpush.bf16.msra.mxu3 %v7494_v18  ;;  %v7518_v18 = vld [vmem:[%s9015_s1 + $0xb88] sm:$0xff] }
 0x16c   : >> { %3790 = vmatpush.bf16.msra.mxu0 %v7466_v21  ;;  %v2388_v40 = vpop.f32.mrf.mxu0  ;;  %v4348_v21 = vunpack.c.l.b16 %v7026_v14 }
 0x16d   : >> { %3966 = vmatpush.bf16.msra.mxu2 %v7483_v43  ;;  %v2392_v41 = vadd.f32 %v2388_v40, %v8822_v5  ;;  %v7510_v43 = vld [vmem:[%s9015_s1 + $0xb48] sm:$0xff] }
 0x16e   : >> { %3882 = vmatpush.bf16.msra.mxu1 %v7474_v37  ;;  %v2473_v44 = vpop.f32.mrf.mxu1  ;;  %v4264_v37 = vpack.c.b16 %v4078_v57, %v4263_v16  ;;  %v7535_v57 = vld [vmem:[%s9015_s1 + $0xc10] sm:$0xff] }
 0x16f   : >> { %4049 = vmatpush.bf16.msra.mxu3 %v7493_v42  ;;  %3791 = vmatmul.bf16.vlgmr.msra.gmra.mxu0 %v3733_v23  ;;  %v2477_v47 = vadd.f32 %v2473_v44, %v2392_v41  ;;  %v7501_v42 = vld [vmem:[%s9015_s1 + $0xb00] sm:$0xff] }
 0x170   : >> { %4136 = vmatpush.bf16.msrb.mxu0 %v7508_v48  ;;  %3967 = vmatmul.bf16.vlgmr.msra.gmra.mxu2 %v6776_v46  ;;  %v7526_v48 = vld [vmem:[%s9015_s1 + $0xbc8] sm:$0xff]  ;;  %v7517_v23 = vld [vmem:[%s9015_s1 + $0xb80] sm:$0xff]  ;;  %v7540_v46 = vld [vmem:[%s9015_s1 + $0xc38] sm:$0xff] }
 0x171   : >> { %4315 = vmatpush.bf16.msrb.mxu2 %v7524_v29  ;;  %3883 = vmatmul.bf16.vlgmr.msra.gmra.mxu1 %v3825_v26  ;;  %v4349_v26 = vpack.c.b16 %v4172_v2, %v4348_v21  ;;  %v7075_v41 = vld [vmem:[%s7714_s11 + $0x64] sm:$0x3] }
 0x172   : >> { %4230 = vmatpush.bf16.msrb.mxu1 %v7516_v54  ;;  %4050 = vmatmul.bf16.vlgmr.msra.gmra.mxu3 %v6828_v28  ;;  %v4175_v54 = vshrl.u32 %v4173_v62, 16  ;;  %v7509_v28 = vld [vmem:[%s9015_s1 + $0xb40] sm:$0xff]  ;;  %v4433_v33 = vunpack.c.l.b16 %v7075_v41 }
 0x173   : >> { %4400 = vmatpush.bf16.msrb.mxu3 %v7532_v25  ;;  %v2558_v60 = vpop.f32.mrf.mxu2  ;;  %v4179_v25 = vrot.slane %v4177_v20, 1 }
 0x174   : >> { %4137 = vmatpush.bf16.msrb.mxu0 %v7507_v30  ;;  %v2562_v61 = vadd.f32 %v2558_v60, %v2477_v47  ;;  %v2390_v6 = vpop.f32.mrf.mxu0  ;;  %v7525_v30 = vld [vmem:[%s9015_s1 + $0xbc0] sm:$0xff]  ;;  %v4434_v53 = vpack.c.b16 %v4433_v33, %v4263_v16 }
 0x175   : >> { %4316 = vmatpush.bf16.msrb.mxu2 %v7523_v31  ;;  %v2650_v5 = vpop.f32.mrf.mxu3  ;;  %v4086_v31 = vor.u32 %v4085_v22, %v4081_v52 }
 0x176   : >> { %4231 = vmatpush.bf16.msrb.mxu1 %v7515_v32  ;;  %v2654_v7 = vadd.f32 %v2650_v5, %v2562_v61  ;;  %v2475_v56 = vpop.f32.mrf.mxu1  ;;  %v4265_v32 = vrot.slane %v4264_v37, 1  ;;  %v4439_v60 = vshll.u32 %v4434_v53, 16  ;;  %v7534_v61 = vld [vmem:[%s9015_s1 + $0xc08] sm:$0xff]  ;;  %v7533_v5 = vld [vmem:[%s9015_s1 + $0xc00] sm:$0xff] }
 0x177   : >> { %4401 = vmatpush.bf16.msrb.mxu3 %v7531_v34  ;;  %v4180_v34 = vor.u32 %v4179_v25, %v4175_v54 }
 0x178   : >> { %4138 = vmatpush.bf16.msrb.mxu0 %v7506_v35  ;;  %v4350_v35 = vrot.slane %v4349_v26, 1 }
 0x179   : >> { %4317 = vmatpush.bf16.msrb.mxu2 %v7522_v36  ;;  %v7539_v36 = vld [vmem:[%s9015_s1 + $0xc30] sm:$0xff] }
 0x17a   : >> { %4232 = vmatpush.bf16.msrb.mxu1 %v7514_v38  ;;  %v7538_v38 = vld [vmem:[%s9015_s1 + $0xc28] sm:$0xff] }
 0x17b   : >> { %4402 = vmatpush.bf16.msrb.mxu3 %v7530_v39  ;;  %v2560_v19 = vpop.f32.mrf.mxu2 }
 0x17c   : >> { %4139 = vmatpush.bf16.msrb.mxu0 %v7505_v24  ;;  %v7537_v24 = vld [vmem:[%s9015_s1 + $0xc20] sm:$0xff] }
 0x17d   : >> { %4318 = vmatpush.bf16.msrb.mxu2 %v7521_v27  ;;  %v2652_v29 = vpop.f32.mrf.mxu3 }
 0x17e   : >> { %4233 = vmatpush.bf16.msrb.mxu1 %v7513_v50 }
 0x17f   : >> { %4403 = vmatpush.bf16.msrb.mxu3 %v7529_v51 }
 0x180   : >> { %4140 = vmatpush.bf16.msrb.mxu0 %v7504_v58 }
 0x181   : >> { %4319 = vmatpush.bf16.msrb.mxu2 %v7520_v59  ;;  %v4436_v59 = vshrl.u32 %v4434_v53, 16 }
 0x182   : >> { %4234 = vmatpush.bf16.msrb.mxu1 %v7512_v3 }
 0x183   : >> { %4404 = vmatpush.bf16.msrb.mxu3 %v7528_v4  ;;  %v4438_v3 = vrot.slane %v4436_v59, 1  ;;  %v4441_v4 = vrot.slane %v4439_v60, 2 }
 0x184   : >> { %4141 = vmatpush.bf16.msrb.mxu0 %v7503_v9 }
 0x185   : >> { %4320 = vmatpush.bf16.msrb.mxu2 %v7519_v10  ;;  %v4442_v6 = vor.u32 %v4441_v4, %v4438_v3 }
 0x186   : >> { %4235 = vmatpush.bf16.msrb.mxu1 %v7511_v13 }
 0x187   : >> { %4405 = vmatpush.bf16.msrb.mxu3 %v7527_v12 }
 0x188   : >> { %4142 = vmatpush.bf16.msrb.mxu0 %v7502_v17 }
 0x189   : >> { %4321 = vmatpush.bf16.msrb.mxu2 %v7518_v18 }
 0x18a   : >> { %4236 = vmatpush.bf16.msrb.mxu1 %v7510_v43 }
 0x18b   : >> { %4406 = vmatpush.bf16.msrb.mxu3 %v7526_v48 }
 0x18c   : >> { %4143 = vmatpush.bf16.msrb.mxu0 %v7501_v42  ;;  %v2734_v39 = vpop.f32.mrf.mxu0 }
 0x18d   : >> { %4322 = vmatpush.bf16.msrb.mxu2 %v7517_v23  ;;  %v2738_v40 = vadd.f32 %v2734_v39, %v2654_v7 }
 0x18e   : >> { %4237 = vmatpush.bf16.msrb.mxu1 %v7509_v28  ;;  %v2817_v27 = vpop.f32.mrf.mxu1 }
 0x18f   : >> { %4407 = vmatpush.bf16.msrb.mxu3 %v7525_v30  ;;  %4144 = vmatmul.bf16.vlgmr.msrb.gmra.mxu0 %v4086_v31  ;;  %v2821_v44 = vadd.f32 %v2817_v27, %v2738_v40 }
 0x190   : >> { %4492 = vmatpush.bf16.msra.mxu0 %v7540_v46  ;;  %4323 = vmatmul.bf16.vlgmr.msrb.gmra.mxu2 %v4265_v32 }
 0x191   : >> { %4238 = vmatmul.bf16.vlgmr.msrb.gmra.mxu1 %v4180_v34 }
 0x192   : >> { %4408 = vmatmul.bf16.vlgmr.msrb.gmra.mxu3 %v4350_v35 }
 0x193   : >> { %v2911_v47 = vpop.f32.mrf.mxu2 }
 0x194   : >> { %4493 = vmatpush.bf16.msra.mxu0 %v7539_v36  ;;  %v2915_v50 = vadd.f32 %v2911_v47, %v2821_v44  ;;  %v2736_v49 = vpop.f32.mrf.mxu0 }
 0x195   : >> { %v3005_v51 = vpop.f32.mrf.mxu3 }
 0x196   : >> { %v3009_v55 = vadd.f32 %v3005_v51, %v2915_v50  ;;  %v2819_v58 = vpop.f32.mrf.mxu1 }
 0x198   : >> { %4494 = vmatpush.bf16.msra.mxu0 %v7538_v38 }
 0x19b   : >> { %v2913_v63 = vpop.f32.mrf.mxu2 }
 0x19c   : >> { %4495 = vmatpush.bf16.msra.mxu0 %v7537_v24 }
 0x19d   : >> { %v3007_v2 = vpop.f32.mrf.mxu3 }
 0x1a0   : >> { %4496 = vmatpush.bf16.msra.mxu0 %v7536_v45 }
 0x1a4   : >> { %4497 = vmatpush.bf16.msra.mxu0 %v7535_v57 }
 0x1a8   : >> { %4498 = vmatpush.bf16.msra.mxu0 %v7534_v61 }
 0x1ac   : >> { %4499 = vmatpush.bf16.msra.mxu0 %v7533_v5  ;;  %v3090_v7 = vpop.f32.mrf.mxu0 }
 0x1ad   : >> { %v3094_v8 = vadd.f32 %v3090_v7, %v3009_v55 }
 0x1ae   : >> { %v3175_v9 = vpop.f32.mrf.mxu1 }
 0x1af   : >> { %4500 = vmatmul.bf16.vlgmr.msra.gmra.mxu0 %v4442_v6  ;;  %v3179_v10 = vadd.f32 %v3175_v9, %v3094_v8 }
 0x1b3   : >> { %v3267_v11 = vpop.f32.mrf.mxu2 }
 0x1b4   : >> { %v3271_v56 = vadd.f32 %v3267_v11, %v3179_v10  ;;  %v3092_v13 = vpop.f32.mrf.mxu0 }
 0x1b5   : >> { %v3351_v62 = vpop.f32.mrf.mxu3 }
 0x1b6   : >> { %v3355_v12 = vadd.f32 %v3351_v62, %v3271_v56  ;;  %v3177_v14 = vpop.f32.mrf.mxu1 }
 0x1bb   : >> { %v3269_v15 = vpop.f32.mrf.mxu2 }
 0x1bd   : >> { %v3353_v16 = vpop.f32.mrf.mxu3 }
 0x1cc   : >> { %v3434_v17 = vpop.f32.mrf.mxu0 }
 0x1cd   : >> { %v3438_v18 = vadd.f32 %v3434_v17, %v3355_v12 }
 0x1ce   : >> { %v3528_v19 = vpop.f32.mrf.mxu1 }
 0x1cf   : >> { %v3532_v20 = vadd.f32 %v3528_v19, %v3438_v18 }
 0x1d3   : >> { %v3622_v21 = vpop.f32.mrf.mxu2 }
 0x1d4   : >> { %v3626_v43 = vadd.f32 %v3622_v21, %v3532_v20  ;;  %v3436_v29 = vpop.f32.mrf.mxu0 }
 0x1d5   : >> { %v3707_v48 = vpop.f32.mrf.mxu3 }
 0x1d6   : >> { %v3711_v52 = vadd.f32 %v3707_v48, %v3626_v43  ;;  %v3530_v22 = vpop.f32.mrf.mxu1 }
 0x1db   : >> { %v3624_v37 = vpop.f32.mrf.mxu2 }
 0x1dd   : >> { %v3709_v42 = vpop.f32.mrf.mxu3 }
 0x1ec   : >> { %v3792_v23 = vpop.f32.mrf.mxu0 }
 0x1ed   : >> { %v3796_v36 = vadd.f32 %v3792_v23, %v3711_v52 }
 0x1ee   : >> { %v3884_v46 = vpop.f32.mrf.mxu1 }
 0x1ef   : >> { %v3888_v41 = vadd.f32 %v3884_v46, %v3796_v36 }
 0x1f3   : >> { %v3968_v54 = vpop.f32.mrf.mxu2 }
 0x1f4   : >> { %v3794_v26 = vpop.f32.mrf.mxu0  ;;  %v3972_v24 = vadd.f32 %v3968_v54, %v3888_v41 }
 0x1f5   : >> { %v4051_v25 = vpop.f32.mrf.mxu3 }
 0x1f6   : >> { %v3886_v28 = vpop.f32.mrf.mxu1  ;;  %v4055_v33 = vadd.f32 %v4051_v25, %v3972_v24 }
 0x1fb   : >> { %v3970_v30 = vpop.f32.mrf.mxu2 }
 0x1fd   : >> { %v4053_v31 = vpop.f32.mrf.mxu3 }
 0x20c   : >> { %v4145_v32 = vpop.f32.mrf.mxu0 }
 0x20d   : >> { %v4149_v45 = vadd.f32 %v4145_v32, %v4055_v33 }
 0x20e   : >> { %v4239_v34 = vpop.f32.mrf.mxu1 }
 0x20f   : >> { %v4243_v47 = vadd.f32 %v4239_v34, %v4149_v45 }
 0x213   : >> { %v4324_v35 = vpop.f32.mrf.mxu2 }
 0x214   : >> { %v4147_v39 = vpop.f32.mrf.mxu0  ;;  %v4328_v50 = vadd.f32 %v4324_v35, %v4243_v47 }
 0x215   : >> { %v4409_v38 = vpop.f32.mrf.mxu3 }
 0x216   : >> { %v4241_v40 = vpop.f32.mrf.mxu1  ;;  %v4413_v51 = vadd.f32 %v4409_v38, %v4328_v50 }
 0x21b   : >> { %v4326_v27 = vpop.f32.mrf.mxu2 }
 0x21d   : >> { %v4411_v44 = vpop.f32.mrf.mxu3 }
 0x22c   : >> { %v4501_v49 = vpop.f32.mrf.mxu0 }
 0x22d   : >> { %v4505_v53 = vadd.f32 %v4501_v49, %v4413_v51 }
 0x22f   : >> { %v4506_v55 = vpack.c.bf16 %v4505_v53, %v4505_v53  ;;  %v4510_v57 = vrot.slane %v4505_v53, 4  ;;  %v4517_v58 = vmul.f32 %v4505_v53, %v4505_v53 }
 0x231   : >> { %4509 = vst [vmem:[%s4508_s7] sm:$0xf] %v4506_v55  ;;  %v4511_v59 = vadd.f32 %v4510_v57, %v4505_v53  ;;  %v4518_v60 = vrot.slane %v4517_v58, 4 }
 0x233   : >> { %v4512_v61 = vrot.slane %v4511_v59, 2  ;;  %v4519_v63 = vadd.f32 %v4518_v60, %v4517_v58 }
 0x234   : >> { %v4503_v2 = vpop.f32.mrf.mxu0 }
 0x235   : >> { %v4513_v3 = vadd.f32 %v4512_v61, %v4511_v59  ;;  %v4520_v4 = vrot.slane %v4519_v63, 2 }
 0x237   : >> { %v4514_v5 = vrot.slane %v4513_v3, 1  ;;  %v4521_v6 = vadd.f32 %v4520_v4, %v4519_v63 }
 0x239   : >> { %v4515_v7 = vadd.f32 %v4514_v5, %v4513_v3  ;;  %v4522_v8 = vrot.slane %v4521_v6, 1 }
 0x23b   : >> { %v4516_v9 = vadd.f32 %v7600_v1, %v4515_v7   ;;  %v4523_v10 = vadd.f32 %v4522_v8, %v4521_v6  ;;  %186 = sbr.rel (!%p184_p4) target bundleno = 15 (0xf), region = 140 }
 0x23d   : >> { %v4524_v11 = vadd.f32 %v7596_v0, %v4523_v10   ;;  %v9019_v1 = vmov %v4516_v9  ;;  %4525 = vst [vmem:[%s7647_s25] sm:$0x1] (%p184_p4), %v4516_v9 }
 0x23f   : >> { %v9018_v0 = vmov %v4524_v11  ;;  %4526 = vst [vmem:[%s7647_s25 + $0x1] sm:$0x1] (%p184_p4), %v4524_v11 }
 0x240 PF: > { %s14_s12 = sadd.s32 1, %s7592_s12  }
 0x241   : > { %p11_p5 = scmp.ge.s32.totalorder %s14_s12, 4  }
 0x243   :  { %13 = sbr.rel (!%p11_p5) target bundleno = 1 (0x1), region = 151 }

</bundles_post_ra>
